<compile_context>
chip_gen: v7x
topology: tpu7x:2x2x1
jax: 0.10.0
libtpu: 0.0.40
codegen_flags: <defaults>
</compile_context>

<pallas_src>
import functools
import math

import jax
import jax.numpy as jnp
from jax.experimental import pallas as pl
from jax.experimental.pallas import tpu as pltpu

# bf16 MXU inputs (2-4x matmul throughput vs f32 on every generation, half the
# HBM bytes for weight-streaming-bound layers); accumulation stays f32.
MXU_DTYPE = jnp.bfloat16          # what the MXU sees
ACT_DTYPE = jnp.bfloat16          # inter-layer activations / weights in HBM
NEG_INF = -1e10


def _default_vmem_limit():
    # ~half of physical VMEM: 64 MiB on v5e/v6e (128 MiB), 32 MiB on v7x (64 MiB).
    try:
        cap = pltpu.get_tpu_info().vmem_capacity_bytes
    except Exception:
        cap = 128 * 1024 * 1024
    return int(min(64 * 1024 * 1024, max(cap // 2, 16 * 1024 * 1024)))


_VMEM_LIMIT_BYTES = _default_vmem_limit()


def _pick_tile(dim, preferred, aligns):
    """Largest tile <= `preferred` that divides `dim`, aligned to the largest
    possible value in `aligns`; falls back to the full dimension (always a
    legal block)."""
    if dim <= preferred:
        return dim
    for align in aligns:
        if dim % align:
            continue
        t = (preferred // align) * align
        while t >= align:
            if dim % t == 0:
                return t
            t -= align
    return dim


# --------------------------- linear kernels ---------------------------------

def _linear_f32_kernel(x_ref, w_ref, b_ref, o_ref, *, activation):
    # f32 output: accumulate directly into the resident output block.
    @pl.when(pl.program_id(2) == 0)
    def _init():
        o_ref[...] = jnp.broadcast_to(b_ref[...], o_ref.shape)

    o_ref[...] += jnp.dot(x_ref[...].astype(MXU_DTYPE),
                          w_ref[...].astype(MXU_DTYPE),
                          preferred_element_type=jnp.float32)

    if activation == "relu":
        @pl.when(pl.program_id(2) == pl.num_programs(2) - 1)
        def _fin():
            o_ref[...] = jnp.maximum(o_ref[...], 0.0)


def _linear_acc_kernel(x_ref, w_ref, b_ref, o_ref, acc_ref, *, activation):
    # bf16 output: f32 VMEM accumulator, cast on finalize.
    @pl.when(pl.program_id(2) == 0)
    def _init():
        acc_ref[...] = jnp.broadcast_to(b_ref[...], acc_ref.shape)

    acc_ref[...] += jnp.dot(x_ref[...].astype(MXU_DTYPE),
                            w_ref[...].astype(MXU_DTYPE),
                            preferred_element_type=jnp.float32)

    @pl.when(pl.program_id(2) == pl.num_programs(2) - 1)
    def _fin():
        y = acc_ref[...]
        if activation == "relu":
            y = jnp.maximum(y, 0.0)
        o_ref[...] = y.astype(o_ref.dtype)


def linear(x, w, b, activation="none", out_dtype=ACT_DTYPE):
    """x: (M, K) @ w: (K, N) + b: (N,), tiled over an (m, n, k) grid with a
    K-reduction accumulator and parallel (m, n) axes."""
    M, K = x.shape
    N = w.shape[1]
    tm = _pick_tile(M, 512, (256, 128, 16, 8))
    tn = _pick_tile(N, 1024, (256, 128))
    tk = _pick_tile(K, 1024, (256, 128))
    grid = (M // tm, N // tn, K // tk)
    in_specs = [
        pl.BlockSpec((tm, tk), lambda i, j, k: (i, k)),
        pl.BlockSpec((tk, tn), lambda i, j, k: (k, j)),
        pl.BlockSpec((1, tn), lambda i, j, k: (0, j)),
    ]
    out_spec = pl.BlockSpec((tm, tn), lambda i, j, k: (i, j))
    cparams = pltpu.CompilerParams(
        dimension_semantics=("parallel", "parallel", "arbitrary"),
        vmem_limit_bytes=_VMEM_LIMIT_BYTES)
    b2d = b.reshape(1, N).astype(jnp.float32)

    if jnp.dtype(out_dtype) == jnp.dtype(jnp.float32):
        return pl.pallas_call(
            functools.partial(_linear_f32_kernel, activation=activation),
            out_shape=jax.ShapeDtypeStruct((M, N), jnp.float32),
            grid=grid, in_specs=in_specs, out_specs=out_spec,
            compiler_params=cparams,
        )(x, w, b2d)

    return pl.pallas_call(
        functools.partial(_linear_acc_kernel, activation=activation),
        out_shape=jax.ShapeDtypeStruct((M, N), out_dtype),
        grid=grid, in_specs=in_specs, out_specs=out_spec,
        scratch_shapes=[pltpu.VMEM((tm, tn), jnp.float32)],
        compiler_params=cparams,
    )(x, w, b2d)


def _linear_ln_kernel(x_ref, w_ref, b_ref, r_ref, g_ref, bt_ref, o_ref,
                      acc_ref, *, eps):
    @pl.when(pl.program_id(1) == 0)
    def _init():
        acc_ref[...] = jnp.broadcast_to(b_ref[...], acc_ref.shape)

    acc_ref[...] += jnp.dot(x_ref[...].astype(MXU_DTYPE),
                            w_ref[...].astype(MXU_DTYPE),
                            preferred_element_type=jnp.float32)

    @pl.when(pl.program_id(1) == pl.num_programs(1) - 1)
    def _fin():
        y = acc_ref[...] + r_ref[...].astype(jnp.float32)   # fused residual
        mu = jnp.mean(y, axis=-1, keepdims=True)
        var = jnp.mean((y - mu) ** 2, axis=-1, keepdims=True)
        yn = (y - mu) * jax.lax.rsqrt(var + eps)
        o_ref[...] = (yn * g_ref[...] + bt_ref[...]).astype(o_ref.dtype)


def linear_add_layernorm(x, w, b, residual, gamma, beta, eps=1e-5,
                         out_dtype=ACT_DTYPE):
    """LayerNorm((x @ w + b) + residual) fused into the matmul epilogue.
    Keeps the full N row per tile (required for the row reduction)."""
    M, K = x.shape
    N = w.shape[1]
    tm = _pick_tile(M, 512, (256, 128, 16, 8))
    tk = _pick_tile(K, 1024, (256, 128))
    grid = (M // tm, K // tk)
    return pl.pallas_call(
        functools.partial(_linear_ln_kernel, eps=eps),
        out_shape=jax.ShapeDtypeStruct((M, N), out_dtype),
        grid=grid,
        in_specs=[
            pl.BlockSpec((tm, tk), lambda i, k: (i, k)),
            pl.BlockSpec((tk, N), lambda i, k: (k, 0)),
            pl.BlockSpec((1, N), lambda i, k: (0, 0)),
            pl.BlockSpec((tm, N), lambda i, k: (i, 0)),
            pl.BlockSpec((1, N), lambda i, k: (0, 0)),
            pl.BlockSpec((1, N), lambda i, k: (0, 0)),
        ],
        out_specs=pl.BlockSpec((tm, N), lambda i, k: (i, 0)),
        scratch_shapes=[pltpu.VMEM((tm, N), jnp.float32)],
        compiler_params=pltpu.CompilerParams(
            dimension_semantics=("parallel", "arbitrary"),
            vmem_limit_bytes=_VMEM_LIMIT_BYTES),
    )(x, w, b.reshape(1, N).astype(jnp.float32), residual,
      gamma.reshape(1, N).astype(jnp.float32),
      beta.reshape(1, N).astype(jnp.float32))


# --------------------------- attention kernel --------------------------------

def _attention_kernel(q_ref, kv_ref, pm_ref, o_ref, *rest, n_heads, head_dim,
                      inv_scale, causal, tq, return_weights):
    D = n_heads * head_dim
    q = q_ref[0]            # (tq, D)   bf16, head-packed in lanes
    kv = kv_ref[0]          # (Sk, 2D)  bf16, [K | V] head-packed in lanes
    pad_ok = pm_ref[0]      # (1, Sk)   f32 key-padding mask (1 keep, 0 mask)
    Sk = kv.shape[0]

    allowed = pad_ok > 0.0                                  # (1, Sk)
    if causal:
        q_pos = (jax.lax.broadcasted_iota(jnp.int32, (tq, Sk), 0)
                 + pl.program_id(1) * tq)
        k_pos = jax.lax.broadcasted_iota(jnp.int32, (tq, Sk), 1)
        allowed = allowed & (k_pos <= q_pos)                # (tq, Sk)

    ctx_parts = []
    for h in range(n_heads):                                # static, unrolled
        qh = q[:, h * head_dim:(h + 1) * head_dim]
        kh = kv[:, h * head_dim:(h + 1) * head_dim]
        vh = kv[:, D + h * head_dim:D + (h + 1) * head_dim]
        # QK^T contracting on head_dim (no explicit K transpose), f32 acc.
        s = jax.lax.dot_general(qh, kh, (((1,), (1,)), ((), ())),
                                preferred_element_type=jnp.float32) * inv_scale
        s = jnp.where(allowed, s, NEG_INF)                  # masked_fill
        s = s - jnp.max(s, axis=-1, keepdims=True)
        p = jnp.exp(s)
        inv_denom = pl.reciprocal(jnp.sum(p, axis=-1, keepdims=True),
                                  approx=True)
        ctx_h = jnp.dot(p.astype(kv.dtype), vh,
                        preferred_element_type=jnp.float32)
        # scale the small (tq, Dh) context, not the (tq, Sk) probabilities
        ctx_parts.append((ctx_h * inv_denom).astype(o_ref.dtype))
        if return_weights:                                  # only when used
            rest[0][0, h] = p * inv_denom
    # single lane-dense (tq, D) store instead of per-head partial stores
    o_ref[0] = jnp.concatenate(ctx_parts, axis=-1)


def attention_core(q, kv, pad_mask, n_heads, *, causal, need_weights):
    """q: (B, Sq, D) head-packed; kv: (B, Sk, 2D) = [K | V] head-packed;
    pad_mask: (B, 1, Sk) f32 key-padding mask.  Returns ctx (B, Sq, D) and
    optionally the attention probabilities (B, H, Sq, Sk)."""
    # TODO(synk): for long Sk switch to a K-blocked online-softmax (flash)
    # inner loop so the (tq, Sk) score slab never exceeds the VMEM budget.
    B, Sq, D = q.shape
    Sk = kv.shape[1]
    head_dim = D // n_heads
    inv_scale = 1.0 / math.sqrt(head_dim)
    tq = _pick_tile(Sq, 256, (128, 16, 8))
    grid = (B, Sq // tq)

    ctx_shape = jax.ShapeDtypeStruct((B, Sq, D), ACT_DTYPE)
    ctx_spec = pl.BlockSpec((1, tq, D), lambda b, qi: (b, qi, 0))
    if need_weights:
        out_shape = (ctx_shape,
                     jax.ShapeDtypeStruct((B, n_heads, Sq, Sk), jnp.float32))
        out_specs = (ctx_spec,
                     pl.BlockSpec((1, n_heads, tq, Sk),
                                  lambda b, qi: (b, 0, qi, 0)))
    else:
        out_shape = ctx_shape
        out_specs = ctx_spec

    res = pl.pallas_call(
        functools.partial(_attention_kernel, n_heads=n_heads,
                          head_dim=head_dim, inv_scale=inv_scale,
                          causal=causal, tq=tq, return_weights=need_weights),
        out_shape=out_shape,
        grid=grid,
        in_specs=[
            pl.BlockSpec((1, tq, D), lambda b, qi: (b, qi, 0)),
            pl.BlockSpec((1, Sk, 2 * D), lambda b, qi: (b, 0, 0)),
            pl.BlockSpec((1, 1, Sk), lambda b, qi: (b, 0, 0)),
        ],
        out_specs=out_specs,
        compiler_params=pltpu.CompilerParams(
            dimension_semantics=("parallel", "parallel"),
            vmem_limit_bytes=_VMEM_LIMIT_BYTES),
    )(q, kv, pad_mask)
    if need_weights:
        return res[0], res[1]
    return res, None


# --------------------------- model building blocks ---------------------------

def mha_context(p, query, kv_src, pad_mask, n_heads, *, self_attn,
                causal=False, need_weights=False):
    """Projections + attention core; returns head-merged context (M, D).
    The out-projection (+ residual + LN) is fused into linear_add_layernorm
    by the caller."""
    B, Sq, D = query.shape
    if self_attn:
        # One fused (D, 3D) Q|K|V projection, split with cheap lane slices.
        qkv = linear(query.reshape(-1, D), p["w_qkv"], p["b_qkv"])
        qkv = qkv.reshape(B, Sq, 3 * D)
        q, kv = qkv[..., :D], qkv[..., D:]
    else:
        Sk = kv_src.shape[1]
        q = linear(query.reshape(-1, D), p["w_q"], p["b_q"]).reshape(B, Sq, D)
        kv = linear(kv_src.reshape(-1, D), p["w_kv"],
                    p["b_kv"]).reshape(B, Sk, 2 * D)
    ctx, attn = attention_core(q, kv, pad_mask, n_heads,
                               causal=causal, need_weights=need_weights)
    return ctx.reshape(B * Sq, D), attn


def encoder_forward(p, src, src_pad, n_heads):
    B, S = src.shape
    D = p["tok_emb"].shape[1]
    # TODO(synk): embedding gather + positional add stay in plain JAX.
    x = (jnp.take(p["tok_emb"], src, axis=0) * math.sqrt(D)
         + p["pos_emb"][:S][None, :, :]).astype(ACT_DTYPE)
    x2d = x.reshape(B * S, D)
    for lp in p["layers"]:
        ctx, _ = mha_context(lp["attn"], x2d.reshape(B, S, D), None, src_pad,
                             n_heads, self_attn=True)
        x2d = linear_add_layernorm(ctx, lp["attn"]["wo"], lp["attn"]["bo"],
                                   x2d, lp["ln1_g"], lp["ln1_b"])
        h = linear(x2d, lp["ff"]["w1"], lp["ff"]["b1"], activation="relu")
        x2d = linear_add_layernorm(h, lp["ff"]["w2"], lp["ff"]["b2"],
                                   x2d, lp["ln2_g"], lp["ln2_b"])
    return x2d.reshape(B, S, D)


def decoder_forward(p, tgt, enc_src, tgt_pad, src_pad, n_heads):
    B, T = tgt.shape
    D = p["tok_emb"].shape[1]
    x = (jnp.take(p["tok_emb"], tgt, axis=0) * math.sqrt(D)
         + p["pos_emb"][:T][None, :, :]).astype(ACT_DTYPE)
    x2d = x.reshape(B * T, D)
    attention = None
    n_layers = len(p["layers"])
    for li, lp in enumerate(p["layers"]):
        ctx, _ = mha_context(lp["self_attn"], x2d.reshape(B, T, D), None,
                             tgt_pad, n_heads, self_attn=True, causal=True)
        x2d = linear_add_layernorm(ctx, lp["self_attn"]["wo"],
                                   lp["self_attn"]["bo"], x2d,
                                   lp["ln1_g"], lp["ln1_b"])
        # Only the last layer's cross-attention weights are returned, so only
        # that call pays for writing the probability tensor to HBM.
        need_w = (li == n_layers - 1)
        ctx, attn = mha_context(lp["cross_attn"], x2d.reshape(B, T, D),
                                enc_src, src_pad, n_heads, self_attn=False,
                                need_weights=need_w)
        if need_w:
            attention = attn
        x2d = linear_add_layernorm(ctx, lp["cross_attn"]["wo"],
                                   lp["cross_attn"]["bo"], x2d,
                                   lp["ln2_g"], lp["ln2_b"])
        h = linear(x2d, lp["ff"]["w1"], lp["ff"]["b1"], activation="relu")
        x2d = linear_add_layernorm(h, lp["ff"]["w2"], lp["ff"]["b2"],
                                   x2d, lp["ln3_g"], lp["ln3_b"])
    V = p["fc_out_w"].shape[1]
    out = linear(x2d, p["fc_out_w"], p["fc_out_b"],
                 out_dtype=jnp.float32).reshape(B, T, V)
    return out, attention


def make_key_pad_mask(tokens, pad_idx):
    # (B, 1, Sk) f32 row mask — Sq-times smaller than the full mask; the
    # causal part of the decoder self-attention mask is generated in-kernel.
    return (tokens != pad_idx).astype(jnp.float32)[:, None, :]


def transformer_forward(params, src, tgt, src_pad_idx, tgt_pad_idx, n_heads):
    src_pad = make_key_pad_mask(src, src_pad_idx)
    tgt_pad = make_key_pad_mask(tgt, tgt_pad_idx)
    enc_src = encoder_forward(params["encoder"], src, src_pad, n_heads)
    output, attention = decoder_forward(params["decoder"], tgt, enc_src,
                                        tgt_pad, src_pad, n_heads)
    return output, attention


# --------------------------- parameter init ---------------------------------

def init_dense(key, d_in, d_out):
    k1, k2 = jax.random.split(key)
    bound = 1.0 / math.sqrt(d_in)
    w = jax.random.uniform(k1, (d_in, d_out), jnp.float32, -bound, bound)
    b = jax.random.uniform(k2, (d_out,), jnp.float32, -bound, bound)
    return w.astype(ACT_DTYPE), b     # weights bf16 (cast once), biases f32


def init_self_mha(key, d):
    ks = jax.random.split(key, 4)
    ws, bs = zip(*[init_dense(k, d, d) for k in ks[:3]])     # q, k, v
    wo, bo = init_dense(ks[3], d, d)
    return {"w_qkv": jnp.concatenate(ws, axis=1),            # (D, 3D) [Q|K|V]
            "b_qkv": jnp.concatenate(bs, axis=0),            # (3D,)
            "wo": wo, "bo": bo}


def init_cross_mha(key, d):
    ks = jax.random.split(key, 4)
    wq, bq = init_dense(ks[0], d, d)
    wk, bk = init_dense(ks[1], d, d)
    wv, bv = init_dense(ks[2], d, d)
    wo, bo = init_dense(ks[3], d, d)
    return {"w_q": wq, "b_q": bq,
            "w_kv": jnp.concatenate([wk, wv], axis=1),       # (D, 2D) [K|V]
            "b_kv": jnp.concatenate([bk, bv], axis=0),
            "wo": wo, "bo": bo}


def init_ffn(key, d, d_ff):
    k1, k2 = jax.random.split(key)
    w1, b1 = init_dense(k1, d, d_ff)
    w2, b2 = init_dense(k2, d_ff, d)
    return {"w1": w1, "b1": b1, "w2": w2, "b2": b2}


def init_params(key, vocab_src, vocab_tgt, d, d_ff, n_layers, max_len):
    keys = iter(jax.random.split(key, 64))
    enc = {
        "tok_emb": (jax.random.normal(next(keys), (vocab_src, d), jnp.float32)
                    * 0.02).astype(ACT_DTYPE),
        "pos_emb": (jax.random.normal(next(keys), (max_len, d), jnp.float32)
                    * 0.02).astype(ACT_DTYPE),
        "layers": [],
    }
    for _ in range(n_layers):
        enc["layers"].append({
            "attn": init_self_mha(next(keys), d),
            "ff": init_ffn(next(keys), d, d_ff),
            "ln1_g": jnp.ones((d,), jnp.float32), "ln1_b": jnp.zeros((d,), jnp.float32),
            "ln2_g": jnp.ones((d,), jnp.float32), "ln2_b": jnp.zeros((d,), jnp.float32),
        })
    dec = {
        "tok_emb": (jax.random.normal(next(keys), (vocab_tgt, d), jnp.float32)
                    * 0.02).astype(ACT_DTYPE),
        "pos_emb": (jax.random.normal(next(keys), (max_len, d), jnp.float32)
                    * 0.02).astype(ACT_DTYPE),
        "layers": [],
    }
    for _ in range(n_layers):
        dec["layers"].append({
            "self_attn": init_self_mha(next(keys), d),
            "cross_attn": init_cross_mha(next(keys), d),
            "ff": init_ffn(next(keys), d, d_ff),
            "ln1_g": jnp.ones((d,), jnp.float32), "ln1_b": jnp.zeros((d,), jnp.float32),
            "ln2_g": jnp.ones((d,), jnp.float32), "ln2_b": jnp.zeros((d,), jnp.float32),
            "ln3_g": jnp.ones((d,), jnp.float32), "ln3_b": jnp.zeros((d,), jnp.float32),
        })
    fw, fb = init_dense(next(keys), d, vocab_tgt)
    dec["fc_out_w"], dec["fc_out_b"] = fw, fb
    return {"encoder": enc, "decoder": dec}


# --------------------------------- main --------------------------------------

if __name__ == "__main__":
    VOCAB = 32
    D_MODEL = 32
    N_HEADS = 4
    D_FF = 64
    N_LAYERS = 2
    MAX_LEN = 16
    B, S_SRC, S_TGT = 2, 8, 8
    SRC_PAD_IDX, TGT_PAD_IDX = 0, 0

    root = jax.random.PRNGKey(0)
    k_param, k_src, k_tgt = jax.random.split(root, 3)
    params = init_params(k_param, VOCAB, VOCAB, D_MODEL, D_FF, N_LAYERS, MAX_LEN)

    src = jax.random.randint(k_src, (B, S_SRC), 1, VOCAB, dtype=jnp.int32)
    tgt = jax.random.randint(k_tgt, (B, S_TGT), 1, VOCAB, dtype=jnp.int32)
    # introduce padding to exercise the masks
    src = src.at[:, -2:].set(SRC_PAD_IDX)
    tgt = tgt.at[:, -1:].set(TGT_PAD_IDX)

    fwd = jax.jit(functools.partial(
        transformer_forward,
        src_pad_idx=SRC_PAD_IDX, tgt_pad_idx=TGT_PAD_IDX, n_heads=N_HEADS))

    output, attention = fwd(params, src, tgt)
    jax.block_until_ready((output, attention))

    assert output.shape == (B, S_TGT, VOCAB)
    assert attention.shape == (B, N_HEADS, S_TGT, S_SRC)
    assert bool(jnp.all(jnp.isfinite(output.astype(jnp.float32))))
    assert bool(jnp.all(jnp.isfinite(attention)))
    print("KERNEL_OK")
</pallas_src>

<mosaic_0001>
module attributes {stable_mosaic.version = 11 : i64} {
  func.func @_linear_ln_kernel(%arg0: i32, %arg1: i32, %arg2: memref<16x32xbf16, #tpu.memory_space<vmem>>, %arg3: memref<32x32xbf16, #tpu.memory_space<vmem>>, %arg4: memref<1x32xf32, #tpu.memory_space<vmem>>, %arg5: memref<16x32xbf16, #tpu.memory_space<vmem>>, %arg6: memref<1x32xf32, #tpu.memory_space<vmem>>, %arg7: memref<1x32xf32, #tpu.memory_space<vmem>>, %arg8: memref<16x32xbf16, #tpu.memory_space<vmem>>, %arg9: memref<16x32xf32, #tpu.memory_space<vmem>>) attributes {dimension_semantics = [#tpu.dimension_semantics<parallel>, #tpu.dimension_semantics<arbitrary>], iteration_bounds = array<i64: 1, 1>, scalar_prefetch = 0 : i64, scratch_operands = 1 : i64, tpu.core_type = #tpu.core_type<tc>, window_params = [{transform_indices = @transform_0, window_bounds = array<i64: 16, 32>}, {transform_indices = @transform_1, window_bounds = array<i64: 32, 32>}, {pipeline_mode = #tpu.pipeline_mode<synchronous>, transform_indices = @transform_2, window_bounds = array<i64: 1, 32>}, {transform_indices = @transform_3, window_bounds = array<i64: 16, 32>}, {pipeline_mode = #tpu.pipeline_mode<synchronous>, transform_indices = @transform_4, window_bounds = array<i64: 1, 32>}, {pipeline_mode = #tpu.pipeline_mode<synchronous>, transform_indices = @transform_5, window_bounds = array<i64: 1, 32>}, {transform_indices = @transform_6, window_bounds = array<i64: 16, 32>}]} {
    %c0_i32 = arith.constant 0 : i32
    %0 = arith.cmpi eq, %arg1, %c0_i32 : i32
    %1 = arith.extui %0 : i1 to i32
    %c0_i32_0 = arith.constant 0 : i32
    %2 = arith.cmpi ne, %1, %c0_i32_0 : i32
    scf.if %2 {
      %c0_10 = arith.constant 0 : index
      %c0_11 = arith.constant 0 : index
      %12 = vector.load %arg4[%c0_10, %c0_11] : memref<1x32xf32, #tpu.memory_space<vmem>>, vector<1x32xf32>
      %13 = vector.shape_cast %12 : vector<1x32xf32> to vector<1x32xf32>
      %14 = vector.broadcast %13 : vector<1x32xf32> to vector<16x32xf32>
      %c0_12 = arith.constant 0 : index
      %c0_13 = arith.constant 0 : index
      %15 = vector.load %arg9[%c0_12, %c0_13] : memref<16x32xf32, #tpu.memory_space<vmem>>, vector<16x32xf32>
      tpu.vector_store %arg9[%c0_12, %c0_13], %14 {strides = array<i32>} : memref<16x32xf32, #tpu.memory_space<vmem>>, vector<16x32xf32>,
    } else {
    }
    %c0 = arith.constant 0 : index
    %c0_1 = arith.constant 0 : index
    %3 = vector.load %arg9[%c0, %c0_1] : memref<16x32xf32, #tpu.memory_space<vmem>>, vector<16x32xf32>
    %c0_2 = arith.constant 0 : index
    %c0_3 = arith.constant 0 : index
    %4 = vector.load %arg2[%c0_2, %c0_3] : memref<16x32xbf16, #tpu.memory_space<vmem>>, vector<16x32xbf16>
    %c0_4 = arith.constant 0 : index
    %c0_5 = arith.constant 0 : index
    %5 = vector.load %arg3[%c0_4, %c0_5] : memref<32x32xbf16, #tpu.memory_space<vmem>>, vector<32x32xbf16>
    %cst = arith.constant dense<0.000000e+00> : vector<16x32xf32>
    %6 = tpu.matmul %4, %5, %cst {dimension_numbers = #tpu.dot_dimension_numbers<[1], [0], [0], [1], [0, 0, 1, 1], [], []>} : vector<16x32xbf16>, vector<32x32xbf16>, vector<16x32xf32> -> vector<16x32xf32>
    %7 = arith.addf %3, %6 : vector<16x32xf32>
    %c0_6 = arith.constant 0 : index
    %c0_7 = arith.constant 0 : index
    %8 = vector.load %arg9[%c0_6, %c0_7] : memref<16x32xf32, #tpu.memory_space<vmem>>, vector<16x32xf32>
    tpu.vector_store %arg9[%c0_6, %c0_7], %7 {strides = array<i32>} : memref<16x32xf32, #tpu.memory_space<vmem>>, vector<16x32xf32>,
    %c0_i32_8 = arith.constant 0 : i32
    %9 = arith.cmpi eq, %arg1, %c0_i32_8 : i32
    %10 = arith.extui %9 : i1 to i32
    %c0_i32_9 = arith.constant 0 : i32
    %11 = arith.cmpi ne, %10, %c0_i32_9 : i32
    scf.if %11 {
      %c0_10 = arith.constant 0 : index
      %c0_11 = arith.constant 0 : index
      %12 = vector.load %arg9[%c0_10, %c0_11] : memref<16x32xf32, #tpu.memory_space<vmem>>, vector<16x32xf32>
      %c0_12 = arith.constant 0 : index
      %c0_13 = arith.constant 0 : index
      %13 = vector.load %arg5[%c0_12, %c0_13] : memref<16x32xbf16, #tpu.memory_space<vmem>>, vector<16x32xbf16>
      %14 = arith.extf %13 : vector<16x32xbf16> to vector<16x32xf32>
      %15 = arith.addf %12, %14 : vector<16x32xf32>
      %cst_14 = arith.constant dense<0.000000e+00> : vector<16xf32>
      %16 = vector.multi_reduction <add>, %15, %cst_14 [1] : vector<16x32xf32> to vector<16xf32>
      %17 = vector.shape_cast %16 : vector<16xf32> to vector<16x1xf32>
      %cst_15 = arith.constant 3.200000e+01 : f32
      %18 = vector.broadcast %cst_15 : f32 to vector<16x1xf32>
      %19 = arith.divf %17, %18 : vector<16x1xf32>
      %20 = vector.broadcast %19 : vector<16x1xf32> to vector<16x32xf32>
      %21 = arith.subf %15, %20 : vector<16x32xf32>
      %22 = arith.mulf %21, %21 : vector<16x32xf32>
      %cst_16 = arith.constant dense<0.000000e+00> : vector<16xf32>
      %23 = vector.multi_reduction <add>, %22, %cst_16 [1] : vector<16x32xf32> to vector<16xf32>
      %24 = vector.shape_cast %23 : vector<16xf32> to vector<16x1xf32>
      %cst_17 = arith.constant 3.200000e+01 : f32
      %25 = vector.broadcast %cst_17 : f32 to vector<16x1xf32>
      %26 = arith.divf %24, %25 : vector<16x1xf32>
      %27 = vector.broadcast %19 : vector<16x1xf32> to vector<16x32xf32>
      %28 = arith.subf %15, %27 : vector<16x32xf32>
      %cst_18 = arith.constant 9.99999974E-6 : f32
      %29 = vector.broadcast %cst_18 : f32 to vector<16x1xf32>
      %30 = arith.addf %26, %29 : vector<16x1xf32>
      %31 = math.rsqrt %30 : vector<16x1xf32>
      %32 = vector.broadcast %31 : vector<16x1xf32> to vector<16x32xf32>
      %33 = arith.mulf %28, %32 : vector<16x32xf32>
      %c0_19 = arith.constant 0 : index
      %c0_20 = arith.constant 0 : index
      %34 = vector.load %arg6[%c0_19, %c0_20] : memref<1x32xf32, #tpu.memory_space<vmem>>, vector<1x32xf32>
      %35 = vector.broadcast %34 : vector<1x32xf32> to vector<16x32xf32>
      %36 = arith.mulf %33, %35 : vector<16x32xf32>
      %c0_21 = arith.constant 0 : index
      %c0_22 = arith.constant 0 : index
      %37 = vector.load %arg7[%c0_21, %c0_22] : memref<1x32xf32, #tpu.memory_space<vmem>>, vector<1x32xf32>
      %38 = vector.broadcast %37 : vector<1x32xf32> to vector<16x32xf32>
      %39 = arith.addf %36, %38 : vector<16x32xf32>
      %40 = arith.truncf %39 : vector<16x32xf32> to vector<16x32xbf16>
      %c0_23 = arith.constant 0 : index
      %c0_24 = arith.constant 0 : index
      %41 = vector.load %arg8[%c0_23, %c0_24] : memref<16x32xbf16, #tpu.memory_space<vmem>>, vector<16x32xbf16>
      tpu.vector_store %arg8[%c0_23, %c0_24], %40 {strides = array<i32>} : memref<16x32xbf16, #tpu.memory_space<vmem>>, vector<16x32xbf16>,
    } else {
    }
    return
  }
  func.func @transform_0(%arg0: i32, %arg1: i32) -> (i32, i32) {
    %c0_i32 = arith.constant 0 : i32
    return %arg0, %arg1 : i32, i32
  }
  func.func @transform_1(%arg0: i32, %arg1: i32) -> (i32, i32) {
    %c0_i32 = arith.constant 0 : i32
    %c0_i32_0 = arith.constant 0 : i32
    return %arg1, %c0_i32 : i32, i32
  }
  func.func @transform_2(%arg0: i32, %arg1: i32) -> (i32, i32) {
    %c0_i32 = arith.constant 0 : i32
    %c0_i32_0 = arith.constant 0 : i32
    %c0_i32_1 = arith.constant 0 : i32
    return %c0_i32, %c0_i32_0 : i32, i32
  }
  func.func @transform_3(%arg0: i32, %arg1: i32) -> (i32, i32) {
    %c0_i32 = arith.constant 0 : i32
    %c0_i32_0 = arith.constant 0 : i32
    return %arg0, %c0_i32 : i32, i32
  }
  func.func @transform_4(%arg0: i32, %arg1: i32) -> (i32, i32) {
    %c0_i32 = arith.constant 0 : i32
    %c0_i32_0 = arith.constant 0 : i32
    %c0_i32_1 = arith.constant 0 : i32
    return %c0_i32, %c0_i32_0 : i32, i32
  }
  func.func @transform_5(%arg0: i32, %arg1: i32) -> (i32, i32) {
    %c0_i32 = arith.constant 0 : i32
    %c0_i32_0 = arith.constant 0 : i32
    %c0_i32_1 = arith.constant 0 : i32
    return %c0_i32, %c0_i32_0 : i32, i32
  }
  func.func @transform_6(%arg0: i32, %arg1: i32) -> (i32, i32) {
    %c0_i32 = arith.constant 0 : i32
    %c0_i32_0 = arith.constant 0 : i32
    return %arg0, %c0_i32 : i32, i32
  }
}

module attributes {stable_mosaic.version = 11 : i64} {
  func.func @_linear_acc_kernel(%arg0: i32, %arg1: i32, %arg2: i32, %arg3: memref<16x32xbf16, #tpu.memory_space<vmem>>, %arg4: memref<32x96xbf16, #tpu.memory_space<vmem>>, %arg5: memref<1x96xf32, #tpu.memory_space<vmem>>, %arg6: memref<16x96xbf16, #tpu.memory_space<vmem>>, %arg7: memref<16x96xf32, #tpu.memory_space<vmem>>) attributes {dimension_semantics = [#tpu.dimension_semantics<parallel>, #tpu.dimension_semantics<parallel>, #tpu.dimension_semantics<arbitrary>], iteration_bounds = array<i64: 1, 1, 1>, scalar_prefetch = 0 : i64, scratch_operands = 1 : i64, tpu.core_type = #tpu.core_type<tc>, window_params = [{transform_indices = @transform_0, window_bounds = array<i64: 16, 32>}, {transform_indices = @transform_1, window_bounds = array<i64: 32, 96>}, {transform_indices = @transform_2, window_bounds = array<i64: 1, 96>}, {transform_indices = @transform_3, window_bounds = array<i64: 16, 96>}]} {
    %c0_i32 = arith.constant 0 : i32
    %0 = arith.cmpi eq, %arg2, %c0_i32 : i32
    %1 = arith.extui %0 : i1 to i32
    %c0_i32_0 = arith.constant 0 : i32
    %2 = arith.cmpi ne, %1, %c0_i32_0 : i32
    scf.if %2 {
      %c0_10 = arith.constant 0 : index
      %c0_11 = arith.constant 0 : index
      %12 = vector.load %arg5[%c0_10, %c0_11] : memref<1x96xf32, #tpu.memory_space<vmem>>, vector<1x96xf32>
      %13 = vector.shape_cast %12 : vector<1x96xf32> to vector<1x96xf32>
      %14 = vector.broadcast %13 : vector<1x96xf32> to vector<16x96xf32>
      %c0_12 = arith.constant 0 : index
      %c0_13 = arith.constant 0 : index
      %15 = vector.load %arg7[%c0_12, %c0_13] : memref<16x96xf32, #tpu.memory_space<vmem>>, vector<16x96xf32>
      tpu.vector_store %arg7[%c0_12, %c0_13], %14 {strides = array<i32>} : memref<16x96xf32, #tpu.memory_space<vmem>>, vector<16x96xf32>,
    } else {
    }
    %c0 = arith.constant 0 : index
    %c0_1 = arith.constant 0 : index
    %3 = vector.load %arg7[%c0, %c0_1] : memref<16x96xf32, #tpu.memory_space<vmem>>, vector<16x96xf32>
    %c0_2 = arith.constant 0 : index
    %c0_3 = arith.constant 0 : index
    %4 = vector.load %arg3[%c0_2, %c0_3] : memref<16x32xbf16, #tpu.memory_space<vmem>>, vector<16x32xbf16>
    %c0_4 = arith.constant 0 : index
    %c0_5 = arith.constant 0 : index
    %5 = vector.load %arg4[%c0_4, %c0_5] : memref<32x96xbf16, #tpu.memory_space<vmem>>, vector<32x96xbf16>
    %cst = arith.constant dense<0.000000e+00> : vector<16x96xf32>
    %6 = tpu.matmul %4, %5, %cst {dimension_numbers = #tpu.dot_dimension_numbers<[1], [0], [0], [1], [0, 0, 1, 1], [], []>} : vector<16x32xbf16>, vector<32x96xbf16>, vector<16x96xf32> -> vector<16x96xf32>
    %7 = arith.addf %3, %6 : vector<16x96xf32>
    %c0_6 = arith.constant 0 : index
    %c0_7 = arith.constant 0 : index
    %8 = vector.load %arg7[%c0_6, %c0_7] : memref<16x96xf32, #tpu.memory_space<vmem>>, vector<16x96xf32>
    tpu.vector_store %arg7[%c0_6, %c0_7], %7 {strides = array<i32>} : memref<16x96xf32, #tpu.memory_space<vmem>>, vector<16x96xf32>,
    %c0_i32_8 = arith.constant 0 : i32
    %9 = arith.cmpi eq, %arg2, %c0_i32_8 : i32
    %10 = arith.extui %9 : i1 to i32
    %c0_i32_9 = arith.constant 0 : i32
    %11 = arith.cmpi ne, %10, %c0_i32_9 : i32
    scf.if %11 {
      %c0_10 = arith.constant 0 : index
      %c0_11 = arith.constant 0 : index
      %12 = vector.load %arg7[%c0_10, %c0_11] : memref<16x96xf32, #tpu.memory_space<vmem>>, vector<16x96xf32>
      %13 = arith.truncf %12 : vector<16x96xf32> to vector<16x96xbf16>
      %c0_12 = arith.constant 0 : index
      %c0_13 = arith.constant 0 : index
      %14 = vector.load %arg6[%c0_12, %c0_13] : memref<16x96xbf16, #tpu.memory_space<vmem>>, vector<16x96xbf16>
      tpu.vector_store %arg6[%c0_12, %c0_13], %13 {strides = array<i32>} : memref<16x96xbf16, #tpu.memory_space<vmem>>, vector<16x96xbf16>,
    } else {
    }
    return
  }
  func.func @transform_0(%arg0: i32, %arg1: i32, %arg2: i32) -> (i32, i32) {
    %c0_i32 = arith.constant 0 : i32
    return %arg0, %arg2 : i32, i32
  }
  func.func @transform_1(%arg0: i32, %arg1: i32, %arg2: i32) -> (i32, i32) {
    %c0_i32 = arith.constant 0 : i32
    return %arg2, %arg1 : i32, i32
  }
  func.func @transform_2(%arg0: i32, %arg1: i32, %arg2: i32) -> (i32, i32) {
    %c0_i32 = arith.constant 0 : i32
    %c0_i32_0 = arith.constant 0 : i32
    return %c0_i32, %arg1 : i32, i32
  }
  func.func @transform_3(%arg0: i32, %arg1: i32, %arg2: i32) -> (i32, i32) {
    %c0_i32 = arith.constant 0 : i32
    return %arg0, %arg1 : i32, i32
  }
}

module attributes {stable_mosaic.version = 11 : i64} {
  func.func @_linear_acc_kernel(%arg0: i32, %arg1: i32, %arg2: i32, %arg3: memref<16x32xbf16, #tpu.memory_space<vmem>>, %arg4: memref<32x64xbf16, #tpu.memory_space<vmem>>, %arg5: memref<1x64xf32, #tpu.memory_space<vmem>>, %arg6: memref<16x64xbf16, #tpu.memory_space<vmem>>, %arg7: memref<16x64xf32, #tpu.memory_space<vmem>>) attributes {dimension_semantics = [#tpu.dimension_semantics<parallel>, #tpu.dimension_semantics<parallel>, #tpu.dimension_semantics<arbitrary>], iteration_bounds = array<i64: 1, 1, 1>, scalar_prefetch = 0 : i64, scratch_operands = 1 : i64, tpu.core_type = #tpu.core_type<tc>, window_params = [{transform_indices = @transform_0, window_bounds = array<i64: 16, 32>}, {transform_indices = @transform_1, window_bounds = array<i64: 32, 64>}, {transform_indices = @transform_2, window_bounds = array<i64: 1, 64>}, {transform_indices = @transform_3, window_bounds = array<i64: 16, 64>}]} {
    %c0_i32 = arith.constant 0 : i32
    %0 = arith.cmpi eq, %arg2, %c0_i32 : i32
    %1 = arith.extui %0 : i1 to i32
    %c0_i32_0 = arith.constant 0 : i32
    %2 = arith.cmpi ne, %1, %c0_i32_0 : i32
    scf.if %2 {
      %c0_10 = arith.constant 0 : index
      %c0_11 = arith.constant 0 : index
      %12 = vector.load %arg5[%c0_10, %c0_11] : memref<1x64xf32, #tpu.memory_space<vmem>>, vector<1x64xf32>
      %13 = vector.shape_cast %12 : vector<1x64xf32> to vector<1x64xf32>
      %14 = vector.broadcast %13 : vector<1x64xf32> to vector<16x64xf32>
      %c0_12 = arith.constant 0 : index
      %c0_13 = arith.constant 0 : index
      %15 = vector.load %arg7[%c0_12, %c0_13] : memref<16x64xf32, #tpu.memory_space<vmem>>, vector<16x64xf32>
      tpu.vector_store %arg7[%c0_12, %c0_13], %14 {strides = array<i32>} : memref<16x64xf32, #tpu.memory_space<vmem>>, vector<16x64xf32>,
    } else {
    }
    %c0 = arith.constant 0 : index
    %c0_1 = arith.constant 0 : index
    %3 = vector.load %arg7[%c0, %c0_1] : memref<16x64xf32, #tpu.memory_space<vmem>>, vector<16x64xf32>
    %c0_2 = arith.constant 0 : index
    %c0_3 = arith.constant 0 : index
    %4 = vector.load %arg3[%c0_2, %c0_3] : memref<16x32xbf16, #tpu.memory_space<vmem>>, vector<16x32xbf16>
    %c0_4 = arith.constant 0 : index
    %c0_5 = arith.constant 0 : index
    %5 = vector.load %arg4[%c0_4, %c0_5] : memref<32x64xbf16, #tpu.memory_space<vmem>>, vector<32x64xbf16>
    %cst = arith.constant dense<0.000000e+00> : vector<16x64xf32>
    %6 = tpu.matmul %4, %5, %cst {dimension_numbers = #tpu.dot_dimension_numbers<[1], [0], [0], [1], [0, 0, 1, 1], [], []>} : vector<16x32xbf16>, vector<32x64xbf16>, vector<16x64xf32> -> vector<16x64xf32>
    %7 = arith.addf %3, %6 : vector<16x64xf32>
    %c0_6 = arith.constant 0 : index
    %c0_7 = arith.constant 0 : index
    %8 = vector.load %arg7[%c0_6, %c0_7] : memref<16x64xf32, #tpu.memory_space<vmem>>, vector<16x64xf32>
    tpu.vector_store %arg7[%c0_6, %c0_7], %7 {strides = array<i32>} : memref<16x64xf32, #tpu.memory_space<vmem>>, vector<16x64xf32>,
    %c0_i32_8 = arith.constant 0 : i32
    %9 = arith.cmpi eq, %arg2, %c0_i32_8 : i32
    %10 = arith.extui %9 : i1 to i32
    %c0_i32_9 = arith.constant 0 : i32
    %11 = arith.cmpi ne, %10, %c0_i32_9 : i32
    scf.if %11 {
      %c0_10 = arith.constant 0 : index
      %c0_11 = arith.constant 0 : index
      %12 = vector.load %arg7[%c0_10, %c0_11] : memref<16x64xf32, #tpu.memory_space<vmem>>, vector<16x64xf32>
      %cst_12 = arith.constant 0.000000e+00 : f32
      %13 = vector.broadcast %cst_12 : f32 to vector<16x64xf32>
      %14 = arith.maximumf %12, %13 : vector<16x64xf32>
      %15 = arith.truncf %14 : vector<16x64xf32> to vector<16x64xbf16>
      %c0_13 = arith.constant 0 : index
      %c0_14 = arith.constant 0 : index
      %16 = vector.load %arg6[%c0_13, %c0_14] : memref<16x64xbf16, #tpu.memory_space<vmem>>, vector<16x64xbf16>
      tpu.vector_store %arg6[%c0_13, %c0_14], %15 {strides = array<i32>} : memref<16x64xbf16, #tpu.memory_space<vmem>>, vector<16x64xbf16>,
    } else {
    }
    return
  }
  func.func @transform_0(%arg0: i32, %arg1: i32, %arg2: i32) -> (i32, i32) {
    %c0_i32 = arith.constant 0 : i32
    return %arg0, %arg2 : i32, i32
  }
  func.func @transform_1(%arg0: i32, %arg1: i32, %arg2: i32) -> (i32, i32) {
    %c0_i32 = arith.constant 0 : i32
    return %arg2, %arg1 : i32, i32
  }
  func.func @transform_2(%arg0: i32, %arg1: i32, %arg2: i32) -> (i32, i32) {
    %c0_i32 = arith.constant 0 : i32
    %c0_i32_0 = arith.constant 0 : i32
    return %c0_i32, %arg1 : i32, i32
  }
  func.func @transform_3(%arg0: i32, %arg1: i32, %arg2: i32) -> (i32, i32) {
    %c0_i32 = arith.constant 0 : i32
    return %arg0, %arg1 : i32, i32
  }
}

module attributes {stable_mosaic.version = 11 : i64} {
  func.func @_attention_kernel(%arg0: i32, %arg1: i32, %arg2: memref<1x8x32xbf16, #tpu.memory_space<vmem>>, %arg3: memref<1x8x64xbf16, #tpu.memory_space<vmem>>, %arg4: memref<1x1x8xf32, #tpu.memory_space<vmem>>, %arg5: memref<1x8x32xbf16, #tpu.memory_space<vmem>>) attributes {dimension_semantics = [#tpu.dimension_semantics<parallel>, #tpu.dimension_semantics<parallel>], iteration_bounds = array<i64: 2, 1>, scalar_prefetch = 0 : i64, scratch_operands = 0 : i64, tpu.core_type = #tpu.core_type<tc>, window_params = [{transform_indices = @transform_0, window_bounds = array<i64: 1, 8, 32>}, {transform_indices = @transform_1, window_bounds = array<i64: 1, 8, 64>}, {transform_indices = @transform_2, window_bounds = array<i64: 1, 1, 8>}, {transform_indices = @transform_3, window_bounds = array<i64: 1, 8, 32>}]} {
    %c0 = arith.constant 0 : index
    %c0_0 = arith.constant 0 : index
    %c0_1 = arith.constant 0 : index
    %0 = vector.load %arg2[%c0, %c0_0, %c0_1] : memref<1x8x32xbf16, #tpu.memory_space<vmem>>, vector<1x8x32xbf16>
    %1 = vector.shape_cast %0 : vector<1x8x32xbf16> to vector<8x32xbf16>
    %c0_2 = arith.constant 0 : index
    %c0_3 = arith.constant 0 : index
    %c0_4 = arith.constant 0 : index
    %2 = vector.load %arg3[%c0_2, %c0_3, %c0_4] : memref<1x8x64xbf16, #tpu.memory_space<vmem>>, vector<1x8x64xbf16>
    %3 = vector.shape_cast %2 : vector<1x8x64xbf16> to vector<8x64xbf16>
    %c0_5 = arith.constant 0 : index
    %c0_6 = arith.constant 0 : index
    %c0_7 = arith.constant 0 : index
    %4 = vector.load %arg4[%c0_5, %c0_6, %c0_7] : memref<1x1x8xf32, #tpu.memory_space<vmem>>, vector<1x1x8xf32>
    %5 = vector.shape_cast %4 : vector<1x1x8xf32> to vector<1x8xf32>
    %cst = arith.constant 0.000000e+00 : f32
    %6 = vector.broadcast %cst : f32 to vector<1x8xf32>
    %7 = arith.cmpf ogt, %5, %6 : vector<1x8xf32>
    %8 = vector.extract_strided_slice %1 {offsets = [0, 0], sizes = [8, 8], strides = [1, 1]} : vector<8x32xbf16> to vector<8x8xbf16>
    %9 = vector.extract_strided_slice %3 {offsets = [0, 0], sizes = [8, 8], strides = [1, 1]} : vector<8x64xbf16> to vector<8x8xbf16>
    %10 = vector.extract_strided_slice %3 {offsets = [0, 32], sizes = [8, 8], strides = [1, 1]} : vector<8x64xbf16> to vector<8x8xbf16>
    %cst_8 = arith.constant dense<0.000000e+00> : vector<8x8xf32>
    %11 = tpu.matmul %8, %9, %cst_8 {dimension_numbers = #tpu.dot_dimension_numbers<[1], [1], [0], [0], [0, 0, 1, 0], [], []>} : vector<8x8xbf16>, vector<8x8xbf16>, vector<8x8xf32> -> vector<8x8xf32>
    %cst_9 = arith.constant 0.353553385 : f32
    %12 = vector.broadcast %cst_9 : f32 to vector<8x8xf32>
    %13 = arith.mulf %11, %12 : vector<8x8xf32>
    %cst_10 = arith.constant -1.000000e+10 : f32
    %14 = vector.shape_cast %7 : vector<1x8xi1> to vector<1x8xi1>
    %15 = vector.broadcast %14 : vector<1x8xi1> to vector<8x8xi1>
    %16 = vector.broadcast %cst_10 : f32 to vector<8x8xf32>
    %17 = arith.select %15, %13, %16 : vector<8x8xi1>, vector<8x8xf32>
    %cst_11 = arith.constant dense<0xFF800000> : vector<8xf32>
    %18 = vector.multi_reduction <maximumf>, %17, %cst_11 [1] : vector<8x8xf32> to vector<8xf32>
    %19 = vector.shape_cast %18 : vector<8xf32> to vector<8x1xf32>
    %20 = vector.broadcast %19 : vector<8x1xf32> to vector<8x8xf32>
    %21 = arith.subf %17, %20 : vector<8x8xf32>
    %22 = math.exp %21 : vector<8x8xf32>
    %cst_12 = arith.constant dense<0.000000e+00> : vector<8xf32>
    %23 = vector.multi_reduction <add>, %22, %cst_12 [1] : vector<8x8xf32> to vector<8xf32>
    %24 = vector.shape_cast %23 : vector<8xf32> to vector<8x1xf32>
    %25 = tpu.reciprocal %24 {approx = true} : vector<8x1xf32> -> vector<8x1xf32>
    %26 = arith.truncf %22 : vector<8x8xf32> to vector<8x8xbf16>
    %cst_13 = arith.constant dense<0.000000e+00> : vector<8x8xf32>
    %27 = tpu.matmul %26, %10, %cst_13 {dimension_numbers = #tpu.dot_dimension_numbers<[1], [0], [0], [1], [0, 0, 1, 1], [], []>} : vector<8x8xbf16>, vector<8x8xbf16>, vector<8x8xf32> -> vector<8x8xf32>
    %28 = vector.broadcast %25 : vector<8x1xf32> to vector<8x8xf32>
    %29 = arith.mulf %27, %28 : vector<8x8xf32>
    %30 = arith.truncf %29 : vector<8x8xf32> to vector<8x8xbf16>
    %31 = vector.extract_strided_slice %1 {offsets = [0, 8], sizes = [8, 8], strides = [1, 1]} : vector<8x32xbf16> to vector<8x8xbf16>
    %32 = vector.extract_strided_slice %3 {offsets = [0, 8], sizes = [8, 8], strides = [1, 1]} : vector<8x64xbf16> to vector<8x8xbf16>
    %33 = vector.extract_strided_slice %3 {offsets = [0, 40], sizes = [8, 8], strides = [1, 1]} : vector<8x64xbf16> to vector<8x8xbf16>
    %cst_14 = arith.constant dense<0.000000e+00> : vector<8x8xf32>
    %34 = tpu.matmul %31, %32, %cst_14 {dimension_numbers = #tpu.dot_dimension_numbers<[1], [1], [0], [0], [0, 0, 1, 0], [], []>} : vector<8x8xbf16>, vector<8x8xbf16>, vector<8x8xf32> -> vector<8x8xf32>
    %cst_15 = arith.constant 0.353553385 : f32
    %35 = vector.broadcast %cst_15 : f32 to vector<8x8xf32>
    %36 = arith.mulf %34, %35 : vector<8x8xf32>
    %cst_16 = arith.constant -1.000000e+10 : f32
    %37 = vector.shape_cast %7 : vector<1x8xi1> to vector<1x8xi1>
    %38 = vector.broadcast %37 : vector<1x8xi1> to vector<8x8xi1>
    %39 = vector.broadcast %cst_16 : f32 to vector<8x8xf32>
    %40 = arith.select %38, %36, %39 : vector<8x8xi1>, vector<8x8xf32>
    %cst_17 = arith.constant dense<0xFF800000> : vector<8xf32>
    %41 = vector.multi_reduction <maximumf>, %40, %cst_17 [1] : vector<8x8xf32> to vector<8xf32>
    %42 = vector.shape_cast %41 : vector<8xf32> to vector<8x1xf32>
    %43 = vector.broadcast %42 : vector<8x1xf32> to vector<8x8xf32>
    %44 = arith.subf %40, %43 : vector<8x8xf32>
    %45 = math.exp %44 : vector<8x8xf32>
    %cst_18 = arith.constant dense<0.000000e+00> : vector<8xf32>
    %46 = vector.multi_reduction <add>, %45, %cst_18 [1] : vector<8x8xf32> to vector<8xf32>
    %47 = vector.shape_cast %46 : vector<8xf32> to vector<8x1xf32>
    %48 = tpu.reciprocal %47 {approx = true} : vector<8x1xf32> -> vector<8x1xf32>
    %49 = arith.truncf %45 : vector<8x8xf32> to vector<8x8xbf16>
    %cst_19 = arith.constant dense<0.000000e+00> : vector<8x8xf32>
    %50 = tpu.matmul %49, %33, %cst_19 {dimension_numbers = #tpu.dot_dimension_numbers<[1], [0], [0], [1], [0, 0, 1, 1], [], []>} : vector<8x8xbf16>, vector<8x8xbf16>, vector<8x8xf32> -> vector<8x8xf32>
    %51 = vector.broadcast %48 : vector<8x1xf32> to vector<8x8xf32>
    %52 = arith.mulf %50, %51 : vector<8x8xf32>
    %53 = arith.truncf %52 : vector<8x8xf32> to vector<8x8xbf16>
    %54 = vector.extract_strided_slice %1 {offsets = [0, 16], sizes = [8, 8], strides = [1, 1]} : vector<8x32xbf16> to vector<8x8xbf16>
    %55 = vector.extract_strided_slice %3 {offsets = [0, 16], sizes = [8, 8], strides = [1, 1]} : vector<8x64xbf16> to vector<8x8xbf16>
    %56 = vector.extract_strided_slice %3 {offsets = [0, 48], sizes = [8, 8], strides = [1, 1]} : vector<8x64xbf16> to vector<8x8xbf16>
    %cst_20 = arith.constant dense<0.000000e+00> : vector<8x8xf32>
    %57 = tpu.matmul %54, %55, %cst_20 {dimension_numbers = #tpu.dot_dimension_numbers<[1], [1], [0], [0], [0, 0, 1, 0], [], []>} : vector<8x8xbf16>, vector<8x8xbf16>, vector<8x8xf32> -> vector<8x8xf32>
    %cst_21 = arith.constant 0.353553385 : f32
    %58 = vector.broadcast %cst_21 : f32 to vector<8x8xf32>
    %59 = arith.mulf %57, %58 : vector<8x8xf32>
    %cst_22 = arith.constant -1.000000e+10 : f32
    %60 = vector.shape_cast %7 : vector<1x8xi1> to vector<1x8xi1>
    %61 = vector.broadcast %60 : vector<1x8xi1> to vector<8x8xi1>
    %62 = vector.broadcast %cst_22 : f32 to vector<8x8xf32>
    %63 = arith.select %61, %59, %62 : vector<8x8xi1>, vector<8x8xf32>
    %cst_23 = arith.constant dense<0xFF800000> : vector<8xf32>
    %64 = vector.multi_reduction <maximumf>, %63, %cst_23 [1] : vector<8x8xf32> to vector<8xf32>
    %65 = vector.shape_cast %64 : vector<8xf32> to vector<8x1xf32>
    %66 = vector.broadcast %65 : vector<8x1xf32> to vector<8x8xf32>
    %67 = arith.subf %63, %66 : vector<8x8xf32>
    %68 = math.exp %67 : vector<8x8xf32>
    %cst_24 = arith.constant dense<0.000000e+00> : vector<8xf32>
    %69 = vector.multi_reduction <add>, %68, %cst_24 [1] : vector<8x8xf32> to vector<8xf32>
    %70 = vector.shape_cast %69 : vector<8xf32> to vector<8x1xf32>
    %71 = tpu.reciprocal %70 {approx = true} : vector<8x1xf32> -> vector<8x1xf32>
    %72 = arith.truncf %68 : vector<8x8xf32> to vector<8x8xbf16>
    %cst_25 = arith.constant dense<0.000000e+00> : vector<8x8xf32>
    %73 = tpu.matmul %72, %56, %cst_25 {dimension_numbers = #tpu.dot_dimension_numbers<[1], [0], [0], [1], [0, 0, 1, 1], [], []>} : vector<8x8xbf16>, vector<8x8xbf16>, vector<8x8xf32> -> vector<8x8xf32>
    %74 = vector.broadcast %71 : vector<8x1xf32> to vector<8x8xf32>
    %75 = arith.mulf %73, %74 : vector<8x8xf32>
    %76 = arith.truncf %75 : vector<8x8xf32> to vector<8x8xbf16>
    %77 = vector.extract_strided_slice %1 {offsets = [0, 24], sizes = [8, 8], strides = [1, 1]} : vector<8x32xbf16> to vector<8x8xbf16>
    %78 = vector.extract_strided_slice %3 {offsets = [0, 24], sizes = [8, 8], strides = [1, 1]} : vector<8x64xbf16> to vector<8x8xbf16>
    %79 = vector.extract_strided_slice %3 {offsets = [0, 56], sizes = [8, 8], strides = [1, 1]} : vector<8x64xbf16> to vector<8x8xbf16>
    %cst_26 = arith.constant dense<0.000000e+00> : vector<8x8xf32>
    %80 = tpu.matmul %77, %78, %cst_26 {dimension_numbers = #tpu.dot_dimension_numbers<[1], [1], [0], [0], [0, 0, 1, 0], [], []>} : vector<8x8xbf16>, vector<8x8xbf16>, vector<8x8xf32> -> vector<8x8xf32>
    %cst_27 = arith.constant 0.353553385 : f32
    %81 = vector.broadcast %cst_27 : f32 to vector<8x8xf32>
    %82 = arith.mulf %80, %81 : vector<8x8xf32>
    %cst_28 = arith.constant -1.000000e+10 : f32
    %83 = vector.shape_cast %7 : vector<1x8xi1> to vector<1x8xi1>
    %84 = vector.broadcast %83 : vector<1x8xi1> to vector<8x8xi1>
    %85 = vector.broadcast %cst_28 : f32 to vector<8x8xf32>
    %86 = arith.select %84, %82, %85 : vector<8x8xi1>, vector<8x8xf32>
    %cst_29 = arith.constant dense<0xFF800000> : vector<8xf32>
    %87 = vector.multi_reduction <maximumf>, %86, %cst_29 [1] : vector<8x8xf32> to vector<8xf32>
    %88 = vector.shape_cast %87 : vector<8xf32> to vector<8x1xf32>
    %89 = vector.broadcast %88 : vector<8x1xf32> to vector<8x8xf32>
    %90 = arith.subf %86, %89 : vector<8x8xf32>
    %91 = math.exp %90 : vector<8x8xf32>
    %cst_30 = arith.constant dense<0.000000e+00> : vector<8xf32>
    %92 = vector.multi_reduction <add>, %91, %cst_30 [1] : vector<8x8xf32> to vector<8xf32>
    %93 = vector.shape_cast %92 : vector<8xf32> to vector<8x1xf32>
    %94 = tpu.reciprocal %93 {approx = true} : vector<8x1xf32> -> vector<8x1xf32>
    %95 = arith.truncf %91 : vector<8x8xf32> to vector<8x8xbf16>
    %cst_31 = arith.constant dense<0.000000e+00> : vector<8x8xf32>
    %96 = tpu.matmul %95, %79, %cst_31 {dimension_numbers = #tpu.dot_dimension_numbers<[1], [0], [0], [1], [0, 0, 1, 1], [], []>} : vector<8x8xbf16>, vector<8x8xbf16>, vector<8x8xf32> -> vector<8x8xf32>
    %97 = vector.broadcast %94 : vector<8x1xf32> to vector<8x8xf32>
    %98 = arith.mulf %96, %97 : vector<8x8xf32>
    %99 = arith.truncf %98 : vector<8x8xf32> to vector<8x8xbf16>
    %100 = tpu.concatenate %30, %53, %76, %99 in 1 : vector<8x8xbf16>, vector<8x8xbf16>, vector<8x8xbf16>, vector<8x8xbf16> -> vector<8x32xbf16>
    %c0_32 = arith.constant 0 : index
    %c0_33 = arith.constant 0 : index
    %c0_34 = arith.constant 0 : index
    %101 = vector.load %arg5[%c0_32, %c0_33, %c0_34] : memref<1x8x32xbf16, #tpu.memory_space<vmem>>, vector<1x8x32xbf16>
    %102 = vector.shape_cast %101 : vector<1x8x32xbf16> to vector<8x32xbf16>
    %103 = vector.shape_cast %100 : vector<8x32xbf16> to vector<1x8x32xbf16>
    tpu.vector_store %arg5[%c0_32, %c0_33, %c0_34], %103 {strides = array<i32>} : memref<1x8x32xbf16, #tpu.memory_space<vmem>>, vector<1x8x32xbf16>,
    return
  }
  func.func @transform_0(%arg0: i32, %arg1: i32) -> (i32, i32, i32) {
    %c0_i32 = arith.constant 0 : i32
    %c0_i32_0 = arith.constant 0 : i32
    return %arg0, %arg1, %c0_i32 : i32, i32, i32
  }
  func.func @transform_1(%arg0: i32, %arg1: i32) -> (i32, i32, i32) {
    %c0_i32 = arith.constant 0 : i32
    %c0_i32_0 = arith.constant 0 : i32
    %c0_i32_1 = arith.constant 0 : i32
    return %arg0, %c0_i32, %c0_i32_0 : i32, i32, i32
  }
  func.func @transform_2(%arg0: i32, %arg1: i32) -> (i32, i32, i32) {
    %c0_i32 = arith.constant 0 : i32
    %c0_i32_0 = arith.constant 0 : i32
    %c0_i32_1 = arith.constant 0 : i32
    return %arg0, %c0_i32, %c0_i32_0 : i32, i32, i32
  }
  func.func @transform_3(%arg0: i32, %arg1: i32) -> (i32, i32, i32) {
    %c0_i32 = arith.constant 0 : i32
    %c0_i32_0 = arith.constant 0 : i32
    return %arg0, %arg1, %c0_i32 : i32, i32, i32
  }
}

module attributes {stable_mosaic.version = 11 : i64} {
  func.func @_linear_acc_kernel(%arg0: i32, %arg1: i32, %arg2: i32, %arg3: memref<16x32xbf16, #tpu.memory_space<vmem>>, %arg4: memref<32x64xbf16, #tpu.memory_space<vmem>>, %arg5: memref<1x64xf32, #tpu.memory_space<vmem>>, %arg6: memref<16x64xbf16, #tpu.memory_space<vmem>>, %arg7: memref<16x64xf32, #tpu.memory_space<vmem>>) attributes {dimension_semantics = [#tpu.dimension_semantics<parallel>, #tpu.dimension_semantics<parallel>, #tpu.dimension_semantics<arbitrary>], iteration_bounds = array<i64: 1, 1, 1>, scalar_prefetch = 0 : i64, scratch_operands = 1 : i64, tpu.core_type = #tpu.core_type<tc>, window_params = [{transform_indices = @transform_0, window_bounds = array<i64: 16, 32>}, {transform_indices = @transform_1, window_bounds = array<i64: 32, 64>}, {transform_indices = @transform_2, window_bounds = array<i64: 1, 64>}, {transform_indices = @transform_3, window_bounds = array<i64: 16, 64>}]} {
    %c0_i32 = arith.constant 0 : i32
    %0 = arith.cmpi eq, %arg2, %c0_i32 : i32
    %1 = arith.extui %0 : i1 to i32
    %c0_i32_0 = arith.constant 0 : i32
    %2 = arith.cmpi ne, %1, %c0_i32_0 : i32
    scf.if %2 {
      %c0_10 = arith.constant 0 : index
      %c0_11 = arith.constant 0 : index
      %12 = vector.load %arg5[%c0_10, %c0_11] : memref<1x64xf32, #tpu.memory_space<vmem>>, vector<1x64xf32>
      %13 = vector.shape_cast %12 : vector<1x64xf32> to vector<1x64xf32>
      %14 = vector.broadcast %13 : vector<1x64xf32> to vector<16x64xf32>
      %c0_12 = arith.constant 0 : index
      %c0_13 = arith.constant 0 : index
      %15 = vector.load %arg7[%c0_12, %c0_13] : memref<16x64xf32, #tpu.memory_space<vmem>>, vector<16x64xf32>
      tpu.vector_store %arg7[%c0_12, %c0_13], %14 {strides = array<i32>} : memref<16x64xf32, #tpu.memory_space<vmem>>, vector<16x64xf32>,
    } else {
    }
    %c0 = arith.constant 0 : index
    %c0_1 = arith.constant 0 : index
    %3 = vector.load %arg7[%c0, %c0_1] : memref<16x64xf32, #tpu.memory_space<vmem>>, vector<16x64xf32>
    %c0_2 = arith.constant 0 : index
    %c0_3 = arith.constant 0 : index
    %4 = vector.load %arg3[%c0_2, %c0_3] : memref<16x32xbf16, #tpu.memory_space<vmem>>, vector<16x32xbf16>
    %c0_4 = arith.constant 0 : index
    %c0_5 = arith.constant 0 : index
    %5 = vector.load %arg4[%c0_4, %c0_5] : memref<32x64xbf16, #tpu.memory_space<vmem>>, vector<32x64xbf16>
    %cst = arith.constant dense<0.000000e+00> : vector<16x64xf32>
    %6 = tpu.matmul %4, %5, %cst {dimension_numbers = #tpu.dot_dimension_numbers<[1], [0], [0], [1], [0, 0, 1, 1], [], []>} : vector<16x32xbf16>, vector<32x64xbf16>, vector<16x64xf32> -> vector<16x64xf32>
    %7 = arith.addf %3, %6 : vector<16x64xf32>
    %c0_6 = arith.constant 0 : index
    %c0_7 = arith.constant 0 : index
    %8 = vector.load %arg7[%c0_6, %c0_7] : memref<16x64xf32, #tpu.memory_space<vmem>>, vector<16x64xf32>
    tpu.vector_store %arg7[%c0_6, %c0_7], %7 {strides = array<i32>} : memref<16x64xf32, #tpu.memory_space<vmem>>, vector<16x64xf32>,
    %c0_i32_8 = arith.constant 0 : i32
    %9 = arith.cmpi eq, %arg2, %c0_i32_8 : i32
    %10 = arith.extui %9 : i1 to i32
    %c0_i32_9 = arith.constant 0 : i32
    %11 = arith.cmpi ne, %10, %c0_i32_9 : i32
    scf.if %11 {
      %c0_10 = arith.constant 0 : index
      %c0_11 = arith.constant 0 : index
      %12 = vector.load %arg7[%c0_10, %c0_11] : memref<16x64xf32, #tpu.memory_space<vmem>>, vector<16x64xf32>
      %13 = arith.truncf %12 : vector<16x64xf32> to vector<16x64xbf16>
      %c0_12 = arith.constant 0 : index
      %c0_13 = arith.constant 0 : index
      %14 = vector.load %arg6[%c0_12, %c0_13] : memref<16x64xbf16, #tpu.memory_space<vmem>>, vector<16x64xbf16>
      tpu.vector_store %arg6[%c0_12, %c0_13], %13 {strides = array<i32>} : memref<16x64xbf16, #tpu.memory_space<vmem>>, vector<16x64xbf16>,
    } else {
    }
    return
  }
  func.func @transform_0(%arg0: i32, %arg1: i32, %arg2: i32) -> (i32, i32) {
    %c0_i32 = arith.constant 0 : i32
    return %arg0, %arg2 : i32, i32
  }
  func.func @transform_1(%arg0: i32, %arg1: i32, %arg2: i32) -> (i32, i32) {
    %c0_i32 = arith.constant 0 : i32
    return %arg2, %arg1 : i32, i32
  }
  func.func @transform_2(%arg0: i32, %arg1: i32, %arg2: i32) -> (i32, i32) {
    %c0_i32 = arith.constant 0 : i32
    %c0_i32_0 = arith.constant 0 : i32
    return %c0_i32, %arg1 : i32, i32
  }
  func.func @transform_3(%arg0: i32, %arg1: i32, %arg2: i32) -> (i32, i32) {
    %c0_i32 = arith.constant 0 : i32
    return %arg0, %arg1 : i32, i32
  }
}

module attributes {stable_mosaic.version = 11 : i64} {
  func.func @_linear_ln_kernel(%arg0: i32, %arg1: i32, %arg2: memref<16x64xbf16, #tpu.memory_space<vmem>>, %arg3: memref<64x32xbf16, #tpu.memory_space<vmem>>, %arg4: memref<1x32xf32, #tpu.memory_space<vmem>>, %arg5: memref<16x32xbf16, #tpu.memory_space<vmem>>, %arg6: memref<1x32xf32, #tpu.memory_space<vmem>>, %arg7: memref<1x32xf32, #tpu.memory_space<vmem>>, %arg8: memref<16x32xbf16, #tpu.memory_space<vmem>>, %arg9: memref<16x32xf32, #tpu.memory_space<vmem>>) attributes {dimension_semantics = [#tpu.dimension_semantics<parallel>, #tpu.dimension_semantics<arbitrary>], iteration_bounds = array<i64: 1, 1>, scalar_prefetch = 0 : i64, scratch_operands = 1 : i64, tpu.core_type = #tpu.core_type<tc>, window_params = [{transform_indices = @transform_0, window_bounds = array<i64: 16, 64>}, {transform_indices = @transform_1, window_bounds = array<i64: 64, 32>}, {pipeline_mode = #tpu.pipeline_mode<synchronous>, transform_indices = @transform_2, window_bounds = array<i64: 1, 32>}, {transform_indices = @transform_3, window_bounds = array<i64: 16, 32>}, {pipeline_mode = #tpu.pipeline_mode<synchronous>, transform_indices = @transform_4, window_bounds = array<i64: 1, 32>}, {pipeline_mode = #tpu.pipeline_mode<synchronous>, transform_indices = @transform_5, window_bounds = array<i64: 1, 32>}, {transform_indices = @transform_6, window_bounds = array<i64: 16, 32>}]} {
    %c0_i32 = arith.constant 0 : i32
    %0 = arith.cmpi eq, %arg1, %c0_i32 : i32
    %1 = arith.extui %0 : i1 to i32
    %c0_i32_0 = arith.constant 0 : i32
    %2 = arith.cmpi ne, %1, %c0_i32_0 : i32
    scf.if %2 {
      %c0_10 = arith.constant 0 : index
      %c0_11 = arith.constant 0 : index
      %12 = vector.load %arg4[%c0_10, %c0_11] : memref<1x32xf32, #tpu.memory_space<vmem>>, vector<1x32xf32>
      %13 = vector.shape_cast %12 : vector<1x32xf32> to vector<1x32xf32>
      %14 = vector.broadcast %13 : vector<1x32xf32> to vector<16x32xf32>
      %c0_12 = arith.constant 0 : index
      %c0_13 = arith.constant 0 : index
      %15 = vector.load %arg9[%c0_12, %c0_13] : memref<16x32xf32, #tpu.memory_space<vmem>>, vector<16x32xf32>
      tpu.vector_store %arg9[%c0_12, %c0_13], %14 {strides = array<i32>} : memref<16x32xf32, #tpu.memory_space<vmem>>, vector<16x32xf32>,
    } else {
    }
    %c0 = arith.constant 0 : index
    %c0_1 = arith.constant 0 : index
    %3 = vector.load %arg9[%c0, %c0_1] : memref<16x32xf32, #tpu.memory_space<vmem>>, vector<16x32xf32>
    %c0_2 = arith.constant 0 : index
    %c0_3 = arith.constant 0 : index
    %4 = vector.load %arg2[%c0_2, %c0_3] : memref<16x64xbf16, #tpu.memory_space<vmem>>, vector<16x64xbf16>
    %c0_4 = arith.constant 0 : index
    %c0_5 = arith.constant 0 : index
    %5 = vector.load %arg3[%c0_4, %c0_5] : memref<64x32xbf16, #tpu.memory_space<vmem>>, vector<64x32xbf16>
    %cst = arith.constant dense<0.000000e+00> : vector<16x32xf32>
    %6 = tpu.matmul %4, %5, %cst {dimension_numbers = #tpu.dot_dimension_numbers<[1], [0], [0], [1], [0, 0, 1, 1], [], []>} : vector<16x64xbf16>, vector<64x32xbf16>, vector<16x32xf32> -> vector<16x32xf32>
    %7 = arith.addf %3, %6 : vector<16x32xf32>
    %c0_6 = arith.constant 0 : index
    %c0_7 = arith.constant 0 : index
    %8 = vector.load %arg9[%c0_6, %c0_7] : memref<16x32xf32, #tpu.memory_space<vmem>>, vector<16x32xf32>
    tpu.vector_store %arg9[%c0_6, %c0_7], %7 {strides = array<i32>} : memref<16x32xf32, #tpu.memory_space<vmem>>, vector<16x32xf32>,
    %c0_i32_8 = arith.constant 0 : i32
    %9 = arith.cmpi eq, %arg1, %c0_i32_8 : i32
    %10 = arith.extui %9 : i1 to i32
    %c0_i32_9 = arith.constant 0 : i32
    %11 = arith.cmpi ne, %10, %c0_i32_9 : i32
    scf.if %11 {
      %c0_10 = arith.constant 0 : index
      %c0_11 = arith.constant 0 : index
      %12 = vector.load %arg9[%c0_10, %c0_11] : memref<16x32xf32, #tpu.memory_space<vmem>>, vector<16x32xf32>
      %c0_12 = arith.constant 0 : index
      %c0_13 = arith.constant 0 : index
      %13 = vector.load %arg5[%c0_12, %c0_13] : memref<16x32xbf16, #tpu.memory_space<vmem>>, vector<16x32xbf16>
      %14 = arith.extf %13 : vector<16x32xbf16> to vector<16x32xf32>
      %15 = arith.addf %12, %14 : vector<16x32xf32>
      %cst_14 = arith.constant dense<0.000000e+00> : vector<16xf32>
      %16 = vector.multi_reduction <add>, %15, %cst_14 [1] : vector<16x32xf32> to vector<16xf32>
      %17 = vector.shape_cast %16 : vector<16xf32> to vector<16x1xf32>
      %cst_15 = arith.constant 3.200000e+01 : f32
      %18 = vector.broadcast %cst_15 : f32 to vector<16x1xf32>
      %19 = arith.divf %17, %18 : vector<16x1xf32>
      %20 = vector.broadcast %19 : vector<16x1xf32> to vector<16x32xf32>
      %21 = arith.subf %15, %20 : vector<16x32xf32>
      %22 = arith.mulf %21, %21 : vector<16x32xf32>
      %cst_16 = arith.constant dense<0.000000e+00> : vector<16xf32>
      %23 = vector.multi_reduction <add>, %22, %cst_16 [1] : vector<16x32xf32> to vector<16xf32>
      %24 = vector.shape_cast %23 : vector<16xf32> to vector<16x1xf32>
      %cst_17 = arith.constant 3.200000e+01 : f32
      %25 = vector.broadcast %cst_17 : f32 to vector<16x1xf32>
      %26 = arith.divf %24, %25 : vector<16x1xf32>
      %27 = vector.broadcast %19 : vector<16x1xf32> to vector<16x32xf32>
      %28 = arith.subf %15, %27 : vector<16x32xf32>
      %cst_18 = arith.constant 9.99999974E-6 : f32
      %29 = vector.broadcast %cst_18 : f32 to vector<16x1xf32>
      %30 = arith.addf %26, %29 : vector<16x1xf32>
      %31 = math.rsqrt %30 : vector<16x1xf32>
      %32 = vector.broadcast %31 : vector<16x1xf32> to vector<16x32xf32>
      %33 = arith.mulf %28, %32 : vector<16x32xf32>
      %c0_19 = arith.constant 0 : index
      %c0_20 = arith.constant 0 : index
      %34 = vector.load %arg6[%c0_19, %c0_20] : memref<1x32xf32, #tpu.memory_space<vmem>>, vector<1x32xf32>
      %35 = vector.broadcast %34 : vector<1x32xf32> to vector<16x32xf32>
      %36 = arith.mulf %33, %35 : vector<16x32xf32>
      %c0_21 = arith.constant 0 : index
      %c0_22 = arith.constant 0 : index
      %37 = vector.load %arg7[%c0_21, %c0_22] : memref<1x32xf32, #tpu.memory_space<vmem>>, vector<1x32xf32>
      %38 = vector.broadcast %37 : vector<1x32xf32> to vector<16x32xf32>
      %39 = arith.addf %36, %38 : vector<16x32xf32>
      %40 = arith.truncf %39 : vector<16x32xf32> to vector<16x32xbf16>
      %c0_23 = arith.constant 0 : index
      %c0_24 = arith.constant 0 : index
      %41 = vector.load %arg8[%c0_23, %c0_24] : memref<16x32xbf16, #tpu.memory_space<vmem>>, vector<16x32xbf16>
      tpu.vector_store %arg8[%c0_23, %c0_24], %40 {strides = array<i32>} : memref<16x32xbf16, #tpu.memory_space<vmem>>, vector<16x32xbf16>,
    } else {
    }
    return
  }
  func.func @transform_0(%arg0: i32, %arg1: i32) -> (i32, i32) {
    %c0_i32 = arith.constant 0 : i32
    return %arg0, %arg1 : i32, i32
  }
  func.func @transform_1(%arg0: i32, %arg1: i32) -> (i32, i32) {
    %c0_i32 = arith.constant 0 : i32
    %c0_i32_0 = arith.constant 0 : i32
    return %arg1, %c0_i32 : i32, i32
  }
  func.func @transform_2(%arg0: i32, %arg1: i32) -> (i32, i32) {
    %c0_i32 = arith.constant 0 : i32
    %c0_i32_0 = arith.constant 0 : i32
    %c0_i32_1 = arith.constant 0 : i32
    return %c0_i32, %c0_i32_0 : i32, i32
  }
  func.func @transform_3(%arg0: i32, %arg1: i32) -> (i32, i32) {
    %c0_i32 = arith.constant 0 : i32
    %c0_i32_0 = arith.constant 0 : i32
    return %arg0, %c0_i32 : i32, i32
  }
  func.func @transform_4(%arg0: i32, %arg1: i32) -> (i32, i32) {
    %c0_i32 = arith.constant 0 : i32
    %c0_i32_0 = arith.constant 0 : i32
    %c0_i32_1 = arith.constant 0 : i32
    return %c0_i32, %c0_i32_0 : i32, i32
  }
  func.func @transform_5(%arg0: i32, %arg1: i32) -> (i32, i32) {
    %c0_i32 = arith.constant 0 : i32
    %c0_i32_0 = arith.constant 0 : i32
    %c0_i32_1 = arith.constant 0 : i32
    return %c0_i32, %c0_i32_0 : i32, i32
  }
  func.func @transform_6(%arg0: i32, %arg1: i32) -> (i32, i32) {
    %c0_i32 = arith.constant 0 : i32
    %c0_i32_0 = arith.constant 0 : i32
    return %arg0, %c0_i32 : i32, i32
  }
}

module attributes {stable_mosaic.version = 11 : i64} {
  func.func @_attention_kernel(%arg0: i32, %arg1: i32, %arg2: memref<1x8x32xbf16, #tpu.memory_space<vmem>>, %arg3: memref<1x8x64xbf16, #tpu.memory_space<vmem>>, %arg4: memref<1x1x8xf32, #tpu.memory_space<vmem>>, %arg5: memref<1x8x32xbf16, #tpu.memory_space<vmem>>) attributes {dimension_semantics = [#tpu.dimension_semantics<parallel>, #tpu.dimension_semantics<parallel>], iteration_bounds = array<i64: 2, 1>, scalar_prefetch = 0 : i64, scratch_operands = 0 : i64, tpu.core_type = #tpu.core_type<tc>, window_params = [{transform_indices = @transform_0, window_bounds = array<i64: 1, 8, 32>}, {transform_indices = @transform_1, window_bounds = array<i64: 1, 8, 64>}, {transform_indices = @transform_2, window_bounds = array<i64: 1, 1, 8>}, {transform_indices = @transform_3, window_bounds = array<i64: 1, 8, 32>}]} {
    %c0 = arith.constant 0 : index
    %c0_0 = arith.constant 0 : index
    %c0_1 = arith.constant 0 : index
    %0 = vector.load %arg2[%c0, %c0_0, %c0_1] : memref<1x8x32xbf16, #tpu.memory_space<vmem>>, vector<1x8x32xbf16>
    %1 = vector.shape_cast %0 : vector<1x8x32xbf16> to vector<8x32xbf16>
    %c0_2 = arith.constant 0 : index
    %c0_3 = arith.constant 0 : index
    %c0_4 = arith.constant 0 : index
    %2 = vector.load %arg3[%c0_2, %c0_3, %c0_4] : memref<1x8x64xbf16, #tpu.memory_space<vmem>>, vector<1x8x64xbf16>
    %3 = vector.shape_cast %2 : vector<1x8x64xbf16> to vector<8x64xbf16>
    %c0_5 = arith.constant 0 : index
    %c0_6 = arith.constant 0 : index
    %c0_7 = arith.constant 0 : index
    %4 = vector.load %arg4[%c0_5, %c0_6, %c0_7] : memref<1x1x8xf32, #tpu.memory_space<vmem>>, vector<1x1x8xf32>
    %5 = vector.shape_cast %4 : vector<1x1x8xf32> to vector<1x8xf32>
    %cst = arith.constant 0.000000e+00 : f32
    %6 = vector.broadcast %cst : f32 to vector<1x8xf32>
    %7 = arith.cmpf ogt, %5, %6 : vector<1x8xf32>
    %8 = tpu.iota {dimensions = array<i32: 0>} : vector<8x8xi32>
    %c8_i32 = arith.constant 8 : i32
    %9 = arith.muli %arg1, %c8_i32 : i32
    %10 = vector.broadcast %9 : i32 to vector<8x8xi32>
    %11 = arith.addi %8, %10 : vector<8x8xi32>
    %12 = tpu.iota {dimensions = array<i32: 1>} : vector<8x8xi32>
    %13 = arith.cmpi sle, %12, %11 : vector<8x8xi32>
    %14 = vector.broadcast %7 : vector<1x8xi1> to vector<8x8xi1>
    %15 = arith.andi %14, %13 : vector<8x8xi1>
    %16 = vector.extract_strided_slice %1 {offsets = [0, 0], sizes = [8, 8], strides = [1, 1]} : vector<8x32xbf16> to vector<8x8xbf16>
    %17 = vector.extract_strided_slice %3 {offsets = [0, 0], sizes = [8, 8], strides = [1, 1]} : vector<8x64xbf16> to vector<8x8xbf16>
    %18 = vector.extract_strided_slice %3 {offsets = [0, 32], sizes = [8, 8], strides = [1, 1]} : vector<8x64xbf16> to vector<8x8xbf16>
    %cst_8 = arith.constant dense<0.000000e+00> : vector<8x8xf32>
    %19 = tpu.matmul %16, %17, %cst_8 {dimension_numbers = #tpu.dot_dimension_numbers<[1], [1], [0], [0], [0, 0, 1, 0], [], []>} : vector<8x8xbf16>, vector<8x8xbf16>, vector<8x8xf32> -> vector<8x8xf32>
    %cst_9 = arith.constant 0.353553385 : f32
    %20 = vector.broadcast %cst_9 : f32 to vector<8x8xf32>
    %21 = arith.mulf %19, %20 : vector<8x8xf32>
    %cst_10 = arith.constant -1.000000e+10 : f32
    %22 = vector.broadcast %cst_10 : f32 to vector<8x8xf32>
    %23 = arith.select %15, %21, %22 : vector<8x8xi1>, vector<8x8xf32>
    %cst_11 = arith.constant dense<0xFF800000> : vector<8xf32>
    %24 = vector.multi_reduction <maximumf>, %23, %cst_11 [1] : vector<8x8xf32> to vector<8xf32>
    %25 = vector.shape_cast %24 : vector<8xf32> to vector<8x1xf32>
    %26 = vector.broadcast %25 : vector<8x1xf32> to vector<8x8xf32>
    %27 = arith.subf %23, %26 : vector<8x8xf32>
    %28 = math.exp %27 : vector<8x8xf32>
    %cst_12 = arith.constant dense<0.000000e+00> : vector<8xf32>
    %29 = vector.multi_reduction <add>, %28, %cst_12 [1] : vector<8x8xf32> to vector<8xf32>
    %30 = vector.shape_cast %29 : vector<8xf32> to vector<8x1xf32>
    %31 = tpu.reciprocal %30 {approx = true} : vector<8x1xf32> -> vector<8x1xf32>
    %32 = arith.truncf %28 : vector<8x8xf32> to vector<8x8xbf16>
    %cst_13 = arith.constant dense<0.000000e+00> : vector<8x8xf32>
    %33 = tpu.matmul %32, %18, %cst_13 {dimension_numbers = #tpu.dot_dimension_numbers<[1], [0], [0], [1], [0, 0, 1, 1], [], []>} : vector<8x8xbf16>, vector<8x8xbf16>, vector<8x8xf32> -> vector<8x8xf32>
    %34 = vector.broadcast %31 : vector<8x1xf32> to vector<8x8xf32>
    %35 = arith.mulf %33, %34 : vector<8x8xf32>
    %36 = arith.truncf %35 : vector<8x8xf32> to vector<8x8xbf16>
    %37 = vector.extract_strided_slice %1 {offsets = [0, 8], sizes = [8, 8], strides = [1, 1]} : vector<8x32xbf16> to vector<8x8xbf16>
    %38 = vector.extract_strided_slice %3 {offsets = [0, 8], sizes = [8, 8], strides = [1, 1]} : vector<8x64xbf16> to vector<8x8xbf16>
    %39 = vector.extract_strided_slice %3 {offsets = [0, 40], sizes = [8, 8], strides = [1, 1]} : vector<8x64xbf16> to vector<8x8xbf16>
    %cst_14 = arith.constant dense<0.000000e+00> : vector<8x8xf32>
    %40 = tpu.matmul %37, %38, %cst_14 {dimension_numbers = #tpu.dot_dimension_numbers<[1], [1], [0], [0], [0, 0, 1, 0], [], []>} : vector<8x8xbf16>, vector<8x8xbf16>, vector<8x8xf32> -> vector<8x8xf32>
    %cst_15 = arith.constant 0.353553385 : f32
    %41 = vector.broadcast %cst_15 : f32 to vector<8x8xf32>
    %42 = arith.mulf %40, %41 : vector<8x8xf32>
    %cst_16 = arith.constant -1.000000e+10 : f32
    %43 = vector.broadcast %cst_16 : f32 to vector<8x8xf32>
    %44 = arith.select %15, %42, %43 : vector<8x8xi1>, vector<8x8xf32>
    %cst_17 = arith.constant dense<0xFF800000> : vector<8xf32>
    %45 = vector.multi_reduction <maximumf>, %44, %cst_17 [1] : vector<8x8xf32> to vector<8xf32>
    %46 = vector.shape_cast %45 : vector<8xf32> to vector<8x1xf32>
    %47 = vector.broadcast %46 : vector<8x1xf32> to vector<8x8xf32>
    %48 = arith.subf %44, %47 : vector<8x8xf32>
    %49 = math.exp %48 : vector<8x8xf32>
    %cst_18 = arith.constant dense<0.000000e+00> : vector<8xf32>
    %50 = vector.multi_reduction <add>, %49, %cst_18 [1] : vector<8x8xf32> to vector<8xf32>
    %51 = vector.shape_cast %50 : vector<8xf32> to vector<8x1xf32>
    %52 = tpu.reciprocal %51 {approx = true} : vector<8x1xf32> -> vector<8x1xf32>
    %53 = arith.truncf %49 : vector<8x8xf32> to vector<8x8xbf16>
    %cst_19 = arith.constant dense<0.000000e+00> : vector<8x8xf32>
    %54 = tpu.matmul %53, %39, %cst_19 {dimension_numbers = #tpu.dot_dimension_numbers<[1], [0], [0], [1], [0, 0, 1, 1], [], []>} : vector<8x8xbf16>, vector<8x8xbf16>, vector<8x8xf32> -> vector<8x8xf32>
    %55 = vector.broadcast %52 : vector<8x1xf32> to vector<8x8xf32>
    %56 = arith.mulf %54, %55 : vector<8x8xf32>
    %57 = arith.truncf %56 : vector<8x8xf32> to vector<8x8xbf16>
    %58 = vector.extract_strided_slice %1 {offsets = [0, 16], sizes = [8, 8], strides = [1, 1]} : vector<8x32xbf16> to vector<8x8xbf16>
    %59 = vector.extract_strided_slice %3 {offsets = [0, 16], sizes = [8, 8], strides = [1, 1]} : vector<8x64xbf16> to vector<8x8xbf16>
    %60 = vector.extract_strided_slice %3 {offsets = [0, 48], sizes = [8, 8], strides = [1, 1]} : vector<8x64xbf16> to vector<8x8xbf16>
    %cst_20 = arith.constant dense<0.000000e+00> : vector<8x8xf32>
    %61 = tpu.matmul %58, %59, %cst_20 {dimension_numbers = #tpu.dot_dimension_numbers<[1], [1], [0], [0], [0, 0, 1, 0], [], []>} : vector<8x8xbf16>, vector<8x8xbf16>, vector<8x8xf32> -> vector<8x8xf32>
    %cst_21 = arith.constant 0.353553385 : f32
    %62 = vector.broadcast %cst_21 : f32 to vector<8x8xf32>
    %63 = arith.mulf %61, %62 : vector<8x8xf32>
    %cst_22 = arith.constant -1.000000e+10 : f32
    %64 = vector.broadcast %cst_22 : f32 to vector<8x8xf32>
    %65 = arith.select %15, %63, %64 : vector<8x8xi1>, vector<8x8xf32>
    %cst_23 = arith.constant dense<0xFF800000> : vector<8xf32>
    %66 = vector.multi_reduction <maximumf>, %65, %cst_23 [1] : vector<8x8xf32> to vector<8xf32>
    %67 = vector.shape_cast %66 : vector<8xf32> to vector<8x1xf32>
    %68 = vector.broadcast %67 : vector<8x1xf32> to vector<8x8xf32>
    %69 = arith.subf %65, %68 : vector<8x8xf32>
    %70 = math.exp %69 : vector<8x8xf32>
    %cst_24 = arith.constant dense<0.000000e+00> : vector<8xf32>
    %71 = vector.multi_reduction <add>, %70, %cst_24 [1] : vector<8x8xf32> to vector<8xf32>
    %72 = vector.shape_cast %71 : vector<8xf32> to vector<8x1xf32>
    %73 = tpu.reciprocal %72 {approx = true} : vector<8x1xf32> -> vector<8x1xf32>
    %74 = arith.truncf %70 : vector<8x8xf32> to vector<8x8xbf16>
    %cst_25 = arith.constant dense<0.000000e+00> : vector<8x8xf32>
    %75 = tpu.matmul %74, %60, %cst_25 {dimension_numbers = #tpu.dot_dimension_numbers<[1], [0], [0], [1], [0, 0, 1, 1], [], []>} : vector<8x8xbf16>, vector<8x8xbf16>, vector<8x8xf32> -> vector<8x8xf32>
    %76 = vector.broadcast %73 : vector<8x1xf32> to vector<8x8xf32>
    %77 = arith.mulf %75, %76 : vector<8x8xf32>
    %78 = arith.truncf %77 : vector<8x8xf32> to vector<8x8xbf16>
    %79 = vector.extract_strided_slice %1 {offsets = [0, 24], sizes = [8, 8], strides = [1, 1]} : vector<8x32xbf16> to vector<8x8xbf16>
    %80 = vector.extract_strided_slice %3 {offsets = [0, 24], sizes = [8, 8], strides = [1, 1]} : vector<8x64xbf16> to vector<8x8xbf16>
    %81 = vector.extract_strided_slice %3 {offsets = [0, 56], sizes = [8, 8], strides = [1, 1]} : vector<8x64xbf16> to vector<8x8xbf16>
    %cst_26 = arith.constant dense<0.000000e+00> : vector<8x8xf32>
    %82 = tpu.matmul %79, %80, %cst_26 {dimension_numbers = #tpu.dot_dimension_numbers<[1], [1], [0], [0], [0, 0, 1, 0], [], []>} : vector<8x8xbf16>, vector<8x8xbf16>, vector<8x8xf32> -> vector<8x8xf32>
    %cst_27 = arith.constant 0.353553385 : f32
    %83 = vector.broadcast %cst_27 : f32 to vector<8x8xf32>
    %84 = arith.mulf %82, %83 : vector<8x8xf32>
    %cst_28 = arith.constant -1.000000e+10 : f32
    %85 = vector.broadcast %cst_28 : f32 to vector<8x8xf32>
    %86 = arith.select %15, %84, %85 : vector<8x8xi1>, vector<8x8xf32>
    %cst_29 = arith.constant dense<0xFF800000> : vector<8xf32>
    %87 = vector.multi_reduction <maximumf>, %86, %cst_29 [1] : vector<8x8xf32> to vector<8xf32>
    %88 = vector.shape_cast %87 : vector<8xf32> to vector<8x1xf32>
    %89 = vector.broadcast %88 : vector<8x1xf32> to vector<8x8xf32>
    %90 = arith.subf %86, %89 : vector<8x8xf32>
    %91 = math.exp %90 : vector<8x8xf32>
    %cst_30 = arith.constant dense<0.000000e+00> : vector<8xf32>
    %92 = vector.multi_reduction <add>, %91, %cst_30 [1] : vector<8x8xf32> to vector<8xf32>
    %93 = vector.shape_cast %92 : vector<8xf32> to vector<8x1xf32>
    %94 = tpu.reciprocal %93 {approx = true} : vector<8x1xf32> -> vector<8x1xf32>
    %95 = arith.truncf %91 : vector<8x8xf32> to vector<8x8xbf16>
    %cst_31 = arith.constant dense<0.000000e+00> : vector<8x8xf32>
    %96 = tpu.matmul %95, %81, %cst_31 {dimension_numbers = #tpu.dot_dimension_numbers<[1], [0], [0], [1], [0, 0, 1, 1], [], []>} : vector<8x8xbf16>, vector<8x8xbf16>, vector<8x8xf32> -> vector<8x8xf32>
    %97 = vector.broadcast %94 : vector<8x1xf32> to vector<8x8xf32>
    %98 = arith.mulf %96, %97 : vector<8x8xf32>
    %99 = arith.truncf %98 : vector<8x8xf32> to vector<8x8xbf16>
    %100 = tpu.concatenate %36, %57, %78, %99 in 1 : vector<8x8xbf16>, vector<8x8xbf16>, vector<8x8xbf16>, vector<8x8xbf16> -> vector<8x32xbf16>
    %c0_32 = arith.constant 0 : index
    %c0_33 = arith.constant 0 : index
    %c0_34 = arith.constant 0 : index
    %101 = vector.load %arg5[%c0_32, %c0_33, %c0_34] : memref<1x8x32xbf16, #tpu.memory_space<vmem>>, vector<1x8x32xbf16>
    %102 = vector.shape_cast %101 : vector<1x8x32xbf16> to vector<8x32xbf16>
    %103 = vector.shape_cast %100 : vector<8x32xbf16> to vector<1x8x32xbf16>
    tpu.vector_store %arg5[%c0_32, %c0_33, %c0_34], %103 {strides = array<i32>} : memref<1x8x32xbf16, #tpu.memory_space<vmem>>, vector<1x8x32xbf16>,
    return
  }
  func.func @transform_0(%arg0: i32, %arg1: i32) -> (i32, i32, i32) {
    %c0_i32 = arith.constant 0 : i32
    %c0_i32_0 = arith.constant 0 : i32
    return %arg0, %arg1, %c0_i32 : i32, i32, i32
  }
  func.func @transform_1(%arg0: i32, %arg1: i32) -> (i32, i32, i32) {
    %c0_i32 = arith.constant 0 : i32
    %c0_i32_0 = arith.constant 0 : i32
    %c0_i32_1 = arith.constant 0 : i32
    return %arg0, %c0_i32, %c0_i32_0 : i32, i32, i32
  }
  func.func @transform_2(%arg0: i32, %arg1: i32) -> (i32, i32, i32) {
    %c0_i32 = arith.constant 0 : i32
    %c0_i32_0 = arith.constant 0 : i32
    %c0_i32_1 = arith.constant 0 : i32
    return %arg0, %c0_i32, %c0_i32_0 : i32, i32, i32
  }
  func.func @transform_3(%arg0: i32, %arg1: i32) -> (i32, i32, i32) {
    %c0_i32 = arith.constant 0 : i32
    %c0_i32_0 = arith.constant 0 : i32
    return %arg0, %arg1, %c0_i32 : i32, i32, i32
  }
}

module attributes {stable_mosaic.version = 11 : i64} {
  func.func @_linear_acc_kernel(%arg0: i32, %arg1: i32, %arg2: i32, %arg3: memref<16x32xbf16, #tpu.memory_space<vmem>>, %arg4: memref<32x32xbf16, #tpu.memory_space<vmem>>, %arg5: memref<1x32xf32, #tpu.memory_space<vmem>>, %arg6: memref<16x32xbf16, #tpu.memory_space<vmem>>, %arg7: memref<16x32xf32, #tpu.memory_space<vmem>>) attributes {dimension_semantics = [#tpu.dimension_semantics<parallel>, #tpu.dimension_semantics<parallel>, #tpu.dimension_semantics<arbitrary>], iteration_bounds = array<i64: 1, 1, 1>, scalar_prefetch = 0 : i64, scratch_operands = 1 : i64, tpu.core_type = #tpu.core_type<tc>, window_params = [{transform_indices = @transform_0, window_bounds = array<i64: 16, 32>}, {transform_indices = @transform_1, window_bounds = array<i64: 32, 32>}, {transform_indices = @transform_2, window_bounds = array<i64: 1, 32>}, {transform_indices = @transform_3, window_bounds = array<i64: 16, 32>}]} {
    %c0_i32 = arith.constant 0 : i32
    %0 = arith.cmpi eq, %arg2, %c0_i32 : i32
    %1 = arith.extui %0 : i1 to i32
    %c0_i32_0 = arith.constant 0 : i32
    %2 = arith.cmpi ne, %1, %c0_i32_0 : i32
    scf.if %2 {
      %c0_10 = arith.constant 0 : index
      %c0_11 = arith.constant 0 : index
      %12 = vector.load %arg5[%c0_10, %c0_11] : memref<1x32xf32, #tpu.memory_space<vmem>>, vector<1x32xf32>
      %13 = vector.shape_cast %12 : vector<1x32xf32> to vector<1x32xf32>
      %14 = vector.broadcast %13 : vector<1x32xf32> to vector<16x32xf32>
      %c0_12 = arith.constant 0 : index
      %c0_13 = arith.constant 0 : index
      %15 = vector.load %arg7[%c0_12, %c0_13] : memref<16x32xf32, #tpu.memory_space<vmem>>, vector<16x32xf32>
      tpu.vector_store %arg7[%c0_12, %c0_13], %14 {strides = array<i32>} : memref<16x32xf32, #tpu.memory_space<vmem>>, vector<16x32xf32>,
    } else {
    }
    %c0 = arith.constant 0 : index
    %c0_1 = arith.constant 0 : index
    %3 = vector.load %arg7[%c0, %c0_1] : memref<16x32xf32, #tpu.memory_space<vmem>>, vector<16x32xf32>
    %c0_2 = arith.constant 0 : index
    %c0_3 = arith.constant 0 : index
    %4 = vector.load %arg3[%c0_2, %c0_3] : memref<16x32xbf16, #tpu.memory_space<vmem>>, vector<16x32xbf16>
    %c0_4 = arith.constant 0 : index
    %c0_5 = arith.constant 0 : index
    %5 = vector.load %arg4[%c0_4, %c0_5] : memref<32x32xbf16, #tpu.memory_space<vmem>>, vector<32x32xbf16>
    %cst = arith.constant dense<0.000000e+00> : vector<16x32xf32>
    %6 = tpu.matmul %4, %5, %cst {dimension_numbers = #tpu.dot_dimension_numbers<[1], [0], [0], [1], [0, 0, 1, 1], [], []>} : vector<16x32xbf16>, vector<32x32xbf16>, vector<16x32xf32> -> vector<16x32xf32>
    %7 = arith.addf %3, %6 : vector<16x32xf32>
    %c0_6 = arith.constant 0 : index
    %c0_7 = arith.constant 0 : index
    %8 = vector.load %arg7[%c0_6, %c0_7] : memref<16x32xf32, #tpu.memory_space<vmem>>, vector<16x32xf32>
    tpu.vector_store %arg7[%c0_6, %c0_7], %7 {strides = array<i32>} : memref<16x32xf32, #tpu.memory_space<vmem>>, vector<16x32xf32>,
    %c0_i32_8 = arith.constant 0 : i32
    %9 = arith.cmpi eq, %arg2, %c0_i32_8 : i32
    %10 = arith.extui %9 : i1 to i32
    %c0_i32_9 = arith.constant 0 : i32
    %11 = arith.cmpi ne, %10, %c0_i32_9 : i32
    scf.if %11 {
      %c0_10 = arith.constant 0 : index
      %c0_11 = arith.constant 0 : index
      %12 = vector.load %arg7[%c0_10, %c0_11] : memref<16x32xf32, #tpu.memory_space<vmem>>, vector<16x32xf32>
      %13 = arith.truncf %12 : vector<16x32xf32> to vector<16x32xbf16>
      %c0_12 = arith.constant 0 : index
      %c0_13 = arith.constant 0 : index
      %14 = vector.load %arg6[%c0_12, %c0_13] : memref<16x32xbf16, #tpu.memory_space<vmem>>, vector<16x32xbf16>
      tpu.vector_store %arg6[%c0_12, %c0_13], %13 {strides = array<i32>} : memref<16x32xbf16, #tpu.memory_space<vmem>>, vector<16x32xbf16>,
    } else {
    }
    return
  }
  func.func @transform_0(%arg0: i32, %arg1: i32, %arg2: i32) -> (i32, i32) {
    %c0_i32 = arith.constant 0 : i32
    return %arg0, %arg2 : i32, i32
  }
  func.func @transform_1(%arg0: i32, %arg1: i32, %arg2: i32) -> (i32, i32) {
    %c0_i32 = arith.constant 0 : i32
    return %arg2, %arg1 : i32, i32
  }
  func.func @transform_2(%arg0: i32, %arg1: i32, %arg2: i32) -> (i32, i32) {
    %c0_i32 = arith.constant 0 : i32
    %c0_i32_0 = arith.constant 0 : i32
    return %c0_i32, %arg1 : i32, i32
  }
  func.func @transform_3(%arg0: i32, %arg1: i32, %arg2: i32) -> (i32, i32) {
    %c0_i32 = arith.constant 0 : i32
    return %arg0, %arg1 : i32, i32
  }
}

module attributes {stable_mosaic.version = 11 : i64} {
  func.func @_attention_kernel(%arg0: i32, %arg1: i32, %arg2: memref<1x8x32xbf16, #tpu.memory_space<vmem>>, %arg3: memref<1x8x64xbf16, #tpu.memory_space<vmem>>, %arg4: memref<1x1x8xf32, #tpu.memory_space<vmem>>, %arg5: memref<1x8x32xbf16, #tpu.memory_space<vmem>>, %arg6: memref<1x4x8x8xf32, #tpu.memory_space<vmem>>) attributes {dimension_semantics = [#tpu.dimension_semantics<parallel>, #tpu.dimension_semantics<parallel>], iteration_bounds = array<i64: 2, 1>, scalar_prefetch = 0 : i64, scratch_operands = 0 : i64, tpu.core_type = #tpu.core_type<tc>, window_params = [{transform_indices = @transform_0, window_bounds = array<i64: 1, 8, 32>}, {transform_indices = @transform_1, window_bounds = array<i64: 1, 8, 64>}, {transform_indices = @transform_2, window_bounds = array<i64: 1, 1, 8>}, {transform_indices = @transform_3, window_bounds = array<i64: 1, 8, 32>}, {transform_indices = @transform_4, window_bounds = array<i64: 1, 4, 8, 8>}]} {
    %c0 = arith.constant 0 : index
    %c0_0 = arith.constant 0 : index
    %c0_1 = arith.constant 0 : index
    %0 = vector.load %arg2[%c0, %c0_0, %c0_1] : memref<1x8x32xbf16, #tpu.memory_space<vmem>>, vector<1x8x32xbf16>
    %1 = vector.shape_cast %0 : vector<1x8x32xbf16> to vector<8x32xbf16>
    %c0_2 = arith.constant 0 : index
    %c0_3 = arith.constant 0 : index
    %c0_4 = arith.constant 0 : index
    %2 = vector.load %arg3[%c0_2, %c0_3, %c0_4] : memref<1x8x64xbf16, #tpu.memory_space<vmem>>, vector<1x8x64xbf16>
    %3 = vector.shape_cast %2 : vector<1x8x64xbf16> to vector<8x64xbf16>
    %c0_5 = arith.constant 0 : index
    %c0_6 = arith.constant 0 : index
    %c0_7 = arith.constant 0 : index
    %4 = vector.load %arg4[%c0_5, %c0_6, %c0_7] : memref<1x1x8xf32, #tpu.memory_space<vmem>>, vector<1x1x8xf32>
    %5 = vector.shape_cast %4 : vector<1x1x8xf32> to vector<1x8xf32>
    %cst = arith.constant 0.000000e+00 : f32
    %6 = vector.broadcast %cst : f32 to vector<1x8xf32>
    %7 = arith.cmpf ogt, %5, %6 : vector<1x8xf32>
    %8 = vector.extract_strided_slice %1 {offsets = [0, 0], sizes = [8, 8], strides = [1, 1]} : vector<8x32xbf16> to vector<8x8xbf16>
    %9 = vector.extract_strided_slice %3 {offsets = [0, 0], sizes = [8, 8], strides = [1, 1]} : vector<8x64xbf16> to vector<8x8xbf16>
    %10 = vector.extract_strided_slice %3 {offsets = [0, 32], sizes = [8, 8], strides = [1, 1]} : vector<8x64xbf16> to vector<8x8xbf16>
    %cst_8 = arith.constant dense<0.000000e+00> : vector<8x8xf32>
    %11 = tpu.matmul %8, %9, %cst_8 {dimension_numbers = #tpu.dot_dimension_numbers<[1], [1], [0], [0], [0, 0, 1, 0], [], []>} : vector<8x8xbf16>, vector<8x8xbf16>, vector<8x8xf32> -> vector<8x8xf32>
    %cst_9 = arith.constant 0.353553385 : f32
    %12 = vector.broadcast %cst_9 : f32 to vector<8x8xf32>
    %13 = arith.mulf %11, %12 : vector<8x8xf32>
    %cst_10 = arith.constant -1.000000e+10 : f32
    %14 = vector.shape_cast %7 : vector<1x8xi1> to vector<1x8xi1>
    %15 = vector.broadcast %14 : vector<1x8xi1> to vector<8x8xi1>
    %16 = vector.broadcast %cst_10 : f32 to vector<8x8xf32>
    %17 = arith.select %15, %13, %16 : vector<8x8xi1>, vector<8x8xf32>
    %cst_11 = arith.constant dense<0xFF800000> : vector<8xf32>
    %18 = vector.multi_reduction <maximumf>, %17, %cst_11 [1] : vector<8x8xf32> to vector<8xf32>
    %19 = vector.shape_cast %18 : vector<8xf32> to vector<8x1xf32>
    %20 = vector.broadcast %19 : vector<8x1xf32> to vector<8x8xf32>
    %21 = arith.subf %17, %20 : vector<8x8xf32>
    %22 = math.exp %21 : vector<8x8xf32>
    %cst_12 = arith.constant dense<0.000000e+00> : vector<8xf32>
    %23 = vector.multi_reduction <add>, %22, %cst_12 [1] : vector<8x8xf32> to vector<8xf32>
    %24 = vector.shape_cast %23 : vector<8xf32> to vector<8x1xf32>
    %25 = tpu.reciprocal %24 {approx = true} : vector<8x1xf32> -> vector<8x1xf32>
    %26 = arith.truncf %22 : vector<8x8xf32> to vector<8x8xbf16>
    %cst_13 = arith.constant dense<0.000000e+00> : vector<8x8xf32>
    %27 = tpu.matmul %26, %10, %cst_13 {dimension_numbers = #tpu.dot_dimension_numbers<[1], [0], [0], [1], [0, 0, 1, 1], [], []>} : vector<8x8xbf16>, vector<8x8xbf16>, vector<8x8xf32> -> vector<8x8xf32>
    %28 = vector.broadcast %25 : vector<8x1xf32> to vector<8x8xf32>
    %29 = arith.mulf %27, %28 : vector<8x8xf32>
    %30 = arith.truncf %29 : vector<8x8xf32> to vector<8x8xbf16>
    %31 = vector.broadcast %25 : vector<8x1xf32> to vector<8x8xf32>
    %32 = arith.mulf %22, %31 : vector<8x8xf32>
    %c0_14 = arith.constant 0 : index
    %c0_15 = arith.constant 0 : index
    %c0_16 = arith.constant 0 : index
    %c0_17 = arith.constant 0 : index
    %33 = vector.load %arg6[%c0_14, %c0_15, %c0_16, %c0_17] : memref<1x4x8x8xf32, #tpu.memory_space<vmem>>, vector<1x1x8x8xf32>
    %34 = vector.shape_cast %33 : vector<1x1x8x8xf32> to vector<8x8xf32>
    %35 = vector.shape_cast %32 : vector<8x8xf32> to vector<1x1x8x8xf32>
    tpu.vector_store %arg6[%c0_14, %c0_15, %c0_16, %c0_17], %35 {strides = array<i32>} : memref<1x4x8x8xf32, #tpu.memory_space<vmem>>, vector<1x1x8x8xf32>,
    %36 = vector.extract_strided_slice %1 {offsets = [0, 8], sizes = [8, 8], strides = [1, 1]} : vector<8x32xbf16> to vector<8x8xbf16>
    %37 = vector.extract_strided_slice %3 {offsets = [0, 8], sizes = [8, 8], strides = [1, 1]} : vector<8x64xbf16> to vector<8x8xbf16>
    %38 = vector.extract_strided_slice %3 {offsets = [0, 40], sizes = [8, 8], strides = [1, 1]} : vector<8x64xbf16> to vector<8x8xbf16>
    %cst_18 = arith.constant dense<0.000000e+00> : vector<8x8xf32>
    %39 = tpu.matmul %36, %37, %cst_18 {dimension_numbers = #tpu.dot_dimension_numbers<[1], [1], [0], [0], [0, 0, 1, 0], [], []>} : vector<8x8xbf16>, vector<8x8xbf16>, vector<8x8xf32> -> vector<8x8xf32>
    %cst_19 = arith.constant 0.353553385 : f32
    %40 = vector.broadcast %cst_19 : f32 to vector<8x8xf32>
    %41 = arith.mulf %39, %40 : vector<8x8xf32>
    %cst_20 = arith.constant -1.000000e+10 : f32
    %42 = vector.shape_cast %7 : vector<1x8xi1> to vector<1x8xi1>
    %43 = vector.broadcast %42 : vector<1x8xi1> to vector<8x8xi1>
    %44 = vector.broadcast %cst_20 : f32 to vector<8x8xf32>
    %45 = arith.select %43, %41, %44 : vector<8x8xi1>, vector<8x8xf32>
    %cst_21 = arith.constant dense<0xFF800000> : vector<8xf32>
    %46 = vector.multi_reduction <maximumf>, %45, %cst_21 [1] : vector<8x8xf32> to vector<8xf32>
    %47 = vector.shape_cast %46 : vector<8xf32> to vector<8x1xf32>
    %48 = vector.broadcast %47 : vector<8x1xf32> to vector<8x8xf32>
    %49 = arith.subf %45, %48 : vector<8x8xf32>
    %50 = math.exp %49 : vector<8x8xf32>
    %cst_22 = arith.constant dense<0.000000e+00> : vector<8xf32>
    %51 = vector.multi_reduction <add>, %50, %cst_22 [1] : vector<8x8xf32> to vector<8xf32>
    %52 = vector.shape_cast %51 : vector<8xf32> to vector<8x1xf32>
    %53 = tpu.reciprocal %52 {approx = true} : vector<8x1xf32> -> vector<8x1xf32>
    %54 = arith.truncf %50 : vector<8x8xf32> to vector<8x8xbf16>
    %cst_23 = arith.constant dense<0.000000e+00> : vector<8x8xf32>
    %55 = tpu.matmul %54, %38, %cst_23 {dimension_numbers = #tpu.dot_dimension_numbers<[1], [0], [0], [1], [0, 0, 1, 1], [], []>} : vector<8x8xbf16>, vector<8x8xbf16>, vector<8x8xf32> -> vector<8x8xf32>
    %56 = vector.broadcast %53 : vector<8x1xf32> to vector<8x8xf32>
    %57 = arith.mulf %55, %56 : vector<8x8xf32>
    %58 = arith.truncf %57 : vector<8x8xf32> to vector<8x8xbf16>
    %59 = vector.broadcast %53 : vector<8x1xf32> to vector<8x8xf32>
    %60 = arith.mulf %50, %59 : vector<8x8xf32>
    %c0_24 = arith.constant 0 : index
    %c1 = arith.constant 1 : index
    %c0_25 = arith.constant 0 : index
    %c0_26 = arith.constant 0 : index
    %61 = vector.load %arg6[%c0_24, %c1, %c0_25, %c0_26] : memref<1x4x8x8xf32, #tpu.memory_space<vmem>>, vector<1x1x8x8xf32>
    %62 = vector.shape_cast %61 : vector<1x1x8x8xf32> to vector<8x8xf32>
    %63 = vector.shape_cast %60 : vector<8x8xf32> to vector<1x1x8x8xf32>
    tpu.vector_store %arg6[%c0_24, %c1, %c0_25, %c0_26], %63 {strides = array<i32>} : memref<1x4x8x8xf32, #tpu.memory_space<vmem>>, vector<1x1x8x8xf32>,
    %64 = vector.extract_strided_slice %1 {offsets = [0, 16], sizes = [8, 8], strides = [1, 1]} : vector<8x32xbf16> to vector<8x8xbf16>
    %65 = vector.extract_strided_slice %3 {offsets = [0, 16], sizes = [8, 8], strides = [1, 1]} : vector<8x64xbf16> to vector<8x8xbf16>
    %66 = vector.extract_strided_slice %3 {offsets = [0, 48], sizes = [8, 8], strides = [1, 1]} : vector<8x64xbf16> to vector<8x8xbf16>
    %cst_27 = arith.constant dense<0.000000e+00> : vector<8x8xf32>
    %67 = tpu.matmul %64, %65, %cst_27 {dimension_numbers = #tpu.dot_dimension_numbers<[1], [1], [0], [0], [0, 0, 1, 0], [], []>} : vector<8x8xbf16>, vector<8x8xbf16>, vector<8x8xf32> -> vector<8x8xf32>
    %cst_28 = arith.constant 0.353553385 : f32
    %68 = vector.broadcast %cst_28 : f32 to vector<8x8xf32>
    %69 = arith.mulf %67, %68 : vector<8x8xf32>
    %cst_29 = arith.constant -1.000000e+10 : f32
    %70 = vector.shape_cast %7 : vector<1x8xi1> to vector<1x8xi1>
    %71 = vector.broadcast %70 : vector<1x8xi1> to vector<8x8xi1>
    %72 = vector.broadcast %cst_29 : f32 to vector<8x8xf32>
    %73 = arith.select %71, %69, %72 : vector<8x8xi1>, vector<8x8xf32>
    %cst_30 = arith.constant dense<0xFF800000> : vector<8xf32>
    %74 = vector.multi_reduction <maximumf>, %73, %cst_30 [1] : vector<8x8xf32> to vector<8xf32>
    %75 = vector.shape_cast %74 : vector<8xf32> to vector<8x1xf32>
    %76 = vector.broadcast %75 : vector<8x1xf32> to vector<8x8xf32>
    %77 = arith.subf %73, %76 : vector<8x8xf32>
    %78 = math.exp %77 : vector<8x8xf32>
    %cst_31 = arith.constant dense<0.000000e+00> : vector<8xf32>
    %79 = vector.multi_reduction <add>, %78, %cst_31 [1] : vector<8x8xf32> to vector<8xf32>
    %80 = vector.shape_cast %79 : vector<8xf32> to vector<8x1xf32>
    %81 = tpu.reciprocal %80 {approx = true} : vector<8x1xf32> -> vector<8x1xf32>
    %82 = arith.truncf %78 : vector<8x8xf32> to vector<8x8xbf16>
    %cst_32 = arith.constant dense<0.000000e+00> : vector<8x8xf32>
    %83 = tpu.matmul %82, %66, %cst_32 {dimension_numbers = #tpu.dot_dimension_numbers<[1], [0], [0], [1], [0, 0, 1, 1], [], []>} : vector<8x8xbf16>, vector<8x8xbf16>, vector<8x8xf32> -> vector<8x8xf32>
    %84 = vector.broadcast %81 : vector<8x1xf32> to vector<8x8xf32>
    %85 = arith.mulf %83, %84 : vector<8x8xf32>
    %86 = arith.truncf %85 : vector<8x8xf32> to vector<8x8xbf16>
    %87 = vector.broadcast %81 : vector<8x1xf32> to vector<8x8xf32>
    %88 = arith.mulf %78, %87 : vector<8x8xf32>
    %c0_33 = arith.constant 0 : index
    %c2 = arith.constant 2 : index
    %c0_34 = arith.constant 0 : index
    %c0_35 = arith.constant 0 : index
    %89 = vector.load %arg6[%c0_33, %c2, %c0_34, %c0_35] : memref<1x4x8x8xf32, #tpu.memory_space<vmem>>, vector<1x1x8x8xf32>
    %90 = vector.shape_cast %89 : vector<1x1x8x8xf32> to vector<8x8xf32>
    %91 = vector.shape_cast %88 : vector<8x8xf32> to vector<1x1x8x8xf32>
    tpu.vector_store %arg6[%c0_33, %c2, %c0_34, %c0_35], %91 {strides = array<i32>} : memref<1x4x8x8xf32, #tpu.memory_space<vmem>>, vector<1x1x8x8xf32>,
    %92 = vector.extract_strided_slice %1 {offsets = [0, 24], sizes = [8, 8], strides = [1, 1]} : vector<8x32xbf16> to vector<8x8xbf16>
    %93 = vector.extract_strided_slice %3 {offsets = [0, 24], sizes = [8, 8], strides = [1, 1]} : vector<8x64xbf16> to vector<8x8xbf16>
    %94 = vector.extract_strided_slice %3 {offsets = [0, 56], sizes = [8, 8], strides = [1, 1]} : vector<8x64xbf16> to vector<8x8xbf16>
    %cst_36 = arith.constant dense<0.000000e+00> : vector<8x8xf32>
    %95 = tpu.matmul %92, %93, %cst_36 {dimension_numbers = #tpu.dot_dimension_numbers<[1], [1], [0], [0], [0, 0, 1, 0], [], []>} : vector<8x8xbf16>, vector<8x8xbf16>, vector<8x8xf32> -> vector<8x8xf32>
    %cst_37 = arith.constant 0.353553385 : f32
    %96 = vector.broadcast %cst_37 : f32 to vector<8x8xf32>
    %97 = arith.mulf %95, %96 : vector<8x8xf32>
    %cst_38 = arith.constant -1.000000e+10 : f32
    %98 = vector.shape_cast %7 : vector<1x8xi1> to vector<1x8xi1>
    %99 = vector.broadcast %98 : vector<1x8xi1> to vector<8x8xi1>
    %100 = vector.broadcast %cst_38 : f32 to vector<8x8xf32>
    %101 = arith.select %99, %97, %100 : vector<8x8xi1>, vector<8x8xf32>
    %cst_39 = arith.constant dense<0xFF800000> : vector<8xf32>
    %102 = vector.multi_reduction <maximumf>, %101, %cst_39 [1] : vector<8x8xf32> to vector<8xf32>
    %103 = vector.shape_cast %102 : vector<8xf32> to vector<8x1xf32>
    %104 = vector.broadcast %103 : vector<8x1xf32> to vector<8x8xf32>
    %105 = arith.subf %101, %104 : vector<8x8xf32>
    %106 = math.exp %105 : vector<8x8xf32>
    %cst_40 = arith.constant dense<0.000000e+00> : vector<8xf32>
    %107 = vector.multi_reduction <add>, %106, %cst_40 [1] : vector<8x8xf32> to vector<8xf32>
    %108 = vector.shape_cast %107 : vector<8xf32> to vector<8x1xf32>
    %109 = tpu.reciprocal %108 {approx = true} : vector<8x1xf32> -> vector<8x1xf32>
    %110 = arith.truncf %106 : vector<8x8xf32> to vector<8x8xbf16>
    %cst_41 = arith.constant dense<0.000000e+00> : vector<8x8xf32>
    %111 = tpu.matmul %110, %94, %cst_41 {dimension_numbers = #tpu.dot_dimension_numbers<[1], [0], [0], [1], [0, 0, 1, 1], [], []>} : vector<8x8xbf16>, vector<8x8xbf16>, vector<8x8xf32> -> vector<8x8xf32>
    %112 = vector.broadcast %109 : vector<8x1xf32> to vector<8x8xf32>
    %113 = arith.mulf %111, %112 : vector<8x8xf32>
    %114 = arith.truncf %113 : vector<8x8xf32> to vector<8x8xbf16>
    %115 = vector.broadcast %109 : vector<8x1xf32> to vector<8x8xf32>
    %116 = arith.mulf %106, %115 : vector<8x8xf32>
    %c0_42 = arith.constant 0 : index
    %c3 = arith.constant 3 : index
    %c0_43 = arith.constant 0 : index
    %c0_44 = arith.constant 0 : index
    %117 = vector.load %arg6[%c0_42, %c3, %c0_43, %c0_44] : memref<1x4x8x8xf32, #tpu.memory_space<vmem>>, vector<1x1x8x8xf32>
    %118 = vector.shape_cast %117 : vector<1x1x8x8xf32> to vector<8x8xf32>
    %119 = vector.shape_cast %116 : vector<8x8xf32> to vector<1x1x8x8xf32>
    tpu.vector_store %arg6[%c0_42, %c3, %c0_43, %c0_44], %119 {strides = array<i32>} : memref<1x4x8x8xf32, #tpu.memory_space<vmem>>, vector<1x1x8x8xf32>,
    %120 = tpu.concatenate %30, %58, %86, %114 in 1 : vector<8x8xbf16>, vector<8x8xbf16>, vector<8x8xbf16>, vector<8x8xbf16> -> vector<8x32xbf16>
    %c0_45 = arith.constant 0 : index
    %c0_46 = arith.constant 0 : index
    %c0_47 = arith.constant 0 : index
    %121 = vector.load %arg5[%c0_45, %c0_46, %c0_47] : memref<1x8x32xbf16, #tpu.memory_space<vmem>>, vector<1x8x32xbf16>
    %122 = vector.shape_cast %121 : vector<1x8x32xbf16> to vector<8x32xbf16>
    %123 = vector.shape_cast %120 : vector<8x32xbf16> to vector<1x8x32xbf16>
    tpu.vector_store %arg5[%c0_45, %c0_46, %c0_47], %123 {strides = array<i32>} : memref<1x8x32xbf16, #tpu.memory_space<vmem>>, vector<1x8x32xbf16>,
    return
  }
  func.func @transform_0(%arg0: i32, %arg1: i32) -> (i32, i32, i32) {
    %c0_i32 = arith.constant 0 : i32
    %c0_i32_0 = arith.constant 0 : i32
    return %arg0, %arg1, %c0_i32 : i32, i32, i32
  }
  func.func @transform_1(%arg0: i32, %arg1: i32) -> (i32, i32, i32) {
    %c0_i32 = arith.constant 0 : i32
    %c0_i32_0 = arith.constant 0 : i32
    %c0_i32_1 = arith.constant 0 : i32
    return %arg0, %c0_i32, %c0_i32_0 : i32, i32, i32
  }
  func.func @transform_2(%arg0: i32, %arg1: i32) -> (i32, i32, i32) {
    %c0_i32 = arith.constant 0 : i32
    %c0_i32_0 = arith.constant 0 : i32
    %c0_i32_1 = arith.constant 0 : i32
    return %arg0, %c0_i32, %c0_i32_0 : i32, i32, i32
  }
  func.func @transform_3(%arg0: i32, %arg1: i32) -> (i32, i32, i32) {
    %c0_i32 = arith.constant 0 : i32
    %c0_i32_0 = arith.constant 0 : i32
    return %arg0, %arg1, %c0_i32 : i32, i32, i32
  }
  func.func @transform_4(%arg0: i32, %arg1: i32) -> (i32, i32, i32, i32) {
    %c0_i32 = arith.constant 0 : i32
    %c0_i32_0 = arith.constant 0 : i32
    %c0_i32_1 = arith.constant 0 : i32
    return %arg0, %c0_i32, %arg1, %c0_i32_0 : i32, i32, i32, i32
  }
}

module attributes {stable_mosaic.version = 11 : i64} {
  func.func @_linear_f32_kernel(%arg0: i32, %arg1: i32, %arg2: i32, %arg3: memref<16x32xbf16, #tpu.memory_space<vmem>>, %arg4: memref<32x32xbf16, #tpu.memory_space<vmem>>, %arg5: memref<1x32xf32, #tpu.memory_space<vmem>>, %arg6: memref<16x32xf32, #tpu.memory_space<vmem>>) attributes {dimension_semantics = [#tpu.dimension_semantics<parallel>, #tpu.dimension_semantics<parallel>, #tpu.dimension_semantics<arbitrary>], iteration_bounds = array<i64: 1, 1, 1>, scalar_prefetch = 0 : i64, scratch_operands = 0 : i64, tpu.core_type = #tpu.core_type<tc>, window_params = [{transform_indices = @transform_0, window_bounds = array<i64: 16, 32>}, {transform_indices = @transform_1, window_bounds = array<i64: 32, 32>}, {transform_indices = @transform_2, window_bounds = array<i64: 1, 32>}, {transform_indices = @transform_3, window_bounds = array<i64: 16, 32>}]} {
    %c0_i32 = arith.constant 0 : i32
    %0 = arith.cmpi eq, %arg2, %c0_i32 : i32
    %1 = arith.extui %0 : i1 to i32
    %c0_i32_0 = arith.constant 0 : i32
    %2 = arith.cmpi ne, %1, %c0_i32_0 : i32
    scf.if %2 {
      %c0_8 = arith.constant 0 : index
      %c0_9 = arith.constant 0 : index
      %9 = vector.load %arg5[%c0_8, %c0_9] : memref<1x32xf32, #tpu.memory_space<vmem>>, vector<1x32xf32>
      %10 = vector.shape_cast %9 : vector<1x32xf32> to vector<1x32xf32>
      %11 = vector.broadcast %10 : vector<1x32xf32> to vector<16x32xf32>
      %c0_10 = arith.constant 0 : index
      %c0_11 = arith.constant 0 : index
      %12 = vector.load %arg6[%c0_10, %c0_11] : memref<16x32xf32, #tpu.memory_space<vmem>>, vector<16x32xf32>
      tpu.vector_store %arg6[%c0_10, %c0_11], %11 {strides = array<i32>} : memref<16x32xf32, #tpu.memory_space<vmem>>, vector<16x32xf32>,
    } else {
    }
    %c0 = arith.constant 0 : index
    %c0_1 = arith.constant 0 : index
    %3 = vector.load %arg6[%c0, %c0_1] : memref<16x32xf32, #tpu.memory_space<vmem>>, vector<16x32xf32>
    %c0_2 = arith.constant 0 : index
    %c0_3 = arith.constant 0 : index
    %4 = vector.load %arg3[%c0_2, %c0_3] : memref<16x32xbf16, #tpu.memory_space<vmem>>, vector<16x32xbf16>
    %c0_4 = arith.constant 0 : index
    %c0_5 = arith.constant 0 : index
    %5 = vector.load %arg4[%c0_4, %c0_5] : memref<32x32xbf16, #tpu.memory_space<vmem>>, vector<32x32xbf16>
    %cst = arith.constant dense<0.000000e+00> : vector<16x32xf32>
    %6 = tpu.matmul %4, %5, %cst {dimension_numbers = #tpu.dot_dimension_numbers<[1], [0], [0], [1], [0, 0, 1, 1], [], []>} : vector<16x32xbf16>, vector<32x32xbf16>, vector<16x32xf32> -> vector<16x32xf32>
    %7 = arith.addf %3, %6 : vector<16x32xf32>
    %c0_6 = arith.constant 0 : index
    %c0_7 = arith.constant 0 : index
    %8 = vector.load %arg6[%c0_6, %c0_7] : memref<16x32xf32, #tpu.memory_space<vmem>>, vector<16x32xf32>
    tpu.vector_store %arg6[%c0_6, %c0_7], %7 {strides = array<i32>} : memref<16x32xf32, #tpu.memory_space<vmem>>, vector<16x32xf32>,
    return
  }
  func.func @transform_0(%arg0: i32, %arg1: i32, %arg2: i32) -> (i32, i32) {
    %c0_i32 = arith.constant 0 : i32
    return %arg0, %arg2 : i32, i32
  }
  func.func @transform_1(%arg0: i32, %arg1: i32, %arg2: i32) -> (i32, i32) {
    %c0_i32 = arith.constant 0 : i32
    return %arg2, %arg1 : i32, i32
  }
  func.func @transform_2(%arg0: i32, %arg1: i32, %arg2: i32) -> (i32, i32) {
    %c0_i32 = arith.constant 0 : i32
    %c0_i32_0 = arith.constant 0 : i32
    return %c0_i32, %arg1 : i32, i32
  }
  func.func @transform_3(%arg0: i32, %arg1: i32, %arg2: i32) -> (i32, i32) {
    %c0_i32 = arith.constant 0 : i32
    return %arg0, %arg1 : i32, i32
  }
}

</mosaic_0001>

<bundles_post_ra>
// kernel: transformer_forward.31
= control target key start
LH: loop header
LB: loop body
LE: loop exit
PB: predicated region body
PF: predicated region fallthrough
CT: control target
= control target key end

     0   :  { %11 = vsyncpa [#allocation4], 0  ;;  %s642_s0 = inlined_call_operand.hbm [shape: bf16[16,32], index: 0, kind: input, shape index: {}]   ;;  %s643_s1 = inlined_call_operand.hbm [shape: bf16[32,32], index: 1, kind: input, shape index: {}]   ;;  %s644_s2 = inlined_call_operand.hbm [shape: f32[1,32], index: 2, kind: input, shape index: {}]   ;;  %s645_s3 = inlined_call_operand.hbm [shape: bf16[16,32], index: 3, kind: input, shape index: {}]   ;;  %s646_s4 = inlined_call_operand.hbm [shape: f32[1,32], index: 4, kind: input, shape index: {}]   ;;  %s647_s5 = inlined_call_operand.hbm [shape: f32[1,32], index: 5, kind: input, shape index: {}]   ;;  %s648_s6 = inlined_call_operand.hbm [shape: bf16[16,32], index: 6, kind: output, shape index: {}]  }
   0x1   :  { %12 = vsyncpa [#allocation7], 0 }
   0x2   :  { %13 = vsyncpa [#allocation10], 0 }
   0x3   :  { %14 = vsyncpa [#allocation13], 0 }
   0x4   :  { %15 = vsyncpa [#allocation5], 0  ;;  %s484_s21 = smov [#allocation6]   ;;  %s485_s23 = smov [#allocation9]  }
   0x5   :  { %s33_s22 = sshll.u32 %s484_s21, 4  ;;  %s55_s24 = sshll.u32 %s485_s23, 4  ;;  %s34_s22 = int_to_ptr.vmem [resolvable:$true] %s33_s22  ;;  %s530_s24 = int_to_ptr.vmem [resolvable:$true] %s55_s24 }
   0x6   :  { %s320_s27 = scalar_lea.hbm %s643_s1, 256 }
   0x7   :  { %p321_p0 = scmp.ne.s32.totalorder %s643_s1, %s320_s27  ;;  %p324_p1 = scmp.lt.u32.totalorder %s320_s27, %s643_s1 }
   0x9   :  { %p326_p2 = pnand %p324_p1, %p321_p0 }
   0xb   :  { %329 = shalt.err (!%p326_p2)
}
   0xc   :  { %s330_s8 = scalar_lea.vmem %s34_s22, 256  ;;  %p335_p4 = scmp.lt.s32.totalorder %s34_s22, %s34_s22 }
   0xd   :  { %p331_p3 = scmp.ne.s32.totalorder %s34_s22, %s330_s8  ;;  %p336_p5 = scmp.lt.s32.totalorder %s330_s8, %s330_s8 }
   0xf   :  { %p337_p6 = por %p336_p5, %p335_p4 }
  0x11   :  { %p338_p7 = pnand %p337_p6, %p331_p3 }
  0x13   :  { %341 = shalt.err (!%p338_p7)
}
  0x14   :  { %s486_s9 = smov 64   ;;  %s487_s10 = smov 4  }
  0x15   :  { %39 = dma.hbm_to_vmem [thread:$0]  %s643_s1, 256, %s34_s22, [#allocation7], %s486_s9, %s486_s9, %s487_s10  }
  0x16   :  { %s342_s15 = scalar_lea.hbm %s645_s3, 128 }
  0x17   :  { %p343_p8 = scmp.ne.s32.totalorder %s645_s3, %s342_s15  ;;  %p346_p9 = scmp.lt.u32.totalorder %s342_s15, %s645_s3 }
  0x19   :  { %p348_p10 = pnand %p346_p9, %p343_p8 }
  0x1b   :  { %351 = shalt.err (!%p348_p10)
}
  0x1c   :  { %s352_s20 = scalar_lea.vmem %s530_s24, 128  ;;  %p357_p12 = scmp.lt.s32.totalorder %s530_s24, %s530_s24 }
  0x1d   :  { %p353_p11 = scmp.ne.s32.totalorder %s530_s24, %s352_s20  ;;  %p358_p13 = scmp.lt.s32.totalorder %s352_s20, %s352_s20 }
  0x1f   :  { %p359_p0 = por %p358_p13, %p357_p12 }
  0x21   :  { %p360_p1 = pnand %p359_p0, %p353_p11 }
  0x23   :  { %363 = shalt.err (!%p360_p1)
}
  0x24   :  { %61 = dma.hbm_to_vmem [thread:$0]  %s645_s3, 128, %s530_s24, [#allocation10], %s486_s9, %s486_s9, %s487_s10  }
  0x25   :  { %s488_s22 = smov [#allocation3]   ;;  %s489_s25 = smov [#allocation8]  }
  0x26   :  { %s21_s23 = sshll.u32 %s488_s22, 4  ;;  %s46_s26 = sshll.u32 %s489_s25, 4  ;;  %s22_s23 = int_to_ptr.vmem [resolvable:$true] %s21_s23  ;;  %s47_s26 = int_to_ptr.vmem [resolvable:$true] %s46_s26 }
  0x27   :  { %s364_s29 = scalar_lea.hbm %s642_s0, 128 }
  0x28   :  { %p365_p2 = scmp.ne.s32.totalorder %s642_s0, %s364_s29  ;;  %p368_p3 = scmp.lt.u32.totalorder %s364_s29, %s642_s0 }
  0x2a   :  { %p370_p4 = pnand %p368_p3, %p365_p2 }
  0x2c   :  { %373 = shalt.err (!%p370_p4)
}
  0x2d   :  { %s374_s3 = scalar_lea.vmem %s22_s23, 128  ;;  %p379_p6 = scmp.lt.s32.totalorder %s22_s23, %s22_s23 }
  0x2e   :  { %p375_p5 = scmp.ne.s32.totalorder %s22_s23, %s374_s3  ;;  %p380_p7 = scmp.lt.s32.totalorder %s374_s3, %s374_s3 }
  0x30   :  { %p381_p8 = por %p380_p7, %p379_p6 }
  0x32   :  { %p382_p9 = pnand %p381_p8, %p375_p5 }
  0x34   :  { %385 = shalt.err (!%p382_p9)
}
  0x35   :  { %27 = dma.hbm_to_vmem [thread:$0]  %s642_s0, 128, %s22_s23, [#allocation4], %s486_s9, %s486_s9, %s487_s10  }
  0x36   :  { %s386_s15 = scalar_lea.hbm %s644_s2, 16 }
  0x37   :  { %p387_p10 = scmp.ne.s32.totalorder %s644_s2, %s386_s15  ;;  %p390_p11 = scmp.lt.u32.totalorder %s386_s15, %s644_s2 }
  0x39   :  { %p392_p12 = pnand %p390_p11, %p387_p10 }
  0x3b   :  { %395 = shalt.err (!%p392_p12)
}
  0x3c   :  { %s396_s20 = scalar_lea.vmem %s47_s26, 16  ;;  %s400_s1 = scalar_lea.vmem %s47_s26, 32 }
  0x3d   :  { %p397_p13 = scmp.ne.s32.totalorder %s47_s26, %s396_s20  ;;  %p401_p0 = scmp.lt.s32.totalorder %s47_s26, %s47_s26 }
  0x3e   :  { %p402_p1 = scmp.lt.s32.totalorder %s400_s1, %s396_s20 }
  0x40   :  { %p403_p2 = por %p402_p1, %p401_p0 }
  0x42   :  { %p404_p3 = pnand %p403_p2, %p397_p13 }
  0x44   :  { %407 = shalt.err (!%p404_p3)
}
  0x45   :  { %49 = dma.hbm_to_vmem [thread:$0]  %s644_s2, 16, %s47_s26, [#allocation7]  }
  0x46   :  { %s490_s22 = smov [#allocation11]   ;;  %s491_s25 = smov [#allocation12]  }
  0x47   :  { %s68_s23 = sshll.u32 %s490_s22, 4  ;;  %s78_s27 = sshll.u32 %s491_s25, 4  ;;  %s69_s23 = int_to_ptr.vmem [resolvable:$true] %s68_s23  ;;  %s79_s27 = int_to_ptr.vmem [resolvable:$true] %s78_s27 }
  0x48   :  { %s408_s30 = scalar_lea.hbm %s646_s4, 16 }
  0x49   :  { %p409_p4 = scmp.ne.s32.totalorder %s646_s4, %s408_s30  ;;  %p412_p5 = scmp.lt.u32.totalorder %s408_s30, %s646_s4 }
  0x4b   :  { %p414_p6 = pnand %p412_p5, %p409_p4 }
  0x4d   :  { %417 = shalt.err (!%p414_p6)
}
  0x4e   :  { %s418_s2 = scalar_lea.vmem %s69_s23, 16  ;;  %s422_s26 = scalar_lea.vmem %s69_s23, 32 }
  0x4f   :  { %p419_p7 = scmp.ne.s32.totalorder %s69_s23, %s418_s2  ;;  %p423_p8 = scmp.lt.s32.totalorder %s69_s23, %s69_s23 }
  0x50   :  { %p424_p9 = scmp.lt.s32.totalorder %s422_s26, %s418_s2 }
  0x52   :  { %p425_p10 = por %p424_p9, %p423_p8 }
  0x54   :  { %p426_p11 = pnand %p425_p10, %p419_p7 }
  0x56   :  { %429 = shalt.err (!%p426_p11)
}
  0x57   :  { %71 = dma.hbm_to_vmem [thread:$0]  %s646_s4, 16, %s69_s23, [#allocation10]  }
  0x58   :  { %s430_s15 = scalar_lea.hbm %s647_s5, 16 }
  0x59   :  { %p431_p12 = scmp.ne.s32.totalorder %s647_s5, %s430_s15  ;;  %p434_p13 = scmp.lt.u32.totalorder %s430_s15, %s647_s5 }
  0x5b   :  { %p436_p0 = pnand %p434_p13, %p431_p12 }
  0x5d   :  { %439 = shalt.err (!%p436_p0)
}
  0x5e   :  { %s440_s20 = scalar_lea.vmem %s79_s27, 16  ;;  %s444_s1 = scalar_lea.vmem %s79_s27, 32 }
  0x5f   :  { %p441_p1 = scmp.ne.s32.totalorder %s79_s27, %s440_s20  ;;  %p445_p2 = scmp.lt.s32.totalorder %s79_s27, %s79_s27 }
  0x60   :  { %p446_p3 = scmp.lt.s32.totalorder %s444_s1, %s440_s20 }
  0x62   :  { %p447_p4 = por %p446_p3, %p445_p2 }
  0x64   :  { %p448_p5 = pnand %p447_p4, %p441_p1 }
  0x66   :  { %451 = shalt.err (!%p448_p5)
}
  0x67   :  { %81 = dma.hbm_to_vmem [thread:$0]  %s647_s5, 16, %s79_s27, [#allocation13]  }
  0x68   :  { %474 = dma.done.wait [#allocation4], 128  }
  0x69   :  { %475 = vsyncadd [#allocation4], 4294967168 }
  0x6a   :  { %476 = dma.done.wait [#allocation7], 272  }
  0x6b   :  { %477 = vsyncadd [#allocation7], 4294967024 }
  0x6c   :  { %478 = dma.done.wait [#allocation10], 144  }
  0x6d   :  { %479 = vsyncadd [#allocation10], 4294967152 }
  0x6e   :  { %480 = dma.done.wait [#allocation13], 16  }
  0x6f   :  { %481 = vsyncadd [#allocation13], 4294967280  ;;  %v492_v0 = vmov 0.0   ;;  %vm493_vm0 = vmmov 0   ;;  %v313_v1 = vld [vmem:[#allocation6] sm:$0xff]   ;;  %v314_v2 = vld [vmem:[#allocation6 + $0x8] sm:$0xff]  }
  0x70   :  { %294 = vmatprep.subr.bf16.mxu0 %v492_v0  ;;  %298 = vmatprep.mubr.msk.bf16.mxu0 %vm493_vm0, %v492_v0  ;;  %vm112_vm1 = vcmask 261120   ;;  %v276_v3 = vld [vmem:[#allocation8] ss:$0 sm:$0xff]  ;;  %v315_v4 = vld [vmem:[#allocation3] sm:$0xff]   ;;  %vm253_vm2 = vcmask 257024   ;;  %s494_s5 = smov [#allocation14]  }
  0x71   :  { %295 = vmatpush3.bf16.msra.mxu0 %v313_v1  ;;  %113 = vst.msk [vmem:[#allocation2] sm:$0xff] %vm112_vm1, %v276_v3  ;;  %114 = vst.msk [vmem:[#allocation2 + $0x8] sm:$0xff] %vm112_vm1, %v276_v3  ;;  %v288_v13 = vld [vmem:[#allocation9] sm:$0xff]   ;;  %v281_v39 = vld [vmem:[#allocation11] ss:$0 sm:$0xff]  ;;  %s261_s21 = sshll.u32 %s494_s5, 4  ;;  %s262_s21 = int_to_ptr.vmem [resolvable:$true] %s261_s21 }
  0x72   :  { %296 = vmatprep.subr.bf16.mxu0 %v492_v0  ;;  %v289_v14 = vunpack.c.l.bf16 %v288_v13  ;;  %v290_v15 = vunpack.c.h.bf16 %v288_v13  ;;  %v282_v41 = vld [vmem:[#allocation12] ss:$0 sm:$0xff]  ;;  %s452_s22 = scalar_lea.vmem %s262_s21, 128  ;;  %p457_p7 = scmp.lt.s32.totalorder %s262_s21, %s262_s21 }
  0x73   :  { %p453_p6 = scmp.ne.s32.totalorder %s262_s21, %s452_s22  ;;  %p458_p8 = scmp.lt.s32.totalorder %s452_s22, %s452_s22 }
  0x75   :  { %297 = vmatpush3.bf16.msra.mxu0 %v314_v2  ;;  %p459_p9 = por %p458_p8, %p457_p7 }
  0x77   :  { %p460_p10 = pnand %p459_p9, %p453_p6 }
  0x78   :  { %299 = vmatmul.mubr.msk.bf16.vlgmr.msra.gmra.mrb[0].mxu0 %vm112_vm1, %v315_v4  ;;  %v115_v5 = vld [vmem:[#allocation2] sm:$0xff]  ;;  %v116_v7 = vld [vmem:[#allocation2 + $0x8] sm:$0xff] }
 0x14b   :  { %v178_v6 = vpop.f32.mrb[0].mxu0 }
 0x14c   :  { %v185_v8 = vadd.f32 %v178_v6, %v115_v5  ;;  %v300_v9 = vpop.f32.mrb[1].mxu0 }
 0x14d   :  { %v181_v10 = vpop.f32.mrb[2].mxu0 }
 0x14e   :  { %187 = vst.msk [vmem:[#allocation2] sm:$0xff] %vm112_vm1, %v185_v8  ;;  %v186_v11 = vadd.f32 %v181_v10, %v116_v7  ;;  %v301_v12 = vpop.f32.mrb[3].mxu0 }
 0x150   :  { %188 = vst.msk [vmem:[#allocation2 + $0x8] sm:$0xff] %vm112_vm1, %v186_v11 }
 0x155   :  { %v192_v16 = vld [vmem:[#allocation2] sm:$0xff] }
 0x156   :  { %v198_v17 = vadd.f32 %v289_v14, %v192_v16 }
 0x157   :  { %v193_v18 = vld [vmem:[#allocation2 + $0x8] sm:$0xff] }
 0x158   :  { %v200_v19 = vsel %vm112_vm1, %v198_v17, 0.0  ;;  %v199_v20 = vadd.f32 %v290_v15, %v193_v18 }
 0x159   :  { %201 = vadd.xlane.f32.xlu0 %v200_v19 }
 0x15a   :  { %v203_v21 = vsel %vm112_vm1, %v199_v20, 0.0 }
 0x15d   :  { %204 = vadd.xlane.f32.xlu0 %v203_v21 }
 0x1e6   :  { %v202_v22 = vpop.xlane.xlu0 %201 }
 0x1e7   :  { %v207_v23 = vmul.f32 0.03125, %v202_v22 }
 0x1e9   :  { %v209_v24 = vsub.f32 %v198_v17, %v207_v23 }
 0x1ea   :  { %v205_v25 = vpop.xlane.xlu0 %204 }
 0x1eb   :  { %v208_v26 = vmul.f32 0.03125, %v205_v25  ;;  %v211_v27 = vmul.f32 %v209_v24, %v209_v24 }
 0x1ed   :  { %v210_v28 = vsub.f32 %v199_v20, %v208_v26  ;;  %v213_v29 = vsel %vm112_vm1, %v211_v27, 0.0 }
 0x1ee   :  { %214 = vadd.xlane.f32.xlu1 %v213_v29 }
 0x1ef   :  { %v212_v30 = vmul.f32 %v210_v28, %v210_v28 }
 0x1f1   :  { %v216_v31 = vsel %vm112_vm1, %v212_v30, 0.0 }
 0x1f2   :  { %217 = vadd.xlane.f32.xlu1 %v216_v31 }
 0x27b   :  { %v215_v32 = vpop.xlane.xlu1 %214 }
 0x27c   :  { %v219_v33 = vmul.f32 0.03125, %v215_v32 }
 0x27e   :  { %v221_v34 = vadd.f32 1e-05, %v219_v33 }
 0x27f   :  { %v218_v35 = vpop.xlane.xlu1 %217 }
 0x280   :  { %316 = vrsqrt.f32 %v221_v34  ;;  %v220_v36 = vmul.f32 0.03125, %v218_v35 }
 0x282   :  { %v222_v37 = vadd.f32 1e-05, %v220_v36 }
 0x284   :  { %318 = vrsqrt.f32 %v222_v37 }
 0x28a   :  { %v317_v38 = vpop.eup %316 }
 0x28b   :  { %v225_v40 = vmul.f32 %v317_v38, %v209_v24 }
 0x28d   :  { %v234_v42 = vmul.f32 %v281_v39, %v225_v40 }
 0x28e   :  { %v319_v43 = vpop.eup %318 }
 0x28f   :  { %v226_v44 = vmul.f32 %v319_v43, %v210_v28  ;;  %v243_v45 = vadd.f32 %v282_v41, %v234_v42 }
 0x291   :  { %v235_v46 = vmul.f32 %v281_v39, %v226_v44  ;;  %v285_v47 = vpack.c.bf16 %v243_v45, %v243_v45 }
 0x293   :  { %v244_v48 = vadd.f32 %v282_v41, %v235_v46  ;;  %254 = vst.msk [vmem:[#allocation14] sm:$0xf] %vm253_vm2, %v285_v47 }
 0x295   :  { %v286_v49 = vpack.c.bf16 %v244_v48, %v244_v48 }
 0x297   :  { %255 = vst.msk [vmem:[#allocation14 + $0x4] sm:$0xf] %vm253_vm2, %v286_v49 }
 0x298   :  { %463 = shalt.err (!%p460_p10)
}
 0x299   :  { %s464_s27 = scalar_lea.hbm %s648_s6, 128 }
 0x29a   :  { %p465_p11 = scmp.ne.s32.totalorder %s648_s6, %s464_s27  ;;  %p468_p12 = scmp.lt.u32.totalorder %s464_s27, %s648_s6 }
 0x29c   :  { %p470_p13 = pnand %p468_p12, %p465_p11 }
 0x29e   :  { %473 = shalt.err (!%p470_p13)
}
 0x29f   :  { %267 = dma.vmem_to_hbm [thread:$0]  %s262_s21, 128, %s648_s6, [#allocation5], %s486_s9, %s486_s9, %s487_s10  }
 0x2a0   :  { %482 = dma.done.wait [#allocation5], 128  }
 0x2a1   :  { %483 = vsyncadd [#allocation5], 4294967168 }
 0x2a2   :  { %271 = vsyncpa [#allocation4], 1 }
 0x2a3   :  { %272 = vsyncpa [#allocation7], 1 }
 0x2a4   :  { %273 = vsyncpa [#allocation10], 1 }
 0x2a5   :  { %274 = vsyncpa [#allocation13], 1 }
 0x2a6   :  { %275 = vsyncpa [#allocation5], 1 }

// kernel: transformer_forward.32
= control target key start
LH: loop header
LB: loop body
LE: loop exit
PB: predicated region body
PF: predicated region fallthrough
CT: control target
= control target key end

     0   :  { %8 = vsyncpa [#allocation4], 0  ;;  %s401_s0 = inlined_call_operand.hbm [shape: bf16[16,32], index: 0, kind: input, shape index: {}]   ;;  %s402_s1 = inlined_call_operand.hbm [shape: bf16[32,64], index: 1, kind: input, shape index: {}]   ;;  %s403_s2 = inlined_call_operand.hbm [shape: f32[1,64], index: 2, kind: input, shape index: {}]   ;;  %s404_s3 = inlined_call_operand.hbm [shape: bf16[16,64], index: 3, kind: output, shape index: {}]  }
   0x1   :  { %9 = vsyncpa [#allocation7], 0 }
   0x2   :  { %10 = vsyncpa [#allocation5], 0  ;;  %s305_s12 = smov [#allocation6]   ;;  %s306_s14 = smov [#allocation3]  }
   0x3   :  { %s28_s13 = sshll.u32 %s305_s12, 4  ;;  %s16_s15 = sshll.u32 %s306_s14, 4  ;;  %s29_s13 = int_to_ptr.vmem [resolvable:$true] %s28_s13  ;;  %s333_s15 = int_to_ptr.vmem [resolvable:$true] %s16_s15 }
   0x4   :  { %s211_s18 = scalar_lea.hbm %s402_s1, 256 }
   0x5   :  { %p212_p0 = scmp.ne.s32.totalorder %s402_s1, %s211_s18  ;;  %p215_p1 = scmp.lt.u32.totalorder %s211_s18, %s402_s1 }
   0x7   :  { %p217_p2 = pnand %p215_p1, %p212_p0 }
   0x9   :  { %220 = shalt.err (!%p217_p2)
}
   0xa   :  { %s221_s23 = scalar_lea.vmem %s29_s13, 256  ;;  %p226_p4 = scmp.lt.s32.totalorder %s29_s13, %s29_s13 }
   0xb   :  { %p222_p3 = scmp.ne.s32.totalorder %s29_s13, %s221_s23  ;;  %p227_p5 = scmp.lt.s32.totalorder %s221_s23, %s221_s23 }
   0xd   :  { %p228_p6 = por %p227_p5, %p226_p4 }
   0xf   :  { %p229_p7 = pnand %p228_p6, %p222_p3 }
  0x11   :  { %232 = shalt.err (!%p229_p7)
}
  0x12   :  { %s307_s24 = smov 64   ;;  %s308_s25 = smov 4  }
  0x13   :  { %34 = dma.hbm_to_vmem [thread:$0]  %s402_s1, 256, %s29_s13, [#allocation7], %s307_s24, %s307_s24, %s308_s25  }
  0x14   :  { %s233_s30 = scalar_lea.hbm %s401_s0, 128 }
  0x15   :  { %p234_p8 = scmp.ne.s32.totalorder %s401_s0, %s233_s30  ;;  %p237_p9 = scmp.lt.u32.totalorder %s233_s30, %s401_s0 }
  0x17   :  { %p239_p10 = pnand %p237_p9, %p234_p8 }
  0x19   :  { %242 = shalt.err (!%p239_p10)
}
  0x1a   :  { %s243_s8 = scalar_lea.vmem %s333_s15, 128  ;;  %p248_p12 = scmp.lt.s32.totalorder %s333_s15, %s333_s15 }
  0x1b   :  { %p244_p11 = scmp.ne.s32.totalorder %s333_s15, %s243_s8  ;;  %p249_p13 = scmp.lt.s32.totalorder %s243_s8, %s243_s8 }
  0x1d   :  { %p250_p0 = por %p249_p13, %p248_p12 }
  0x1f   :  { %p251_p1 = pnand %p250_p0, %p244_p11 }
  0x21   :  { %254 = shalt.err (!%p251_p1)
}
  0x22   :  { %22 = dma.hbm_to_vmem [thread:$0]  %s401_s0, 128, %s333_s15, [#allocation4], %s307_s24, %s307_s24, %s308_s25  }
  0x23   :  { %s309_s10 = smov [#allocation8]   ;;  %s255_s14 = scalar_lea.hbm %s403_s2, 16 }
  0x24   :  { %s41_s11 = sshll.u32 %s309_s10, 4  ;;  %p256_p2 = scmp.ne.s32.totalorder %s403_s2, %s255_s14  ;;  %s42_s11 = int_to_ptr.vmem [resolvable:$true] %s41_s11 }
  0x25   :  { %p259_p3 = scmp.lt.u32.totalorder %s255_s14, %s403_s2 }
  0x27   :  { %p261_p4 = pnand %p259_p3, %p256_p2 }
  0x29   :  { %264 = shalt.err (!%p261_p4)
}
  0x2a   :  { %s265_s20 = scalar_lea.vmem %s42_s11, 16  ;;  %s269_s0 = scalar_lea.vmem %s42_s11, 32 }
  0x2b   :  { %p266_p5 = scmp.ne.s32.totalorder %s42_s11, %s265_s20  ;;  %p270_p6 = scmp.lt.s32.totalorder %s42_s11, %s42_s11 }
  0x2c   :  { %p271_p7 = scmp.lt.s32.totalorder %s269_s0, %s265_s20 }
  0x2e   :  { %p272_p8 = por %p271_p7, %p270_p6 }
  0x30   :  { %p273_p9 = pnand %p272_p8, %p266_p5 }
  0x32   :  { %276 = shalt.err (!%p273_p9)
}
  0x33   :  { %44 = dma.hbm_to_vmem [thread:$0]  %s403_s2, 16, %s42_s11, [#allocation7]  }
  0x34   :  { %299 = dma.done.wait [#allocation4], 128  }
  0x35   :  { %300 = vsyncadd [#allocation4], 4294967168 }
  0x36   :  { %301 = dma.done.wait [#allocation7], 272  }
  0x37   :  { %302 = vsyncadd [#allocation7], 4294967024  ;;  %v310_v0 = vmov 0.0   ;;  %vm311_vm0 = vmmov 0   ;;  %v208_v1 = vld [vmem:[#allocation6] sm:$0xff]   ;;  %vm66_vm1 = vcmask 523264  }
  0x38   :  { %192 = vmatprep.subr.bf16.mxu0 %v310_v0  ;;  %196 = vmatprep.mubr.msk.bf16.mxu0 %vm311_vm0, %v310_v0  ;;  %v209_v2 = vld [vmem:[#allocation6 + $0x8] sm:$0xff]   ;;  %v180_v3 = vld [vmem:[#allocation8] ss:$0 sm:$0xff]  ;;  %v210_v4 = vld [vmem:[#allocation3] sm:$0xff]   ;;  %vm94_vm2 = vcmask 261120   ;;  %vm159_vm3 = vcmask 519168  }
  0x39   :  { %193 = vmatpush3.bf16.msra.mxu0 %v208_v1  ;;  %67 = vst.msk [vmem:[#allocation2] sm:$0xff] %vm66_vm1, %v180_v3  ;;  %68 = vst.msk [vmem:[#allocation2 + $0x8] sm:$0xff] %vm66_vm1, %v180_v3  ;;  %s312_s2 = smov [#allocation9]  }
  0x3a   :  { %194 = vmatprep.subr.bf16.mxu0 %v310_v0  ;;  %s167_s22 = sshll.u32 %s312_s2, 4  ;;  %s168_s22 = int_to_ptr.vmem [resolvable:$true] %s167_s22 }
  0x3b   :  { %s277_s23 = scalar_lea.vmem %s168_s22, 128  ;;  %p282_p11 = scmp.lt.s32.totalorder %s168_s22, %s168_s22 }
  0x3c   :  { %p278_p10 = scmp.ne.s32.totalorder %s168_s22, %s277_s23  ;;  %p283_p12 = scmp.lt.s32.totalorder %s277_s23, %s277_s23 }
  0x3d   :  { %195 = vmatpush3.bf16.msra.mxu0 %v209_v2 }
  0x3e   :  { %p284_p13 = por %p283_p12, %p282_p11 }
  0x40   :  { %197 = vmatmul.mubr.msk.bf16.vlgmr.msra.gmra.mrb[0].mxu0 %vm94_vm2, %v210_v4  ;;  %v69_v5 = vld [vmem:[#allocation2] sm:$0xff]  ;;  %v70_v7 = vld [vmem:[#allocation2 + $0x8] sm:$0xff]  ;;  %p285_p0 = pnand %p284_p13, %p278_p10 }
 0x113   :  { %v132_v6 = vpop.f32.mrb[0].mxu0 }
 0x114   :  { %v139_v8 = vadd.f32 %v132_v6, %v69_v5  ;;  %v198_v9 = vpop.f32.mrb[1].mxu0 }
 0x115   :  { %v135_v10 = vpop.f32.mrb[2].mxu0 }
 0x116   :  { %142 = vst.msk [vmem:[#allocation2] sm:$0xff] %vm66_vm1, %v139_v8  ;;  %v140_v11 = vadd.f32 %v135_v10, %v70_v7  ;;  %v199_v12 = vpop.f32.mrb[3].mxu0 }
 0x118   :  { %143 = vst.msk [vmem:[#allocation2 + $0x8] sm:$0xff] %vm66_vm1, %v140_v11 }
 0x11d   :  { %v147_v13 = vld [vmem:[#allocation2] sm:$0xff] }
 0x11e   :  { %v149_v14 = vmax.f32 %v147_v13, 0.0 }
 0x11f   :  { %v148_v15 = vld [vmem:[#allocation2 + $0x8] sm:$0xff] }
 0x120   :  { %v150_v16 = vmax.f32 %v148_v15, 0.0  ;;  %v187_v17 = vpack.c.bf16 %v149_v14, %v149_v14 }
 0x122   :  { %v188_v18 = vpack.c.bf16 %v150_v16, %v150_v16  ;;  %160 = vst.msk [vmem:[#allocation9] sm:$0xf] %vm159_vm3, %v187_v17 }
 0x124   :  { %161 = vst.msk [vmem:[#allocation9 + $0x4] sm:$0xf] %vm159_vm3, %v188_v18 }
 0x125   :  { %288 = shalt.err (!%p285_p0)
}
 0x126   :  { %s289_s28 = scalar_lea.hbm %s404_s3, 128 }
 0x127   :  { %p290_p1 = scmp.ne.s32.totalorder %s404_s3, %s289_s28  ;;  %p293_p2 = scmp.lt.u32.totalorder %s289_s28, %s404_s3 }
 0x129   :  { %p295_p3 = pnand %p293_p2, %p290_p1 }
 0x12b   :  { %298 = shalt.err (!%p295_p3)
}
 0x12c   :  { %173 = dma.vmem_to_hbm [thread:$0]  %s168_s22, 128, %s404_s3, [#allocation5], %s307_s24, %s307_s24, %s308_s25  }
 0x12d   :  { %303 = dma.done.wait [#allocation5], 128  }
 0x12e   :  { %304 = vsyncadd [#allocation5], 4294967168 }
 0x12f   :  { %177 = vsyncpa [#allocation4], 1 }
 0x130   :  { %178 = vsyncpa [#allocation7], 1 }
 0x131   :  { %179 = vsyncpa [#allocation5], 1 }

// kernel: transformer_forward.29
= control target key start
LH: loop header
LB: loop body
LE: loop exit
PB: predicated region body
PF: predicated region fallthrough
CT: control target
= control target key end

     0   :  { %8 = vsyncpa [#allocation4], 0  ;;  %s399_s0 = inlined_call_operand.hbm [shape: bf16[16,32], index: 0, kind: input, shape index: {}]   ;;  %s400_s1 = inlined_call_operand.hbm [shape: bf16[32,96], index: 1, kind: input, shape index: {}]   ;;  %s401_s2 = inlined_call_operand.hbm [shape: f32[1,96], index: 2, kind: input, shape index: {}]   ;;  %s402_s3 = inlined_call_operand.hbm [shape: bf16[16,96], index: 3, kind: output, shape index: {}]  }
   0x1   :  { %9 = vsyncpa [#allocation7], 0 }
   0x2   :  { %10 = vsyncpa [#allocation5], 0  ;;  %s303_s12 = smov [#allocation6]   ;;  %s304_s14 = smov [#allocation3]  }
   0x3   :  { %s28_s13 = sshll.u32 %s303_s12, 4  ;;  %s16_s15 = sshll.u32 %s304_s14, 4  ;;  %s29_s13 = int_to_ptr.vmem [resolvable:$true] %s28_s13  ;;  %s331_s15 = int_to_ptr.vmem [resolvable:$true] %s16_s15 }
   0x4   :  { %s209_s18 = scalar_lea.hbm %s400_s1, 256 }
   0x5   :  { %p210_p0 = scmp.ne.s32.totalorder %s400_s1, %s209_s18  ;;  %p213_p1 = scmp.lt.u32.totalorder %s209_s18, %s400_s1 }
   0x7   :  { %p215_p2 = pnand %p213_p1, %p210_p0 }
   0x9   :  { %218 = shalt.err (!%p215_p2)
}
   0xa   :  { %s219_s23 = scalar_lea.vmem %s29_s13, 256  ;;  %p224_p4 = scmp.lt.s32.totalorder %s29_s13, %s29_s13 }
   0xb   :  { %p220_p3 = scmp.ne.s32.totalorder %s29_s13, %s219_s23  ;;  %p225_p5 = scmp.lt.s32.totalorder %s219_s23, %s219_s23 }
   0xd   :  { %p226_p6 = por %p225_p5, %p224_p4 }
   0xf   :  { %p227_p7 = pnand %p226_p6, %p220_p3 }
  0x11   :  { %230 = shalt.err (!%p227_p7)
}
  0x12   :  { %s305_s24 = smov 64   ;;  %s306_s25 = smov 4  }
  0x13   :  { %34 = dma.hbm_to_vmem [thread:$0]  %s400_s1, 256, %s29_s13, [#allocation7], %s305_s24, %s305_s24, %s306_s25  }
  0x14   :  { %s231_s30 = scalar_lea.hbm %s399_s0, 128 }
  0x15   :  { %p232_p8 = scmp.ne.s32.totalorder %s399_s0, %s231_s30  ;;  %p235_p9 = scmp.lt.u32.totalorder %s231_s30, %s399_s0 }
  0x17   :  { %p237_p10 = pnand %p235_p9, %p232_p8 }
  0x19   :  { %240 = shalt.err (!%p237_p10)
}
  0x1a   :  { %s241_s8 = scalar_lea.vmem %s331_s15, 128  ;;  %p246_p12 = scmp.lt.s32.totalorder %s331_s15, %s331_s15 }
  0x1b   :  { %p242_p11 = scmp.ne.s32.totalorder %s331_s15, %s241_s8  ;;  %p247_p13 = scmp.lt.s32.totalorder %s241_s8, %s241_s8 }
  0x1d   :  { %p248_p0 = por %p247_p13, %p246_p12 }
  0x1f   :  { %p249_p1 = pnand %p248_p0, %p242_p11 }
  0x21   :  { %252 = shalt.err (!%p249_p1)
}
  0x22   :  { %22 = dma.hbm_to_vmem [thread:$0]  %s399_s0, 128, %s331_s15, [#allocation4], %s305_s24, %s305_s24, %s306_s25  }
  0x23   :  { %s307_s10 = smov [#allocation8]   ;;  %s253_s14 = scalar_lea.hbm %s401_s2, 16 }
  0x24   :  { %s41_s11 = sshll.u32 %s307_s10, 4  ;;  %p254_p2 = scmp.ne.s32.totalorder %s401_s2, %s253_s14  ;;  %s42_s11 = int_to_ptr.vmem [resolvable:$true] %s41_s11 }
  0x25   :  { %p257_p3 = scmp.lt.u32.totalorder %s253_s14, %s401_s2 }
  0x27   :  { %p259_p4 = pnand %p257_p3, %p254_p2 }
  0x29   :  { %262 = shalt.err (!%p259_p4)
}
  0x2a   :  { %s263_s20 = scalar_lea.vmem %s42_s11, 16  ;;  %s267_s0 = scalar_lea.vmem %s42_s11, 32 }
  0x2b   :  { %p264_p5 = scmp.ne.s32.totalorder %s42_s11, %s263_s20  ;;  %p268_p6 = scmp.lt.s32.totalorder %s42_s11, %s42_s11 }
  0x2c   :  { %p269_p7 = scmp.lt.s32.totalorder %s267_s0, %s263_s20 }
  0x2e   :  { %p270_p8 = por %p269_p7, %p268_p6 }
  0x30   :  { %p271_p9 = pnand %p270_p8, %p264_p5 }
  0x32   :  { %274 = shalt.err (!%p271_p9)
}
  0x33   :  { %44 = dma.hbm_to_vmem [thread:$0]  %s401_s2, 16, %s42_s11, [#allocation7]  }
  0x34   :  { %297 = dma.done.wait [#allocation4], 128  }
  0x35   :  { %298 = vsyncadd [#allocation4], 4294967168 }
  0x36   :  { %299 = dma.done.wait [#allocation7], 272  }
  0x37   :  { %300 = vsyncadd [#allocation7], 4294967024  ;;  %v308_v0 = vmov 0.0   ;;  %vm309_vm0 = vmmov 0   ;;  %v206_v1 = vld [vmem:[#allocation6] sm:$0xff]   ;;  %vm66_vm1 = vcmask 785408  }
  0x38   :  { %190 = vmatprep.subr.bf16.mxu0 %v308_v0  ;;  %194 = vmatprep.mubr.msk.bf16.mxu0 %vm309_vm0, %v308_v0  ;;  %v207_v2 = vld [vmem:[#allocation6 + $0x8] sm:$0xff]   ;;  %v178_v3 = vld [vmem:[#allocation8] ss:$0 sm:$0xff]  ;;  %v208_v4 = vld [vmem:[#allocation3] sm:$0xff]   ;;  %vm94_vm2 = vcmask 261120   ;;  %vm157_vm3 = vcmask 781312  }
  0x39   :  { %191 = vmatpush3.bf16.msra.mxu0 %v206_v1  ;;  %67 = vst.msk [vmem:[#allocation2] sm:$0xff] %vm66_vm1, %v178_v3  ;;  %68 = vst.msk [vmem:[#allocation2 + $0x8] sm:$0xff] %vm66_vm1, %v178_v3  ;;  %s310_s2 = smov [#allocation9]  }
  0x3a   :  { %192 = vmatprep.subr.bf16.mxu0 %v308_v0  ;;  %s165_s22 = sshll.u32 %s310_s2, 4  ;;  %s166_s22 = int_to_ptr.vmem [resolvable:$true] %s165_s22 }
  0x3b   :  { %s275_s23 = scalar_lea.vmem %s166_s22, 128  ;;  %p280_p11 = scmp.lt.s32.totalorder %s166_s22, %s166_s22 }
  0x3c   :  { %p276_p10 = scmp.ne.s32.totalorder %s166_s22, %s275_s23  ;;  %p281_p12 = scmp.lt.s32.totalorder %s275_s23, %s275_s23 }
  0x3d   :  { %193 = vmatpush3.bf16.msra.mxu0 %v207_v2 }
  0x3e   :  { %p282_p13 = por %p281_p12, %p280_p11 }
  0x40   :  { %195 = vmatmul.mubr.msk.bf16.vlgmr.msra.gmra.mrb[0].mxu0 %vm94_vm2, %v208_v4  ;;  %v69_v5 = vld [vmem:[#allocation2] sm:$0xff]  ;;  %v70_v7 = vld [vmem:[#allocation2 + $0x8] sm:$0xff]  ;;  %p283_p0 = pnand %p282_p13, %p276_p10 }
 0x113   :  { %v132_v6 = vpop.f32.mrb[0].mxu0 }
 0x114   :  { %v139_v8 = vadd.f32 %v132_v6, %v69_v5  ;;  %v196_v9 = vpop.f32.mrb[1].mxu0 }
 0x115   :  { %v135_v10 = vpop.f32.mrb[2].mxu0 }
 0x116   :  { %142 = vst.msk [vmem:[#allocation2] sm:$0xff] %vm66_vm1, %v139_v8  ;;  %v140_v11 = vadd.f32 %v135_v10, %v70_v7  ;;  %v197_v12 = vpop.f32.mrb[3].mxu0 }
 0x118   :  { %143 = vst.msk [vmem:[#allocation2 + $0x8] sm:$0xff] %vm66_vm1, %v140_v11 }
 0x11d   :  { %v147_v13 = vld [vmem:[#allocation2] sm:$0xff] }
 0x11e   :  { %v185_v14 = vpack.c.bf16 %v147_v13, %v147_v13 }
 0x11f   :  { %v148_v15 = vld [vmem:[#allocation2 + $0x8] sm:$0xff] }
 0x120   :  { %v186_v16 = vpack.c.bf16 %v148_v15, %v148_v15  ;;  %158 = vst.msk [vmem:[#allocation9] sm:$0xf] %vm157_vm3, %v185_v14 }
 0x122   :  { %159 = vst.msk [vmem:[#allocation9 + $0x4] sm:$0xf] %vm157_vm3, %v186_v16 }
 0x123   :  { %286 = shalt.err (!%p283_p0)
}
 0x124   :  { %s287_s28 = scalar_lea.hbm %s402_s3, 128 }
 0x125   :  { %p288_p1 = scmp.ne.s32.totalorder %s402_s3, %s287_s28  ;;  %p291_p2 = scmp.lt.u32.totalorder %s287_s28, %s402_s3 }
 0x127   :  { %p293_p3 = pnand %p291_p2, %p288_p1 }
 0x129   :  { %296 = shalt.err (!%p293_p3)
}
 0x12a   :  { %171 = dma.vmem_to_hbm [thread:$0]  %s166_s22, 128, %s402_s3, [#allocation5], %s305_s24, %s305_s24, %s306_s25  }
 0x12b   :  { %301 = dma.done.wait [#allocation5], 128  }
 0x12c   :  { %302 = vsyncadd [#allocation5], 4294967168 }
 0x12d   :  { %175 = vsyncpa [#allocation4], 1 }
 0x12e   :  { %176 = vsyncpa [#allocation7], 1 }
 0x12f   :  { %177 = vsyncpa [#allocation5], 1 }

// kernel: transformer_forward.30
= control target key start
LH: loop header
LB: loop body
LE: loop exit
PB: predicated region body
PF: predicated region fallthrough
CT: control target
= control target key end

     0   :  { %s1646_s0 = inlined_call_operand.hbm [shape: bf16[2,8,32], index: 0, kind: input, shape index: {}]   ;;  %s1647_s1 = inlined_call_operand.hbm [shape: bf16[2,8,64], index: 1, kind: input, shape index: {}]   ;;  %s1648_s2 = inlined_call_operand.hbm [shape: f32[2,1,8], index: 2, kind: input, shape index: {}]   ;;  %s1649_s3 = inlined_call_operand.hbm [shape: bf16[2,8,32], index: 3, kind: output, shape index: {}]  }
   0x1   :  { %1654 = sst [smem:[#allocation13_spill]] %s1647_s1 }
   0x2   :  { %8 = vsyncpa [#allocation3], 0 }
   0x3   :  { %10 = vsyncpa [#allocation3 + $0x1], 0 }
   0x4   :  { %11 = vsyncpa [#allocation6], 0 }
   0x5   :  { %13 = vsyncpa [#allocation6 + $0x1], 0 }
   0x6   :  { %14 = vsyncpa [#allocation4], 0 }
   0x7   :  { %16 = vsyncpa [#allocation4 + $0x1], 0  ;;  %s1303_s12 = smov 0   ;;  %s1305_s13 = smov 0  }
   0x8   :  { %s1307_s14 = smov 0   ;;  %s1309_s15 = smov 0  }
   0x9   :  { %s1311_s16 = smov 0   ;;  %s1313_s17 = smov 0  }
   0xa LB: > { %s1334_s18 = sadd.s32 4294967295, %s1264_s17   ;;  %s895_s19 = sadd.s32 4294967294, %s1264_s17   ;;  %s1264_s17 = sphi %s1313_s17, %s22_s17   ;;  %s1260_s16 = sphi %s1311_s16, %s1677_s16   ;;  %s1256_s15 = sphi %s1309_s15, %s1676_s15   ;;  %s1252_s14 = sphi %s1307_s14, %s1675_s14   ;;  %s1248_s13 = sphi %s1305_s13, %s1674_s13   ;;  %s1244_s12 = sphi %s1303_s12, %s1673_s12  }
   0xb   : > { %s34_s20 = sadd.s32 1, %s1260_s16  ;;  %s43_s21 = sadd.s32 1, %s1252_s14 }
   0xc   : > { %p36_p0 = scmp.ge.s32.totalorder %s34_s20, 2  ;;  %p50_p1 = scmp.ne.s32.totalorder %s1252_s14, %s1248_s13 }
   0xd   : > { %p51_p2 = scmp.eq.s32.totalorder %s1264_s17, 0  ;;  %p56_p3 = scmp.ne.s32.totalorder %s1248_s13, %s1244_s12 }
   0xe   : > { %s1679_s20 = smov (%p36_p0, %s34_s20), 0  ;;  %p57_p5 = scmp.eq.s32.totalorder %s1334_s18, 0 }
   0xf   : > { %1655 = sst [smem:[#allocation12_spill]] %s1679_s20  ;;  %p1346_p4 = por %p51_p2, %p50_p1 }
  0x10   : > { %s38_s23 = ssub.s32 %s1260_s16, %s1679_s20  ;;  %p134_p6 = scmp.eq.s32.totalorder %s1334_s18, 1 }
  0x11   : > { %p41_p7 = scmp.eq.s32.totalorder %s38_s23, 0  ;;  %p1354_p8 = por %p57_p5, %p56_p3 }
  0x12   : > { %p1358_p9 = por %p134_p6, %p50_p1  ;;  %p140_p10 = scmp.eq.s32.totalorder %s895_s19, 1 }
  0x13   : > { %s1657_s24 = scalar_select %p1354_p8, 1, 0 }
  0x14   : > { %s1658_s25 = scalar_select %p1358_p9, 1, 0 }
  0x15   : > { %s1363_s26 = scalar_select %p41_p7, %s1252_s14, %s43_s21  }
  0x16   : > { %p1365_p11 = por %p140_p10, %p56_p3  ;;  %p1007_p13 = scmp.lt.s32.totalorder %s1264_s17, 2 }
  0x17   : > { %s1372_s28 = sand.u32 1, %s1252_s14   ;;  %s899_s30 = sshll.u32 %s1260_s16, 6 }
  0x18   : > { %s1659_s27 = scalar_select %p1365_p11, 1, 0 }
  0x19   : > { %s898_s29 = sshll.u32 %s1372_s28, 2  ;;  %p1378_p0 = pnand %p1007_p13, %p1346_p4 }
  0x1a   : > { %s179_s5 = sand.u32 1, %s1264_s17   ;;  %s1661_s1 = sld [smem:[#allocation13_spill]] }
  0x1b   : > { %s1660_s4 = scalar_select %p1378_p0, 1, 0 }
  0x1c   : > { %s183_s9 = scalar_lea.vmem [#allocation5], %s898_s29  ;;  %s1396_s11 = scalar_lea.sflag [#allocation6], %s179_s5 }
  0x1d   : > { %s190_s10 = sshll.u32 %s183_s9, 4  ;;  %p1402_p4 = pneg %p1378_p0  ;;  %s1393_s10 = int_to_ptr.vmem [resolvable:$true] %s190_s10 }
  0x20   : > { %s1388_s8 = scalar_lea.hbm %s1661_s1, %s899_s30  ;;  %s1093_s6 = scalar_lea.hbm %s1661_s1, 128 }
  0x21   : > { %s1088_s19 = scalar_lea.hbm %s1388_s8, 64  ;;  %p1094_p7 = scmp.lt.u32.totalorder %s1388_s8, %s1661_s1 }
  0x22   : > { %p1089_p3 = scmp.ne.s32.totalorder %s1388_s8, %s1088_s19  ;;  %p1095_p10 = scmp.lt.u32.totalorder %s1093_s6, %s1088_s19 }
  0x23   : > { %p1097_p12 = scmp.lt.u32.totalorder %s1088_s19, %s1388_s8 }
  0x24   : > { %p1091_p5 = pnand %p1402_p4, %p1089_p3  ;;  %p1096_p13 = por %p1095_p10, %p1094_p7 }
  0x26   : > { %p1092_p6 = pneg %p1091_p5  ;;  %p1098_p1 = por %p1097_p12, %p1096_p13 }
  0x28   : > { %p1099_p2 = pnand %p1098_p1, %p1092_p6 }
  0x2a   : > { %1102 = shalt.err (!%p1099_p2)
}
  0x2b   : > { %s1103_s5 = scalar_lea.vmem %s1393_s10, 64  ;;  %s1266_s22 = smov [#allocation5]  }
  0x2c   : > { %p1104_p3 = scmp.ne.s32.totalorder %s1393_s10, %s1103_s5  ;;  %s1108_s23 = sshll.u32 %s1266_s22, 4  ;;  %s1109_s23 = int_to_ptr.vmem [resolvable:$false] %s1108_s23 }
  0x2d   : > { %s1110_s7 = scalar_lea.vmem %s1109_s23, 128  ;;  %p1111_p9 = scmp.lt.s32.totalorder %s1393_s10, %s1109_s23 }
  0x2e   : > { %p1106_p5 = pnand %p1104_p3, %p1402_p4  ;;  %p1112_p8 = scmp.lt.s32.totalorder %s1110_s7, %s1103_s5 }
  0x30   : > { %p1107_p11 = pneg %p1106_p5  ;;  %p1113_p7 = por %p1112_p8, %p1111_p9 }
  0x32   : > { %p1114_p10 = pnand %p1113_p7, %p1107_p11 }
  0x34   : > { %1117 = shalt.err (!%p1114_p10)
}
  0x35   : > { %999 = dma.hbm_to_vmem [thread:$0]  (!%p1378_p0), %s1388_s8, 64, %s1393_s10, %s1396_s11  }
  0x36   : > { %p1663_p12 = scmp.lt.s32.totalorder %s1264_s17, 3  ;;  %p1664_p1 = scmp.ge.s32.totalorder %s1264_s17, 1 }
  0x37   : > { %s1439_s5 = scalar_lea.hbm %s1646_s0, %s899_s30  ;;  %s164_s22 = scalar_lea.vmem [#allocation2], %s898_s29 }
  0x38   : > { %p1430_p2 = pnand %p1664_p1, %p1663_p12  ;;  %s172_s23 = sshll.u32 %s164_s22, 4  ;;  %s1443_s23 = int_to_ptr.vmem [resolvable:$true] %s172_s23 }
  0x39   : > { %s902_s8 = sshll.u32 %s1260_s16, 4  ;;  %s161_s10 = scalar_lea.sflag [#allocation3], %s1372_s28 }
  0x3a   : > { %s1665_s19 = scalar_select %p1430_p2, 1, 0 }
  0x3b   : > { %s1118_s7 = scalar_lea.hbm %s1439_s5, 64  ;;  %s1123_s30 = scalar_lea.hbm %s1646_s0, 128 }
  0x3c   : > { %p1119_p8 = scmp.ne.s32.totalorder %s1439_s5, %s1118_s7  ;;  %p1124_p6 = scmp.lt.u32.totalorder %s1439_s5, %s1646_s0 }
  0x3d   : > { %p1125_p13 = scmp.lt.u32.totalorder %s1123_s30, %s1118_s7  ;;  %p1127_p5 = scmp.lt.u32.totalorder %s1118_s7, %s1439_s5 }
  0x3e   : > { %p1121_p9 = pnand %p1119_p8, %p1402_p4 }
  0x3f   : > { %p1126_p3 = por %p1125_p13, %p1124_p6 }
  0x40   : > { %p1122_p11 = pneg %p1121_p9 }
  0x41   : > { %p1128_p7 = por %p1127_p5, %p1126_p3 }
  0x43   : > { %p1129_p10 = pnand %p1128_p7, %p1122_p11 }
  0x45   : > { %1132 = shalt.err (!%p1129_p10)
}
  0x46   : > { %s1133_s29 = scalar_lea.vmem %s1443_s23, 64  ;;  %s1267_s1 = smov [#allocation2]  }
  0x47   : > { %p1134_p12 = scmp.ne.s32.totalorder %s1443_s23, %s1133_s29  ;;  %s1138_s22 = sshll.u32 %s1267_s1, 4  ;;  %s1139_s22 = int_to_ptr.vmem [resolvable:$false] %s1138_s22 }
  0x48   : > { %s1140_s20 = scalar_lea.vmem %s1139_s22, 128  ;;  %p1141_p9 = scmp.lt.s32.totalorder %s1443_s23, %s1139_s22 }
  0x49   : > { %p1136_p1 = pnand %p1134_p12, %p1402_p4  ;;  %p1142_p2 = scmp.lt.s32.totalorder %s1140_s20, %s1133_s29 }
  0x4b   : > { %p1137_p8 = pneg %p1136_p1  ;;  %p1143_p6 = por %p1142_p2, %p1141_p9 }
  0x4d   : > { %p1144_p13 = pnand %p1143_p6, %p1137_p8 }
  0x4f   : > { %1147 = shalt.err (!%p1144_p13)
}
  0x50   : > { %996 = dma.hbm_to_vmem [thread:$0]  (!%p1378_p0), %s1439_s5, 64, %s1443_s23, %s161_s10  }
  0x51   : > { %s1473_s30 = scalar_lea.hbm %s1648_s2, %s902_s8  ;;  %s200_s9 = scalar_lea.vmem [#allocation7], %s1372_s28 }
  0x52   : > { %s207_s29 = sshll.u32 %s200_s9, 4  ;;  %s1148_s1 = scalar_lea.hbm %s1473_s30, 16  ;;  %s208_s29 = int_to_ptr.vmem [resolvable:$true] %s207_s29 }
  0x53   : > { %p1149_p2 = scmp.ne.s32.totalorder %s1473_s30, %s1148_s1  ;;  %s1153_s23 = scalar_lea.hbm %s1648_s2, 32 }
  0x54   : > { %p1154_p5 = scmp.lt.u32.totalorder %s1473_s30, %s1648_s2  ;;  %p1155_p7 = scmp.lt.u32.totalorder %s1153_s23, %s1148_s1 }
  0x55   : > { %p1151_p11 = pnand %p1149_p2, %p1402_p4  ;;  %p1157_p12 = scmp.lt.u32.totalorder %s1148_s1, %s1473_s30 }
  0x56   : > { %p1156_p10 = por %p1155_p7, %p1154_p5 }
  0x57   : > { %p1152_p3 = pneg %p1151_p11 }
  0x58   : > { %p1158_p1 = por %p1157_p12, %p1156_p10 }
  0x5a   : > { %p1159_p8 = pnand %p1158_p1, %p1152_p3 }
  0x5c   : > { %1162 = shalt.err (!%p1159_p8)
}
  0x5d   : > { %s1163_s28 = scalar_lea.vmem %s208_s29, 16  ;;  %s1268_s8 = smov [#allocation7]  }
  0x5e   : > { %p1164_p9 = scmp.ne.s32.totalorder %s208_s29, %s1163_s28  ;;  %s1168_s7 = sshll.u32 %s1268_s8, 4  ;;  %s1169_s7 = int_to_ptr.vmem [resolvable:$false] %s1168_s7 }
  0x5f   : > { %s1170_s6 = scalar_lea.vmem %s1169_s7, 32  ;;  %p1171_p2 = scmp.lt.s32.totalorder %s208_s29, %s1169_s7 }
  0x60   : > { %p1166_p6 = pnand %p1164_p9, %p1402_p4  ;;  %p1172_p11 = scmp.lt.s32.totalorder %s1170_s6, %s1163_s28 }
  0x62   : > { %p1167_p13 = pneg %p1166_p6  ;;  %p1173_p0 = por %p1172_p11, %p1171_p2 }
  0x64   : > { %p1174_p5 = pnand %p1173_p0, %p1167_p13 }
  0x66   : > { %1177 = shalt.err (!%p1174_p5)
}
  0x67   : > { %p1666_p7 = scmp.ne.s32.totalorder %s1660_s4, 0  ;;  %p1667_p3 = scmp.ne.s32.totalorder %s1665_s19, 0 }
  0x68   : > { %s1497_s21 = sand.u32 (!%p1667_p3), 1, %s1248_s13   ;;  %p1668_p0 = scmp.ne.s32.totalorder (!%p1667_p3), %s1657_s24, 0 }
  0x69   : > { %1002 = dma.hbm_to_vmem [thread:$0]  (!%p1666_p7), %s1473_s30, 16, %s208_s29, %s1396_s11  }
  0x6a   : > { %216 = sbr.rel (%p1667_p3) target bundleno = 1247 (0x4df), region = 32  ;;  %s1500_s9 = sshll.u32 (!%p1667_p3), %s1497_s21, 2 }
  0x6b   : > { %s219_s1 = scalar_lea.sflag (!%p1667_p3), [#allocation3], %s1497_s21  ;;  %s222_s22 = scalar_lea.vmem (!%p1667_p3), [#allocation2], %s1500_s9 }
  0x71   : > { %1231 = dma.done.wait (%p1668_p0), %s219_s1, 64  }
  0x72   : > { %1233 = vsyncadd (%p1668_p0), %s219_s1, 4294967232  ;;  %s227_s4 = sand.u32 1, %s1334_s18   ;;  %s231_s19 = scalar_lea.vmem [#allocation5], %s1500_s9 }
  0x73   : > { %s228_s11 = scalar_lea.sflag [#allocation6], %s227_s4 }
  0x74   : > { %1235 = dma.done.wait (%p1668_p0), %s228_s11, 80  }
  0x75   : > { %1237 = vsyncadd (%p1668_p0), %s228_s11, 4294967216  ;;  %v1269_v0 = vmov 0.0   ;;  %vm1270_vm0 = vmmov 0   ;;  %vm276_vm1 = vcmask 64512   ;;  %v273_v1 = vld [vmem:[%s231_s19] sm:$0xf]  ;;  %v325_v6 = vlaneseq }
  0x76   : > { %937 = vmatprep.subr.bf16.mxu0 %v1269_v0  ;;  %939 = vmatprep.mubr.msk.bf16.mxu0 %vm1270_vm0, %v1269_v0  ;;  %v281_v2 = vsel %vm276_vm1, %v273_v1, 0  ;;  %v272_v3 = vld [vmem:[%s222_s22] sm:$0xf]  ;;  %v1525_v4 = vcombine.low %v273_v1, %v273_v1  ;;  %s1271_s18 = smov 120   ;;  %s1272_s24 = smov 112   ;;  %v1274_v10 = vmov 0  }
  0x77   : > { %943 = vmatprep.subr.bf16.mxu1 %v1269_v0  ;;  %945 = vmatprep.mubr.msk.bf16.mxu1 %vm1270_vm0, %v1269_v0  ;;  %v910_v5 = vcombine.low %v272_v3, %v272_v3  ;;  %s1273_s30 = smov 104   ;;  %s239_s29 = scalar_lea.vmem [#allocation7], %s1497_s21  ;;  %v326_v8 = vshrl.u32 %v325_v6, 7  ;;  %vm350_vm4 = vcmask 1043456   ;;  %vm750_vm5 = vcmask 130048  }
  0x78   : > { %938 = vmatpush3.bf16.xpose.msra.mxu0 %v281_v2  ;;  %401 = vrot.lane.b32.xlu1 %v1525_v4, %s1271_s18  ;;  %v274_v7 = vld [vmem:[%s239_s29] sm:$0x1]  ;;  %s1275_s5 = smov 96   ;;  %s1276_s23 = smov 88   ;;  %vm753_vm6 = vcmask 195584   ;;  %vm757_vm7 = vcmask 257024  }
  0x79   : > { %955 = vmatprep.subr.bf16.mxu0 %v1269_v0  ;;  %vm275_vm2 = vcmp.gt.f32.partialorder %v274_v7, 0.0  ;;  %v327_v9 = vsub.s32 0, %v326_v8  ;;  %s1277_s10 = smov 72   ;;  %s1278_s20 = smov 80  }
  0x7a   : > { %v324_v11 = vsel %vm275_vm2, 1, %v1274_v10  ;;  %s1279_s28 = smov 8   ;;  %s1280_s8 = smov 16  }
  0x7b   : > { %v1531_v12 = vrot.slane %v324_v11, %v327_v9  ;;  %s1281_s7 = smov 24   ;;  %s918_s6 = sshll.u32 %s1256_s15, 6 }
  0x7c   : > { %399 = vrot.lane.b32.xlu1 %v910_v5, %s1271_s18  ;;  %s270_s1 = scalar_lea.vmem [#allocation8], %s1500_s9  ;;  %s1597_s19 = scalar_lea.hbm %s1649_s3, %s918_s6 }
  0x7d   : > { %vm329_vm3 = vcmp.eq.s32.totalorder %v1531_v12, 1  ;;  %s774_s22 = sshll.u32 %s270_s1, 4  ;;  %s760_s15 = scalar_lea.sflag [#allocation4], %s1497_s21  ;;  %s1599_s22 = int_to_ptr.vmem [resolvable:$true] %s774_s22 }
  0x7e   : > { %s1178_s9 = scalar_lea.vmem %s1599_s22, 64  ;;  %p1669_p10 = scmp.ne.s32.totalorder %s1658_s25, 0 }
  0x7f   : > { %940 = vmatmul.mubr.msk.bf16.vlgmr.msra.gmra.mrb[0].mxu0 %vm276_vm1, %v272_v3  ;;  %p1179_p4 = scmp.ne.s32.totalorder %s1599_s22, %s1178_s9  ;;  %s1282_s18 = smov [#allocation8]  }
  0x80   : > { %957 = vmatprep.mubr.msk.bf16.mxu0 %vm1270_vm0, %v1269_v0  ;;  %514 = vrot.lane.b32.xlu1 %v1525_v4, %s1272_s24 }
  0x81   : > { %p1180_p12 = pnand %p1179_p4, %p1669_p10 }
  0x83   : > { %p1181_p1 = pneg %p1180_p12 }
  0x84   : > { %512 = vrot.lane.b32.xlu1 %v910_v5, %s1272_s24  ;;  %s1182_s24 = sshll.u32 %s1282_s18, 4  ;;  %s1183_s24 = int_to_ptr.vmem [resolvable:$false] %s1182_s24 }
  0x85   : > { %p1185_p8 = scmp.lt.s32.totalorder %s1599_s22, %s1183_s24 }
  0x88   : > { %627 = vrot.lane.b32.xlu1 %v1525_v4, %s1273_s30 }
  0x8c   : > { %625 = vrot.lane.b32.xlu1 %v910_v5, %s1273_s30  ;;  %s1184_s30 = scalar_lea.vmem %s1183_s24, 128 }
  0x8d   : > { %p1186_p9 = scmp.lt.s32.totalorder %s1184_s30, %s1178_s9 }
  0x8f   : > { %p1187_p6 = por %p1186_p9, %p1185_p8 }
  0x91   : > { %p1188_p13 = pnand %p1187_p6, %p1181_p1 }
  0xea   : > { %v402_v25 = vpop.permute.xlu1 %401 }
  0xeb   : > { %v407_v28 = vsel %vm276_vm1, %v402_v25, 0 }
  0xee   : > { %v400_v26 = vpop.permute.xlu1 %399 }
  0xf2   : > { %v515_v30 = vpop.permute.xlu1 %514 }
  0xf3   : > { %v520_v32 = vsel %vm276_vm1, %v515_v30, 0 }
  0xf6   : > { %v513_v31 = vpop.permute.xlu1 %512 }
  0xfa   : > { %v628_v33 = vpop.permute.xlu1 %627 }
  0xfb   : > { %v633_v34 = vsel %vm276_vm1, %v628_v33, 0 }
  0xfe   : > { %v626_v35 = vpop.permute.xlu1 %625 }
 0x152   : > { %v317_v13 = vpop.f32.mrb[0].mxu0 }
 0x153   : > { %v323_v14 = vmul.f32 0.35355338, %v317_v13  ;;  %v941_v15 = vpop.f32.mrb[1].mxu0 }
 0x154   : > { %v320_v16 = vpop.f32.mrb[2].mxu0 }
 0x155   : > { %v942_v17 = vpop.f32.mrb[3].mxu0  ;;  %v330_v18 = vsel %vm329_vm3, %v323_v14, -1e+10 }
 0x156   : > { %v331_v19 = vsel %vm276_vm1, %v330_v18, -inf }
 0x157   : > { %332 = vmax.xlane.f32.xlu0 %v331_v19 }
 0x16d   : > { %345 = vrot.lane.b32.xlu0 %v1525_v4, %s1275_s5 }
 0x1e4   : > { %v333_v20 = vpop.xlane.xlu0 %332 }
 0x1e5   : > { %v334_v21 = vsub.f32 %v330_v18, %v333_v20 }
 0x1e7   : > { %v335_v22 = vmul.f32 1.442695, %v334_v21 }
 0x1e8   : > { %v346_v23 = vpop.permute.xlu0 %345 }
 0x1e9   : > { %1072 = vpow2.f32 %v335_v22  ;;  %v352_v24 = vsel %vm350_vm4, %v346_v23, 0 }
 0x1ea   : > { %944 = vmatpush3.bf16.msra.mxu1 %v352_v24 }
 0x1eb   : > { %949 = vmatprep.subr.bf16.mxu1 %v1269_v0 }
 0x1f3   : > { %v1540_v27 = vpop.eup %1072 }
 0x1f4   : > { %v341_v29 = vpack.c.bf16 %v1540_v27, %v1540_v27  ;;  %v337_v13 = vsel %vm276_vm1, %v1540_v27, 0.0 }
 0x1f6   : > { %946 = vmatmul.mubr.msk.bf16.vlgmr.msra.gmra.mrb[0].mxu1 %vm276_vm1, %v341_v29 }
 0x1f7   : > { %950 = vmatpush3.bf16.xpose.msra.mxu1 %v407_v28  ;;  %951 = vmatprep.mubr.msk.bf16.mxu1 %vm1270_vm0, %v1269_v0 }
 0x1f8   : > { %961 = vmatprep.subr.bf16.mxu1 %v1269_v0 }
 0x1fe   : > { %952 = vmatmul.mubr.msk.bf16.vlgmr.msra.gmra.mrb[4].mxu1 %vm276_vm1, %v400_v26 }
 0x1ff   : > { %962 = vmatpush3.bf16.xpose.msra.mxu1 %v520_v32  ;;  %963 = vmatprep.mubr.msk.bf16.mxu1 %vm1270_vm0, %v1269_v0 }
 0x200   : > { %973 = vmatprep.subr.bf16.mxu1 %v1269_v0 }
 0x206   : > { %964 = vmatmul.mubr.msk.bf16.vlgmr.msra.gmra.mrb[8].mxu1 %vm276_vm1, %v513_v31 }
 0x207   : > { %974 = vmatpush3.bf16.xpose.msra.mxu1 %v633_v34  ;;  %975 = vmatprep.mubr.msk.bf16.mxu1 %vm1270_vm0, %v1269_v0 }
 0x20e   : > { %976 = vmatmul.mubr.msk.bf16.vlgmr.msra.gmra.mrb[12].mxu1 %vm276_vm1, %v626_v35 }
 0x2c9   : > { %v1559_v36 = vpop.f32.mrb[0].mxu1 }
 0x2ca   : > { %v947_v37 = vpop.f32.mrb[1].mxu1 }
 0x2cb   : > { %v391_v38 = vpop.f32.mrb[2].mxu1 }
 0x2cc   : > { %v948_v39 = vpop.f32.mrb[3].mxu1 }
 0x2d1   : > { %v443_v40 = vpop.f32.mrb[4].mxu1 }
 0x2d2   : > { %v449_v41 = vmul.f32 0.35355338, %v443_v40  ;;  %v953_v42 = vpop.f32.mrb[5].mxu1 }
 0x2d3   : > { %v446_v43 = vpop.f32.mrb[6].mxu1 }
 0x2d4   : > { %v954_v44 = vpop.f32.mrb[7].mxu1  ;;  %v450_v45 = vsel %vm329_vm3, %v449_v41, -1e+10 }
 0x2d5   : > { %v451_v46 = vsel %vm276_vm1, %v450_v45, -inf }
 0x2d6   : > { %452 = vmax.xlane.f32.xlu1 %v451_v46 }
 0x2d9   : > { %v556_v47 = vpop.f32.mrb[8].mxu1 }
 0x2da   : > { %v562_v48 = vmul.f32 0.35355338, %v556_v47  ;;  %v965_v49 = vpop.f32.mrb[9].mxu1 }
 0x2db   : > { %v559_v50 = vpop.f32.mrb[10].mxu1 }
 0x2dc   : > { %v966_v51 = vpop.f32.mrb[11].mxu1  ;;  %v563_v52 = vsel %vm329_vm3, %v562_v48, -1e+10 }
 0x2dd   : > { %v564_v53 = vsel %vm276_vm1, %v563_v52, -inf }
 0x2de   : > { %565 = vmax.xlane.f32.xlu0 %v564_v53 }
 0x2e1   : > { %v669_v54 = vpop.f32.mrb[12].mxu1 }
 0x2e2   : > { %v675_v55 = vmul.f32 0.35355338, %v669_v54  ;;  %v977_v56 = vpop.f32.mrb[13].mxu1 }
 0x2e3   : > { %v672_v57 = vpop.f32.mrb[14].mxu1 }
 0x2e4   : > { %v978_v58 = vpop.f32.mrb[15].mxu1  ;;  %v676_v59 = vsel %vm329_vm3, %v675_v55, -1e+10 }
 0x2e5   : > { %v677_v60 = vsel %vm276_vm1, %v676_v59, -inf }
 0x2e6   : > { %678 = vmax.xlane.f32.xlu0 %v677_v60 }
 0x2e7   : > { %462 = vrot.lane.b32.xlu1 %v1525_v4, %s1276_s23 }
 0x2eb   : > { %688 = vrot.lane.b32.xlu1 %v1525_v4, %s1277_s10 }
 0x2fc   : > { %575 = vrot.lane.b32.xlu0 %v1525_v4, %s1278_s20 }
 0x363   : > { %v453_v61 = vpop.xlane.xlu1 %452 }
 0x364   : > { %v454_v62 = vsub.f32 %v450_v45, %v453_v61 }
 0x366   : > { %v455_v63 = vmul.f32 1.442695, %v454_v62 }
 0x367   : > { %v463_v1 = vpop.permute.xlu1 %462 }
 0x368   : > { %1074 = vpow2.f32 %v455_v63  ;;  %v468_v2 = vsel %vm350_vm4, %v463_v1, 0 }
 0x369   : > { %956 = vmatpush3.bf16.msra.mxu0 %v468_v2 }
 0x36a   : > { %967 = vmatprep.subr.bf16.mxu0 %v1269_v0 }
 0x36b   : > { %v566_v3 = vpop.xlane.xlu0 %565  ;;  %v689_v15 = vpop.permute.xlu1 %688 }
 0x36c   : > { %v567_v5 = vsub.f32 %v563_v52, %v566_v3  ;;  %v694_v19 = vsel %vm350_vm4, %v689_v15, 0 }
 0x36e   : > { %v568_v6 = vmul.f32 1.442695, %v567_v5 }
 0x370   : > { %1076 = vpow2.f32 %v568_v6 }
 0x372   : > { %v1075_v7 = vpop.eup %1074 }
 0x373   : > { %v679_v8 = vpop.xlane.xlu0 %678  ;;  %v457_v9 = vsel %vm276_vm1, %v1075_v7, 0.0  ;;  %v461_v10 = vpack.c.bf16 %v1075_v7, %v1075_v7 }
 0x374   : > { %v680_v4 = vsub.f32 %v676_v59, %v679_v8  ;;  %458 = vadd.xlane.f32.xlu1 %v457_v9 }
 0x375   : > { %958 = vmatmul.mubr.msk.bf16.vlgmr.msra.gmra.mrb[4].mxu0 %vm276_vm1, %v461_v10 }
 0x376   : > { %v681_v11 = vmul.f32 1.442695, %v680_v4  ;;  %969 = vmatprep.mubr.msk.bf16.mxu0 %vm1270_vm0, %v1269_v0 }
 0x377   : > { %v576_v12 = vpop.permute.xlu0 %575 }
 0x378   : > { %1078 = vpow2.f32 %v681_v11  ;;  %v581_v14 = vsel %vm350_vm4, %v576_v12, 0  ;;  %338 = vadd.xlane.f32.xlu1 %v337_v13 }
 0x379   : > { %968 = vmatpush3.bf16.msra.mxu0 %v581_v14 }
 0x37a   : > { %v1077_v16 = vpop.eup %1076  ;;  %979 = vmatprep.subr.bf16.mxu0 %v1269_v0 }
 0x37b   : > { %v570_v17 = vsel %vm276_vm1, %v1077_v16, 0.0  ;;  %v574_v18 = vpack.c.bf16 %v1077_v16, %v1077_v16 }
 0x37c   : > { %571 = vadd.xlane.f32.xlu0 %v570_v17 }
 0x37d   : > { %970 = vmatmul.mubr.msk.bf16.vlgmr.msra.gmra.mrb[8].mxu0 %vm276_vm1, %v574_v18 }
 0x37e   : > { %980 = vmatpush3.bf16.msra.mxu0 %v694_v19  ;;  %981 = vmatprep.mubr.msk.bf16.mxu0 %vm1270_vm0, %v1269_v0 }
 0x382   : > { %v1079_v20 = vpop.eup %1078 }
 0x383   : > { %v683_v21 = vsel %vm276_vm1, %v1079_v20, 0.0  ;;  %v687_v22 = vpack.c.bf16 %v1079_v20, %v1079_v20 }
 0x384   : > { %684 = vadd.xlane.f32.xlu0 %v683_v21 }
 0x385   : > { %982 = vmatmul.mubr.msk.bf16.vlgmr.msra.gmra.mrb[12].mxu0 %vm276_vm1, %v687_v22 }
 0x401   : > { %v459_v23 = vpop.xlane.xlu1 %458 }
 0x402   : > { %1080 = vrcp.f32 %v459_v23 }
 0x405   : > { %v339_v47 = vpop.xlane.xlu1 %338 }
 0x409   : > { %v572_v24 = vpop.xlane.xlu0 %571 }
 0x40a   : > { %1082 = vrcp.f32 %v572_v24 }
 0x40c   : > { %v1081_v25 = vpop.eup %1080 }
 0x411   : > { %v685_v30 = vpop.xlane.xlu0 %684 }
 0x412   : > { %1084 = vrcp.f32 %v685_v30 }
 0x413   : > { %1086 = vrcp.f32 %v339_v47 }
 0x414   : > { %v1083_v0 = vpop.eup %1082 }
 0x41c   : > { %v1085_v40 = vpop.eup %1084 }
 0x41d   : > { %v1087_v48 = vpop.eup %1086 }
 0x41e   : > { %v394_v49 = vmul.f32 %v1087_v48, %v1559_v36 }
 0x420   : > { %v395_v52 = vpack.c.bf16 %v394_v49, %v394_v49 }
 0x448   : > { %v504_v26 = vpop.f32.mrb[4].mxu0 }
 0x449   : > { %v510_v27 = vmul.f32 %v1081_v25, %v504_v26  ;;  %v959_v28 = vpop.f32.mrb[5].mxu0 }
 0x44a   : > { %v507_v29 = vpop.f32.mrb[6].mxu0 }
 0x44b   : > { %v511_v31 = vpack.c.bf16 %v510_v27, %v510_v27  ;;  %v960_v32 = vpop.f32.mrb[7].mxu0 }
 0x44d   : > { %739 = vrot.lane.b32.xlu0 %v511_v31, %s1279_s28 }
 0x450   : > { %v617_v33 = vpop.f32.mrb[8].mxu0 }
 0x451   : > { %v623_v34 = vmul.f32 %v1083_v0, %v617_v33  ;;  %v971_v35 = vpop.f32.mrb[9].mxu0 }
 0x452   : > { %v620_v37 = vpop.f32.mrb[10].mxu0 }
 0x453   : > { %v624_v38 = vpack.c.bf16 %v623_v34, %v623_v34  ;;  %v972_v39 = vpop.f32.mrb[11].mxu0 }
 0x455   : > { %742 = vrot.lane.b32.xlu1 %v624_v38, %s1280_s8 }
 0x458   : > { %v730_v41 = vpop.f32.mrb[12].mxu0 }
 0x459   : > { %v736_v42 = vmul.f32 %v1085_v40, %v730_v41  ;;  %v983_v43 = vpop.f32.mrb[13].mxu0 }
 0x45a   : > { %v733_v44 = vpop.f32.mrb[14].mxu0 }
 0x45b   : > { %v737_v45 = vpack.c.bf16 %v736_v42, %v736_v42  ;;  %v984_v46 = vpop.f32.mrb[15].mxu0 }
 0x45d   : > { %745 = vrot.lane.b32.xlu1 %v737_v45, %s1281_s7 }
 0x4bf   : > { %v740_v50 = vpop.permute.xlu0 %739 }
 0x4c0   : > { %v749_v53 = vsel %vm276_vm1, %v395_v52, %v740_v50 }
 0x4c7   : > { %v743_v51 = vpop.permute.xlu1 %742 }
 0x4c8   : > { %v752_v54 = vsel %vm750_vm5, %v749_v53, %v743_v51 }
 0x4cf   : > { %v746_v55 = vpop.permute.xlu1 %745 }
 0x4d0   : > { %v755_v36 = vsel %vm753_vm6, %v752_v54, %v746_v55 }
 0x4d1   : > { %758 = vst.msk [vmem:[%s270_s1] sm:$0xf] %vm757_vm7, %v755_v36 }
 0x4d2   : > { %1191 = shalt.err (!%p1188_p13)
}
 0x4d3   : > { %s1192_s21 = scalar_lea.hbm %s1597_s19, 64  ;;  %s1196_s23 = scalar_lea.hbm %s1649_s3, 128 }
 0x4d4   : > { %p1193_p2 = scmp.ne.s32.totalorder %s1597_s19, %s1192_s21  ;;  %p1197_p7 = scmp.lt.u32.totalorder %s1597_s19, %s1649_s3 }
 0x4d5   : > { %p1198_p3 = scmp.lt.u32.totalorder %s1196_s23, %s1192_s21  ;;  %p1200_p4 = scmp.lt.u32.totalorder %s1192_s21, %s1597_s19 }
 0x4d6   : > { %p1194_p11 = pnand %p1193_p2, %p1669_p10 }
 0x4d7   : > { %p1199_p0 = por %p1198_p3, %p1197_p7 }
 0x4d8   : > { %p1195_p5 = pneg %p1194_p11 }
 0x4d9   : > { %p1201_p12 = por %p1200_p4, %p1199_p0 }
 0x4db   : > { %p1202_p1 = pnand %p1201_p12, %p1195_p5 }
 0x4dd   : > { %1205 = shalt.err (!%p1202_p1)
}
 0x4de   : > { %991 = dma.vmem_to_hbm [thread:$0]  (%p1669_p10), %s1599_s22, 64, %s1597_s19, %s760_s15  }
 0x4df PF: > { %s786_s28 = sand.u32 1, %s1244_s12   ;;  %p1670_p8 = scmp.ne.s32.totalorder %s1659_s27, 0 }
 0x4e0   : > { %p1671_p9 = scmp.ge.s32.totalorder %s1264_s17, 2  ;;  %s787_s8 = scalar_lea.sflag [#allocation4], %s786_s28 }
 0x4e2   : > { %p1004_p6 = pnand %p1671_p9, %p1670_p8 }
 0x4e4   : > { %1239 = dma.done.wait (!%p1004_p6), %s787_s8, 64  }
 0x4e5   : > { %1241 = vsyncadd (!%p1004_p6), %s787_s8, 4294967232  ;;  %s22_s17 = sadd.s32 1, %s1264_s17   ;;  %s1672_s25 = sld [smem:[#allocation12_spill]] }
 0x4e6   : > { %p19_p13 = scmp.ge.s32.totalorder %s22_s17, 4   ;;  %s1673_s12 = smov %s1248_s13 }
 0x4e7   : > { %s1674_s13 = smov %s1252_s14  ;;  %s1675_s14 = smov %s1363_s26 }
 0x4e8   : > { %s1676_s15 = smov %s1260_s16  ;;  %21 = sbr.rel (!%p19_p13) target bundleno = 10 (0xa), region = 101 }
 0x4eb   : > { %s1677_s16 = smov %s1672_s25 }
 0x4ef   :  { %792 = vsyncpa [#allocation3], 1 }
 0x4f0   :  { %794 = vsyncpa [#allocation3 + $0x1], 1 }
 0x4f1   :  { %795 = vsyncpa [#allocation6], 1 }
 0x4f2   :  { %797 = vsyncpa [#allocation6 + $0x1], 1 }
 0x4f3   :  { %798 = vsyncpa [#allocation4], 1 }
 0x4f4   :  { %800 = vsyncpa [#allocation4 + $0x1], 1 }

// kernel: transformer_forward.43
= control target key start
LH: loop header
LB: loop body
LE: loop exit
PB: predicated region body
PF: predicated region fallthrough
CT: control target
= control target key end

     0   :  { %8 = vsyncpa [#allocation4], 0  ;;  %s399_s0 = inlined_call_operand.hbm [shape: bf16[16,32], index: 0, kind: input, shape index: {}]   ;;  %s400_s1 = inlined_call_operand.hbm [shape: bf16[32,64], index: 1, kind: input, shape index: {}]   ;;  %s401_s2 = inlined_call_operand.hbm [shape: f32[1,64], index: 2, kind: input, shape index: {}]   ;;  %s402_s3 = inlined_call_operand.hbm [shape: bf16[16,64], index: 3, kind: output, shape index: {}]  }
   0x1   :  { %9 = vsyncpa [#allocation7], 0 }
   0x2   :  { %10 = vsyncpa [#allocation5], 0  ;;  %s303_s12 = smov [#allocation6]   ;;  %s304_s14 = smov [#allocation3]  }
   0x3   :  { %s28_s13 = sshll.u32 %s303_s12, 4  ;;  %s16_s15 = sshll.u32 %s304_s14, 4  ;;  %s29_s13 = int_to_ptr.vmem [resolvable:$true] %s28_s13  ;;  %s331_s15 = int_to_ptr.vmem [resolvable:$true] %s16_s15 }
   0x4   :  { %s209_s18 = scalar_lea.hbm %s400_s1, 256 }
   0x5   :  { %p210_p0 = scmp.ne.s32.totalorder %s400_s1, %s209_s18  ;;  %p213_p1 = scmp.lt.u32.totalorder %s209_s18, %s400_s1 }
   0x7   :  { %p215_p2 = pnand %p213_p1, %p210_p0 }
   0x9   :  { %218 = shalt.err (!%p215_p2)
}
   0xa   :  { %s219_s23 = scalar_lea.vmem %s29_s13, 256  ;;  %p224_p4 = scmp.lt.s32.totalorder %s29_s13, %s29_s13 }
   0xb   :  { %p220_p3 = scmp.ne.s32.totalorder %s29_s13, %s219_s23  ;;  %p225_p5 = scmp.lt.s32.totalorder %s219_s23, %s219_s23 }
   0xd   :  { %p226_p6 = por %p225_p5, %p224_p4 }
   0xf   :  { %p227_p7 = pnand %p226_p6, %p220_p3 }
  0x11   :  { %230 = shalt.err (!%p227_p7)
}
  0x12   :  { %s305_s24 = smov 64   ;;  %s306_s25 = smov 4  }
  0x13   :  { %34 = dma.hbm_to_vmem [thread:$0]  %s400_s1, 256, %s29_s13, [#allocation7], %s305_s24, %s305_s24, %s306_s25  }
  0x14   :  { %s231_s30 = scalar_lea.hbm %s399_s0, 128 }
  0x15   :  { %p232_p8 = scmp.ne.s32.totalorder %s399_s0, %s231_s30  ;;  %p235_p9 = scmp.lt.u32.totalorder %s231_s30, %s399_s0 }
  0x17   :  { %p237_p10 = pnand %p235_p9, %p232_p8 }
  0x19   :  { %240 = shalt.err (!%p237_p10)
}
  0x1a   :  { %s241_s8 = scalar_lea.vmem %s331_s15, 128  ;;  %p246_p12 = scmp.lt.s32.totalorder %s331_s15, %s331_s15 }
  0x1b   :  { %p242_p11 = scmp.ne.s32.totalorder %s331_s15, %s241_s8  ;;  %p247_p13 = scmp.lt.s32.totalorder %s241_s8, %s241_s8 }
  0x1d   :  { %p248_p0 = por %p247_p13, %p246_p12 }
  0x1f   :  { %p249_p1 = pnand %p248_p0, %p242_p11 }
  0x21   :  { %252 = shalt.err (!%p249_p1)
}
  0x22   :  { %22 = dma.hbm_to_vmem [thread:$0]  %s399_s0, 128, %s331_s15, [#allocation4], %s305_s24, %s305_s24, %s306_s25  }
  0x23   :  { %s307_s10 = smov [#allocation8]   ;;  %s253_s14 = scalar_lea.hbm %s401_s2, 16 }
  0x24   :  { %s41_s11 = sshll.u32 %s307_s10, 4  ;;  %p254_p2 = scmp.ne.s32.totalorder %s401_s2, %s253_s14  ;;  %s42_s11 = int_to_ptr.vmem [resolvable:$true] %s41_s11 }
  0x25   :  { %p257_p3 = scmp.lt.u32.totalorder %s253_s14, %s401_s2 }
  0x27   :  { %p259_p4 = pnand %p257_p3, %p254_p2 }
  0x29   :  { %262 = shalt.err (!%p259_p4)
}
  0x2a   :  { %s263_s20 = scalar_lea.vmem %s42_s11, 16  ;;  %s267_s0 = scalar_lea.vmem %s42_s11, 32 }
  0x2b   :  { %p264_p5 = scmp.ne.s32.totalorder %s42_s11, %s263_s20  ;;  %p268_p6 = scmp.lt.s32.totalorder %s42_s11, %s42_s11 }
  0x2c   :  { %p269_p7 = scmp.lt.s32.totalorder %s267_s0, %s263_s20 }
  0x2e   :  { %p270_p8 = por %p269_p7, %p268_p6 }
  0x30   :  { %p271_p9 = pnand %p270_p8, %p264_p5 }
  0x32   :  { %274 = shalt.err (!%p271_p9)
}
  0x33   :  { %44 = dma.hbm_to_vmem [thread:$0]  %s401_s2, 16, %s42_s11, [#allocation7]  }
  0x34   :  { %297 = dma.done.wait [#allocation4], 128  }
  0x35   :  { %298 = vsyncadd [#allocation4], 4294967168 }
  0x36   :  { %299 = dma.done.wait [#allocation7], 272  }
  0x37   :  { %300 = vsyncadd [#allocation7], 4294967024  ;;  %v308_v0 = vmov 0.0   ;;  %vm309_vm0 = vmmov 0   ;;  %v206_v1 = vld [vmem:[#allocation6] sm:$0xff]   ;;  %vm66_vm1 = vcmask 523264  }
  0x38   :  { %190 = vmatprep.subr.bf16.mxu0 %v308_v0  ;;  %194 = vmatprep.mubr.msk.bf16.mxu0 %vm309_vm0, %v308_v0  ;;  %v207_v2 = vld [vmem:[#allocation6 + $0x8] sm:$0xff]   ;;  %v178_v3 = vld [vmem:[#allocation8] ss:$0 sm:$0xff]  ;;  %v208_v4 = vld [vmem:[#allocation3] sm:$0xff]   ;;  %vm94_vm2 = vcmask 261120   ;;  %vm157_vm3 = vcmask 519168  }
  0x39   :  { %191 = vmatpush3.bf16.msra.mxu0 %v206_v1  ;;  %67 = vst.msk [vmem:[#allocation2] sm:$0xff] %vm66_vm1, %v178_v3  ;;  %68 = vst.msk [vmem:[#allocation2 + $0x8] sm:$0xff] %vm66_vm1, %v178_v3  ;;  %s310_s2 = smov [#allocation9]  }
  0x3a   :  { %192 = vmatprep.subr.bf16.mxu0 %v308_v0  ;;  %s165_s22 = sshll.u32 %s310_s2, 4  ;;  %s166_s22 = int_to_ptr.vmem [resolvable:$true] %s165_s22 }
  0x3b   :  { %s275_s23 = scalar_lea.vmem %s166_s22, 128  ;;  %p280_p11 = scmp.lt.s32.totalorder %s166_s22, %s166_s22 }
  0x3c   :  { %p276_p10 = scmp.ne.s32.totalorder %s166_s22, %s275_s23  ;;  %p281_p12 = scmp.lt.s32.totalorder %s275_s23, %s275_s23 }
  0x3d   :  { %193 = vmatpush3.bf16.msra.mxu0 %v207_v2 }
  0x3e   :  { %p282_p13 = por %p281_p12, %p280_p11 }
  0x40   :  { %195 = vmatmul.mubr.msk.bf16.vlgmr.msra.gmra.mrb[0].mxu0 %vm94_vm2, %v208_v4  ;;  %v69_v5 = vld [vmem:[#allocation2] sm:$0xff]  ;;  %v70_v7 = vld [vmem:[#allocation2 + $0x8] sm:$0xff]  ;;  %p283_p0 = pnand %p282_p13, %p276_p10 }
 0x113   :  { %v132_v6 = vpop.f32.mrb[0].mxu0 }
 0x114   :  { %v139_v8 = vadd.f32 %v132_v6, %v69_v5  ;;  %v196_v9 = vpop.f32.mrb[1].mxu0 }
 0x115   :  { %v135_v10 = vpop.f32.mrb[2].mxu0 }
 0x116   :  { %142 = vst.msk [vmem:[#allocation2] sm:$0xff] %vm66_vm1, %v139_v8  ;;  %v140_v11 = vadd.f32 %v135_v10, %v70_v7  ;;  %v197_v12 = vpop.f32.mrb[3].mxu0 }
 0x118   :  { %143 = vst.msk [vmem:[#allocation2 + $0x8] sm:$0xff] %vm66_vm1, %v140_v11 }
 0x11d   :  { %v147_v13 = vld [vmem:[#allocation2] sm:$0xff] }
 0x11e   :  { %v185_v14 = vpack.c.bf16 %v147_v13, %v147_v13 }
 0x11f   :  { %v148_v15 = vld [vmem:[#allocation2 + $0x8] sm:$0xff] }
 0x120   :  { %v186_v16 = vpack.c.bf16 %v148_v15, %v148_v15  ;;  %158 = vst.msk [vmem:[#allocation9] sm:$0xf] %vm157_vm3, %v185_v14 }
 0x122   :  { %159 = vst.msk [vmem:[#allocation9 + $0x4] sm:$0xf] %vm157_vm3, %v186_v16 }
 0x123   :  { %286 = shalt.err (!%p283_p0)
}
 0x124   :  { %s287_s28 = scalar_lea.hbm %s402_s3, 128 }
 0x125   :  { %p288_p1 = scmp.ne.s32.totalorder %s402_s3, %s287_s28  ;;  %p291_p2 = scmp.lt.u32.totalorder %s287_s28, %s402_s3 }
 0x127   :  { %p293_p3 = pnand %p291_p2, %p288_p1 }
 0x129   :  { %296 = shalt.err (!%p293_p3)
}
 0x12a   :  { %171 = dma.vmem_to_hbm [thread:$0]  %s166_s22, 128, %s402_s3, [#allocation5], %s305_s24, %s305_s24, %s306_s25  }
 0x12b   :  { %301 = dma.done.wait [#allocation5], 128  }
 0x12c   :  { %302 = vsyncadd [#allocation5], 4294967168 }
 0x12d   :  { %175 = vsyncpa [#allocation4], 1 }
 0x12e   :  { %176 = vsyncpa [#allocation7], 1 }
 0x12f   :  { %177 = vsyncpa [#allocation5], 1 }

// kernel: transformer_forward.33
= control target key start
LH: loop header
LB: loop body
LE: loop exit
PB: predicated region body
PF: predicated region fallthrough
CT: control target
= control target key end

     0   :  { %11 = vsyncpa [#allocation4], 0  ;;  %s668_s0 = inlined_call_operand.hbm [shape: bf16[16,64], index: 0, kind: input, shape index: {}]   ;;  %s669_s1 = inlined_call_operand.hbm [shape: bf16[64,32], index: 1, kind: input, shape index: {}]   ;;  %s670_s2 = inlined_call_operand.hbm [shape: f32[1,32], index: 2, kind: input, shape index: {}]   ;;  %s671_s3 = inlined_call_operand.hbm [shape: bf16[16,32], index: 3, kind: input, shape index: {}]   ;;  %s672_s4 = inlined_call_operand.hbm [shape: f32[1,32], index: 4, kind: input, shape index: {}]   ;;  %s673_s5 = inlined_call_operand.hbm [shape: f32[1,32], index: 5, kind: input, shape index: {}]   ;;  %s674_s6 = inlined_call_operand.hbm [shape: bf16[16,32], index: 6, kind: output, shape index: {}]  }
   0x1   :  { %12 = vsyncpa [#allocation7], 0 }
   0x2   :  { %13 = vsyncpa [#allocation10], 0 }
   0x3   :  { %14 = vsyncpa [#allocation13], 0 }
   0x4   :  { %15 = vsyncpa [#allocation5], 0  ;;  %s511_s21 = smov [#allocation6]   ;;  %s512_s23 = smov [#allocation9]  }
   0x5   :  { %s33_s22 = sshll.u32 %s511_s21, 4  ;;  %s55_s24 = sshll.u32 %s512_s23, 4  ;;  %s34_s22 = int_to_ptr.vmem [resolvable:$true] %s33_s22  ;;  %s557_s24 = int_to_ptr.vmem [resolvable:$true] %s55_s24 }
   0x6   :  { %s347_s27 = scalar_lea.hbm %s669_s1, 512 }
   0x7   :  { %p348_p0 = scmp.ne.s32.totalorder %s669_s1, %s347_s27  ;;  %p351_p1 = scmp.lt.u32.totalorder %s347_s27, %s669_s1 }
   0x9   :  { %p353_p2 = pnand %p351_p1, %p348_p0 }
   0xb   :  { %356 = shalt.err (!%p353_p2)
}
   0xc   :  { %s357_s8 = scalar_lea.vmem %s34_s22, 512  ;;  %p362_p4 = scmp.lt.s32.totalorder %s34_s22, %s34_s22 }
   0xd   :  { %p358_p3 = scmp.ne.s32.totalorder %s34_s22, %s357_s8  ;;  %p363_p5 = scmp.lt.s32.totalorder %s357_s8, %s357_s8 }
   0xf   :  { %p364_p6 = por %p363_p5, %p362_p4 }
  0x11   :  { %p365_p7 = pnand %p364_p6, %p358_p3 }
  0x13   :  { %368 = shalt.err (!%p365_p7)
}
  0x14   :  { %s513_s9 = smov 64   ;;  %s514_s10 = smov 4  }
  0x15   :  { %39 = dma.hbm_to_vmem [thread:$0]  %s669_s1, 512, %s34_s22, [#allocation7], %s513_s9, %s513_s9, %s514_s10  }
  0x16   :  { %s369_s15 = scalar_lea.hbm %s671_s3, 128 }
  0x17   :  { %p370_p8 = scmp.ne.s32.totalorder %s671_s3, %s369_s15  ;;  %p373_p9 = scmp.lt.u32.totalorder %s369_s15, %s671_s3 }
  0x19   :  { %p375_p10 = pnand %p373_p9, %p370_p8 }
  0x1b   :  { %378 = shalt.err (!%p375_p10)
}
  0x1c   :  { %s379_s20 = scalar_lea.vmem %s557_s24, 128  ;;  %p384_p12 = scmp.lt.s32.totalorder %s557_s24, %s557_s24 }
  0x1d   :  { %p380_p11 = scmp.ne.s32.totalorder %s557_s24, %s379_s20  ;;  %p385_p13 = scmp.lt.s32.totalorder %s379_s20, %s379_s20 }
  0x1f   :  { %p386_p0 = por %p385_p13, %p384_p12 }
  0x21   :  { %p387_p1 = pnand %p386_p0, %p380_p11 }
  0x23   :  { %390 = shalt.err (!%p387_p1)
}
  0x24   :  { %61 = dma.hbm_to_vmem [thread:$0]  %s671_s3, 128, %s557_s24, [#allocation10], %s513_s9, %s513_s9, %s514_s10  }
  0x25   :  { %s515_s22 = smov [#allocation3]   ;;  %s516_s25 = smov [#allocation8]  }
  0x26   :  { %s21_s23 = sshll.u32 %s515_s22, 4  ;;  %s46_s26 = sshll.u32 %s516_s25, 4  ;;  %s22_s23 = int_to_ptr.vmem [resolvable:$true] %s21_s23  ;;  %s47_s26 = int_to_ptr.vmem [resolvable:$true] %s46_s26 }
  0x27   :  { %s391_s29 = scalar_lea.hbm %s668_s0, 128 }
  0x28   :  { %p392_p2 = scmp.ne.s32.totalorder %s668_s0, %s391_s29  ;;  %p395_p3 = scmp.lt.u32.totalorder %s391_s29, %s668_s0 }
  0x2a   :  { %p397_p4 = pnand %p395_p3, %p392_p2 }
  0x2c   :  { %400 = shalt.err (!%p397_p4)
}
  0x2d   :  { %s401_s3 = scalar_lea.vmem %s22_s23, 128  ;;  %p406_p6 = scmp.lt.s32.totalorder %s22_s23, %s22_s23 }
  0x2e   :  { %p402_p5 = scmp.ne.s32.totalorder %s22_s23, %s401_s3  ;;  %p407_p7 = scmp.lt.s32.totalorder %s401_s3, %s401_s3 }
  0x30   :  { %p408_p8 = por %p407_p7, %p406_p6 }
  0x32   :  { %p409_p9 = pnand %p408_p8, %p402_p5 }
  0x34   :  { %412 = shalt.err (!%p409_p9)
}
  0x35   :  { %27 = dma.hbm_to_vmem [thread:$0]  %s668_s0, 128, %s22_s23, [#allocation4], %s513_s9, %s513_s9, %s514_s10  }
  0x36   :  { %s413_s15 = scalar_lea.hbm %s670_s2, 16 }
  0x37   :  { %p414_p10 = scmp.ne.s32.totalorder %s670_s2, %s413_s15  ;;  %p417_p11 = scmp.lt.u32.totalorder %s413_s15, %s670_s2 }
  0x39   :  { %p419_p12 = pnand %p417_p11, %p414_p10 }
  0x3b   :  { %422 = shalt.err (!%p419_p12)
}
  0x3c   :  { %s423_s20 = scalar_lea.vmem %s47_s26, 16  ;;  %s427_s1 = scalar_lea.vmem %s47_s26, 32 }
  0x3d   :  { %p424_p13 = scmp.ne.s32.totalorder %s47_s26, %s423_s20  ;;  %p428_p0 = scmp.lt.s32.totalorder %s47_s26, %s47_s26 }
  0x3e   :  { %p429_p1 = scmp.lt.s32.totalorder %s427_s1, %s423_s20 }
  0x40   :  { %p430_p2 = por %p429_p1, %p428_p0 }
  0x42   :  { %p431_p3 = pnand %p430_p2, %p424_p13 }
  0x44   :  { %434 = shalt.err (!%p431_p3)
}
  0x45   :  { %49 = dma.hbm_to_vmem [thread:$0]  %s670_s2, 16, %s47_s26, [#allocation7]  }
  0x46   :  { %s517_s22 = smov [#allocation11]   ;;  %s518_s25 = smov [#allocation12]  }
  0x47   :  { %s68_s23 = sshll.u32 %s517_s22, 4  ;;  %s78_s27 = sshll.u32 %s518_s25, 4  ;;  %s69_s23 = int_to_ptr.vmem [resolvable:$true] %s68_s23  ;;  %s79_s27 = int_to_ptr.vmem [resolvable:$true] %s78_s27 }
  0x48   :  { %s435_s30 = scalar_lea.hbm %s672_s4, 16 }
  0x49   :  { %p436_p4 = scmp.ne.s32.totalorder %s672_s4, %s435_s30  ;;  %p439_p5 = scmp.lt.u32.totalorder %s435_s30, %s672_s4 }
  0x4b   :  { %p441_p6 = pnand %p439_p5, %p436_p4 }
  0x4d   :  { %444 = shalt.err (!%p441_p6)
}
  0x4e   :  { %s445_s2 = scalar_lea.vmem %s69_s23, 16  ;;  %s449_s26 = scalar_lea.vmem %s69_s23, 32 }
  0x4f   :  { %p446_p7 = scmp.ne.s32.totalorder %s69_s23, %s445_s2  ;;  %p450_p8 = scmp.lt.s32.totalorder %s69_s23, %s69_s23 }
  0x50   :  { %p451_p9 = scmp.lt.s32.totalorder %s449_s26, %s445_s2 }
  0x52   :  { %p452_p10 = por %p451_p9, %p450_p8 }
  0x54   :  { %p453_p11 = pnand %p452_p10, %p446_p7 }
  0x56   :  { %456 = shalt.err (!%p453_p11)
}
  0x57   :  { %71 = dma.hbm_to_vmem [thread:$0]  %s672_s4, 16, %s69_s23, [#allocation10]  }
  0x58   :  { %s457_s15 = scalar_lea.hbm %s673_s5, 16 }
  0x59   :  { %p458_p12 = scmp.ne.s32.totalorder %s673_s5, %s457_s15  ;;  %p461_p13 = scmp.lt.u32.totalorder %s457_s15, %s673_s5 }
  0x5b   :  { %p463_p0 = pnand %p461_p13, %p458_p12 }
  0x5d   :  { %466 = shalt.err (!%p463_p0)
}
  0x5e   :  { %s467_s20 = scalar_lea.vmem %s79_s27, 16  ;;  %s471_s1 = scalar_lea.vmem %s79_s27, 32 }
  0x5f   :  { %p468_p1 = scmp.ne.s32.totalorder %s79_s27, %s467_s20  ;;  %p472_p2 = scmp.lt.s32.totalorder %s79_s27, %s79_s27 }
  0x60   :  { %p473_p3 = scmp.lt.s32.totalorder %s471_s1, %s467_s20 }
  0x62   :  { %p474_p4 = por %p473_p3, %p472_p2 }
  0x64   :  { %p475_p5 = pnand %p474_p4, %p468_p1 }
  0x66   :  { %478 = shalt.err (!%p475_p5)
}
  0x67   :  { %81 = dma.hbm_to_vmem [thread:$0]  %s673_s5, 16, %s79_s27, [#allocation13]  }
  0x68   :  { %501 = dma.done.wait [#allocation4], 128  }
  0x69   :  { %502 = vsyncadd [#allocation4], 4294967168 }
  0x6a   :  { %503 = dma.done.wait [#allocation7], 528  }
  0x6b   :  { %504 = vsyncadd [#allocation7], 4294966768 }
  0x6c   :  { %505 = dma.done.wait [#allocation10], 144  }
  0x6d   :  { %506 = vsyncadd [#allocation10], 4294967152 }
  0x6e   :  { %507 = dma.done.wait [#allocation13], 16  }
  0x6f   :  { %508 = vsyncadd [#allocation13], 4294967280  ;;  %v519_v0 = vmov 0.0   ;;  %vm520_vm0 = vmmov 0   ;;  %v338_v1 = vld [vmem:[#allocation6] sm:$0xff]   ;;  %v339_v2 = vld [vmem:[#allocation6 + $0x8] sm:$0xff]  }
  0x70   :  { %315 = vmatprep.subr.bf16.mxu0 %v519_v0  ;;  %323 = vmatprep.mubr.msk.bf16.mxu0 %vm520_vm0, %v519_v0  ;;  %vm112_vm1 = vcmask 261120   ;;  %v293_v3 = vld [vmem:[#allocation8] ss:$0 sm:$0xff]  ;;  %v340_v4 = vld [vmem:[#allocation6 + $0x10] sm:$0xff]   ;;  %v341_v5 = vld [vmem:[#allocation6 + $0x18] sm:$0xff]   ;;  %vm156_vm2 = vcmask 523264  }
  0x71   :  { %316 = vmatpush3.bf16.msra.mxu0 %v338_v1  ;;  %113 = vst.msk [vmem:[#allocation2] sm:$0xff] %vm112_vm1, %v293_v3  ;;  %114 = vst.msk [vmem:[#allocation2 + $0x8] sm:$0xff] %vm112_vm1, %v293_v3  ;;  %v342_v6 = vld [vmem:[#allocation3] sm:$0xff]   ;;  %v307_v15 = vld [vmem:[#allocation9] sm:$0xff]   ;;  %vm270_vm3 = vcmask 257024   ;;  %s521_s5 = smov [#allocation14]  }
  0x72   :  { %317 = vmatprep.subr.bf16.mxu0 %v519_v0  ;;  %v308_v16 = vunpack.c.l.bf16 %v307_v15  ;;  %v309_v17 = vunpack.c.h.bf16 %v307_v15  ;;  %v300_v41 = vld [vmem:[#allocation11] ss:$0 sm:$0xff]  ;;  %v301_v43 = vld [vmem:[#allocation12] ss:$0 sm:$0xff]  ;;  %s278_s21 = sshll.u32 %s521_s5, 4  ;;  %s279_s21 = int_to_ptr.vmem [resolvable:$true] %s278_s21 }
  0x73   :  { %s479_s22 = scalar_lea.vmem %s279_s21, 128  ;;  %p484_p7 = scmp.lt.s32.totalorder %s279_s21, %s279_s21 }
  0x74   :  { %p480_p6 = scmp.ne.s32.totalorder %s279_s21, %s479_s22  ;;  %p485_p8 = scmp.lt.s32.totalorder %s479_s22, %s479_s22 }
  0x75   :  { %318 = vmatpush3.bf16.msra.mxu0 %v339_v2 }
  0x76   :  { %319 = vmatprep.subr.bf16.mxu0 %v519_v0  ;;  %p486_p9 = por %p485_p8, %p484_p7 }
  0x78   :  { %v115_v7 = vld [vmem:[#allocation2] sm:$0xff]  ;;  %v116_v9 = vld [vmem:[#allocation2 + $0x8] sm:$0xff]  ;;  %p487_p10 = pnand %p486_p9, %p480_p6 }
  0x79   :  { %320 = vmatpush3.bf16.msra.mxu0 %v340_v4 }
  0x7a   :  { %321 = vmatprep.subr.bf16.mxu0 %v519_v0 }
  0x7d   :  { %322 = vmatpush3.bf16.msra.mxu0 %v341_v5 }
  0x80   :  { %324 = vmatmul.mubr.msk.bf16.vlgmr.msra.gmra.mrb[0].mxu0 %vm156_vm2, %v342_v6 }
 0x153   :  { %v194_v8 = vpop.f32.mrb[0].mxu0 }
 0x154   :  { %v201_v10 = vadd.f32 %v194_v8, %v115_v7  ;;  %v325_v11 = vpop.f32.mrb[1].mxu0 }
 0x155   :  { %v197_v12 = vpop.f32.mrb[2].mxu0 }
 0x156   :  { %204 = vst.msk [vmem:[#allocation2] sm:$0xff] %vm112_vm1, %v201_v10  ;;  %v202_v13 = vadd.f32 %v197_v12, %v116_v9  ;;  %v326_v14 = vpop.f32.mrb[3].mxu0 }
 0x158   :  { %205 = vst.msk [vmem:[#allocation2 + $0x8] sm:$0xff] %vm112_vm1, %v202_v13 }
 0x15d   :  { %v209_v18 = vld [vmem:[#allocation2] sm:$0xff] }
 0x15e   :  { %v215_v19 = vadd.f32 %v308_v16, %v209_v18 }
 0x15f   :  { %v210_v20 = vld [vmem:[#allocation2 + $0x8] sm:$0xff] }
 0x160   :  { %v217_v21 = vsel %vm112_vm1, %v215_v19, 0.0  ;;  %v216_v22 = vadd.f32 %v309_v17, %v210_v20 }
 0x161   :  { %218 = vadd.xlane.f32.xlu0 %v217_v21 }
 0x162   :  { %v220_v23 = vsel %vm112_vm1, %v216_v22, 0.0 }
 0x165   :  { %221 = vadd.xlane.f32.xlu0 %v220_v23 }
 0x1ee   :  { %v219_v24 = vpop.xlane.xlu0 %218 }
 0x1ef   :  { %v224_v25 = vmul.f32 0.03125, %v219_v24 }
 0x1f1   :  { %v226_v26 = vsub.f32 %v215_v19, %v224_v25 }
 0x1f2   :  { %v222_v27 = vpop.xlane.xlu0 %221 }
 0x1f3   :  { %v225_v28 = vmul.f32 0.03125, %v222_v27  ;;  %v228_v29 = vmul.f32 %v226_v26, %v226_v26 }
 0x1f5   :  { %v227_v30 = vsub.f32 %v216_v22, %v225_v28  ;;  %v230_v31 = vsel %vm112_vm1, %v228_v29, 0.0 }
 0x1f6   :  { %231 = vadd.xlane.f32.xlu1 %v230_v31 }
 0x1f7   :  { %v229_v32 = vmul.f32 %v227_v30, %v227_v30 }
 0x1f9   :  { %v233_v33 = vsel %vm112_vm1, %v229_v32, 0.0 }
 0x1fa   :  { %234 = vadd.xlane.f32.xlu1 %v233_v33 }
 0x283   :  { %v232_v34 = vpop.xlane.xlu1 %231 }
 0x284   :  { %v236_v35 = vmul.f32 0.03125, %v232_v34 }
 0x286   :  { %v238_v36 = vadd.f32 1e-05, %v236_v35 }
 0x287   :  { %v235_v37 = vpop.xlane.xlu1 %234 }
 0x288   :  { %343 = vrsqrt.f32 %v238_v36  ;;  %v237_v38 = vmul.f32 0.03125, %v235_v37 }
 0x28a   :  { %v239_v39 = vadd.f32 1e-05, %v237_v38 }
 0x28c   :  { %345 = vrsqrt.f32 %v239_v39 }
 0x292   :  { %v344_v40 = vpop.eup %343 }
 0x293   :  { %v242_v42 = vmul.f32 %v344_v40, %v226_v26 }
 0x295   :  { %v251_v44 = vmul.f32 %v300_v41, %v242_v42 }
 0x296   :  { %v346_v45 = vpop.eup %345 }
 0x297   :  { %v243_v46 = vmul.f32 %v346_v45, %v227_v30  ;;  %v260_v47 = vadd.f32 %v301_v43, %v251_v44 }
 0x299   :  { %v252_v48 = vmul.f32 %v300_v41, %v243_v46  ;;  %v304_v49 = vpack.c.bf16 %v260_v47, %v260_v47 }
 0x29b   :  { %v261_v50 = vadd.f32 %v301_v43, %v252_v48  ;;  %271 = vst.msk [vmem:[#allocation14] sm:$0xf] %vm270_vm3, %v304_v49 }
 0x29d   :  { %v305_v51 = vpack.c.bf16 %v261_v50, %v261_v50 }
 0x29f   :  { %272 = vst.msk [vmem:[#allocation14 + $0x4] sm:$0xf] %vm270_vm3, %v305_v51 }
 0x2a0   :  { %490 = shalt.err (!%p487_p10)
}
 0x2a1   :  { %s491_s27 = scalar_lea.hbm %s674_s6, 128 }
 0x2a2   :  { %p492_p11 = scmp.ne.s32.totalorder %s674_s6, %s491_s27  ;;  %p495_p12 = scmp.lt.u32.totalorder %s491_s27, %s674_s6 }
 0x2a4   :  { %p497_p13 = pnand %p495_p12, %p492_p11 }
 0x2a6   :  { %500 = shalt.err (!%p497_p13)
}
 0x2a7   :  { %284 = dma.vmem_to_hbm [thread:$0]  %s279_s21, 128, %s674_s6, [#allocation5], %s513_s9, %s513_s9, %s514_s10  }
 0x2a8   :  { %509 = dma.done.wait [#allocation5], 128  }
 0x2a9   :  { %510 = vsyncadd [#allocation5], 4294967168 }
 0x2aa   :  { %288 = vsyncpa [#allocation4], 1 }
 0x2ab   :  { %289 = vsyncpa [#allocation7], 1 }
 0x2ac   :  { %290 = vsyncpa [#allocation10], 1 }
 0x2ad   :  { %291 = vsyncpa [#allocation13], 1 }
 0x2ae   :  { %292 = vsyncpa [#allocation5], 1 }

// kernel: transformer_forward.42
= control target key start
LH: loop header
LB: loop body
LE: loop exit
PB: predicated region body
PF: predicated region fallthrough
CT: control target
= control target key end

     0   :  { %8 = vsyncpa [#allocation4], 0  ;;  %s399_s0 = inlined_call_operand.hbm [shape: bf16[16,32], index: 0, kind: input, shape index: {}]   ;;  %s400_s1 = inlined_call_operand.hbm [shape: bf16[32,32], index: 1, kind: input, shape index: {}]   ;;  %s401_s2 = inlined_call_operand.hbm [shape: f32[1,32], index: 2, kind: input, shape index: {}]   ;;  %s402_s3 = inlined_call_operand.hbm [shape: bf16[16,32], index: 3, kind: output, shape index: {}]  }
   0x1   :  { %9 = vsyncpa [#allocation7], 0 }
   0x2   :  { %10 = vsyncpa [#allocation5], 0  ;;  %s302_s12 = smov [#allocation6]   ;;  %s303_s14 = smov [#allocation3]  }
   0x3   :  { %s28_s13 = sshll.u32 %s302_s12, 4  ;;  %s16_s15 = sshll.u32 %s303_s14, 4  ;;  %s29_s13 = int_to_ptr.vmem [resolvable:$true] %s28_s13  ;;  %s330_s15 = int_to_ptr.vmem [resolvable:$true] %s16_s15 }
   0x4   :  { %s208_s18 = scalar_lea.hbm %s400_s1, 256 }
   0x5   :  { %p209_p0 = scmp.ne.s32.totalorder %s400_s1, %s208_s18  ;;  %p212_p1 = scmp.lt.u32.totalorder %s208_s18, %s400_s1 }
   0x7   :  { %p214_p2 = pnand %p212_p1, %p209_p0 }
   0x9   :  { %217 = shalt.err (!%p214_p2)
}
   0xa   :  { %s218_s23 = scalar_lea.vmem %s29_s13, 256  ;;  %p223_p4 = scmp.lt.s32.totalorder %s29_s13, %s29_s13 }
   0xb   :  { %p219_p3 = scmp.ne.s32.totalorder %s29_s13, %s218_s23  ;;  %p224_p5 = scmp.lt.s32.totalorder %s218_s23, %s218_s23 }
   0xd   :  { %p225_p6 = por %p224_p5, %p223_p4 }
   0xf   :  { %p226_p7 = pnand %p225_p6, %p219_p3 }
  0x11   :  { %229 = shalt.err (!%p226_p7)
}
  0x12   :  { %s304_s24 = smov 64   ;;  %s305_s25 = smov 4  }
  0x13   :  { %34 = dma.hbm_to_vmem [thread:$0]  %s400_s1, 256, %s29_s13, [#allocation7], %s304_s24, %s304_s24, %s305_s25  }
  0x14   :  { %s230_s30 = scalar_lea.hbm %s399_s0, 128 }
  0x15   :  { %p231_p8 = scmp.ne.s32.totalorder %s399_s0, %s230_s30  ;;  %p234_p9 = scmp.lt.u32.totalorder %s230_s30, %s399_s0 }
  0x17   :  { %p236_p10 = pnand %p234_p9, %p231_p8 }
  0x19   :  { %239 = shalt.err (!%p236_p10)
}
  0x1a   :  { %s240_s8 = scalar_lea.vmem %s330_s15, 128  ;;  %p245_p12 = scmp.lt.s32.totalorder %s330_s15, %s330_s15 }
  0x1b   :  { %p241_p11 = scmp.ne.s32.totalorder %s330_s15, %s240_s8  ;;  %p246_p13 = scmp.lt.s32.totalorder %s240_s8, %s240_s8 }
  0x1d   :  { %p247_p0 = por %p246_p13, %p245_p12 }
  0x1f   :  { %p248_p1 = pnand %p247_p0, %p241_p11 }
  0x21   :  { %251 = shalt.err (!%p248_p1)
}
  0x22   :  { %22 = dma.hbm_to_vmem [thread:$0]  %s399_s0, 128, %s330_s15, [#allocation4], %s304_s24, %s304_s24, %s305_s25  }
  0x23   :  { %s306_s10 = smov [#allocation8]   ;;  %s252_s14 = scalar_lea.hbm %s401_s2, 16 }
  0x24   :  { %s41_s11 = sshll.u32 %s306_s10, 4  ;;  %p253_p2 = scmp.ne.s32.totalorder %s401_s2, %s252_s14  ;;  %s42_s11 = int_to_ptr.vmem [resolvable:$true] %s41_s11 }
  0x25   :  { %p256_p3 = scmp.lt.u32.totalorder %s252_s14, %s401_s2 }
  0x27   :  { %p258_p4 = pnand %p256_p3, %p253_p2 }
  0x29   :  { %261 = shalt.err (!%p258_p4)
}
  0x2a   :  { %s262_s20 = scalar_lea.vmem %s42_s11, 16  ;;  %s266_s0 = scalar_lea.vmem %s42_s11, 32 }
  0x2b   :  { %p263_p5 = scmp.ne.s32.totalorder %s42_s11, %s262_s20  ;;  %p267_p6 = scmp.lt.s32.totalorder %s42_s11, %s42_s11 }
  0x2c   :  { %p268_p7 = scmp.lt.s32.totalorder %s266_s0, %s262_s20 }
  0x2e   :  { %p269_p8 = por %p268_p7, %p267_p6 }
  0x30   :  { %p270_p9 = pnand %p269_p8, %p263_p5 }
  0x32   :  { %273 = shalt.err (!%p270_p9)
}
  0x33   :  { %44 = dma.hbm_to_vmem [thread:$0]  %s401_s2, 16, %s42_s11, [#allocation7]  }
  0x34   :  { %296 = dma.done.wait [#allocation4], 128  }
  0x35   :  { %297 = vsyncadd [#allocation4], 4294967168 }
  0x36   :  { %298 = dma.done.wait [#allocation7], 272  }
  0x37   :  { %299 = vsyncadd [#allocation7], 4294967024  ;;  %v307_v0 = vmov 0.0   ;;  %vm308_vm0 = vmmov 0   ;;  %v205_v1 = vld [vmem:[#allocation6] sm:$0xff]   ;;  %v206_v2 = vld [vmem:[#allocation6 + $0x8] sm:$0xff]  }
  0x38   :  { %189 = vmatprep.subr.bf16.mxu0 %v307_v0  ;;  %193 = vmatprep.mubr.msk.bf16.mxu0 %vm308_vm0, %v307_v0  ;;  %vm66_vm1 = vcmask 261120   ;;  %v177_v3 = vld [vmem:[#allocation8] ss:$0 sm:$0xff]  ;;  %v207_v4 = vld [vmem:[#allocation3] sm:$0xff]   ;;  %vm156_vm2 = vcmask 257024   ;;  %s309_s2 = smov [#allocation9]  }
  0x39   :  { %190 = vmatpush3.bf16.msra.mxu0 %v205_v1  ;;  %67 = vst.msk [vmem:[#allocation2] sm:$0xff] %vm66_vm1, %v177_v3  ;;  %68 = vst.msk [vmem:[#allocation2 + $0x8] sm:$0xff] %vm66_vm1, %v177_v3  ;;  %s164_s22 = sshll.u32 %s309_s2, 4  ;;  %s165_s22 = int_to_ptr.vmem [resolvable:$true] %s164_s22 }
  0x3a   :  { %191 = vmatprep.subr.bf16.mxu0 %v307_v0  ;;  %s274_s23 = scalar_lea.vmem %s165_s22, 128  ;;  %p279_p11 = scmp.lt.s32.totalorder %s165_s22, %s165_s22 }
  0x3b   :  { %p275_p10 = scmp.ne.s32.totalorder %s165_s22, %s274_s23  ;;  %p280_p12 = scmp.lt.s32.totalorder %s274_s23, %s274_s23 }
  0x3d   :  { %192 = vmatpush3.bf16.msra.mxu0 %v206_v2  ;;  %p281_p13 = por %p280_p12, %p279_p11 }
  0x3f   :  { %p282_p0 = pnand %p281_p13, %p275_p10 }
  0x40   :  { %194 = vmatmul.mubr.msk.bf16.vlgmr.msra.gmra.mrb[0].mxu0 %vm66_vm1, %v207_v4  ;;  %v69_v5 = vld [vmem:[#allocation2] sm:$0xff]  ;;  %v70_v7 = vld [vmem:[#allocation2 + $0x8] sm:$0xff] }
 0x113   :  { %v132_v6 = vpop.f32.mrb[0].mxu0 }
 0x114   :  { %v139_v8 = vadd.f32 %v132_v6, %v69_v5  ;;  %v195_v9 = vpop.f32.mrb[1].mxu0 }
 0x115   :  { %v135_v10 = vpop.f32.mrb[2].mxu0 }
 0x116   :  { %141 = vst.msk [vmem:[#allocation2] sm:$0xff] %vm66_vm1, %v139_v8  ;;  %v140_v11 = vadd.f32 %v135_v10, %v70_v7  ;;  %v196_v12 = vpop.f32.mrb[3].mxu0 }
 0x118   :  { %142 = vst.msk [vmem:[#allocation2 + $0x8] sm:$0xff] %vm66_vm1, %v140_v11 }
 0x11d   :  { %v146_v13 = vld [vmem:[#allocation2] sm:$0xff] }
 0x11e   :  { %v184_v14 = vpack.c.bf16 %v146_v13, %v146_v13 }
 0x11f   :  { %v147_v15 = vld [vmem:[#allocation2 + $0x8] sm:$0xff] }
 0x120   :  { %v185_v16 = vpack.c.bf16 %v147_v15, %v147_v15  ;;  %157 = vst.msk [vmem:[#allocation9] sm:$0xf] %vm156_vm2, %v184_v14 }
 0x122   :  { %158 = vst.msk [vmem:[#allocation9 + $0x4] sm:$0xf] %vm156_vm2, %v185_v16 }
 0x123   :  { %285 = shalt.err (!%p282_p0)
}
 0x124   :  { %s286_s28 = scalar_lea.hbm %s402_s3, 128 }
 0x125   :  { %p287_p1 = scmp.ne.s32.totalorder %s402_s3, %s286_s28  ;;  %p290_p2 = scmp.lt.u32.totalorder %s286_s28, %s402_s3 }
 0x127   :  { %p292_p3 = pnand %p290_p2, %p287_p1 }
 0x129   :  { %295 = shalt.err (!%p292_p3)
}
 0x12a   :  { %170 = dma.vmem_to_hbm [thread:$0]  %s165_s22, 128, %s402_s3, [#allocation5], %s304_s24, %s304_s24, %s305_s25  }
 0x12b   :  { %300 = dma.done.wait [#allocation5], 128  }
 0x12c   :  { %301 = vsyncadd [#allocation5], 4294967168 }
 0x12d   :  { %174 = vsyncpa [#allocation4], 1 }
 0x12e   :  { %175 = vsyncpa [#allocation7], 1 }
 0x12f   :  { %176 = vsyncpa [#allocation5], 1 }

// kernel: transformer_forward.40
= control target key start
LH: loop header
LB: loop body
LE: loop exit
PB: predicated region body
PF: predicated region fallthrough
CT: control target
= control target key end

     0   :  { %s1656_s0 = inlined_call_operand.hbm [shape: bf16[2,8,32], index: 0, kind: input, shape index: {}]   ;;  %s1657_s1 = inlined_call_operand.hbm [shape: bf16[2,8,64], index: 1, kind: input, shape index: {}]   ;;  %s1658_s2 = inlined_call_operand.hbm [shape: f32[2,1,8], index: 2, kind: input, shape index: {}]   ;;  %s1659_s3 = inlined_call_operand.hbm [shape: bf16[2,8,32], index: 3, kind: output, shape index: {}]  }
   0x1   :  { %1664 = sst [smem:[#allocation13_spill]] %s1657_s1 }
   0x2   :  { %8 = vsyncpa [#allocation3], 0 }
   0x3   :  { %10 = vsyncpa [#allocation3 + $0x1], 0 }
   0x4   :  { %11 = vsyncpa [#allocation6], 0 }
   0x5   :  { %13 = vsyncpa [#allocation6 + $0x1], 0 }
   0x6   :  { %14 = vsyncpa [#allocation4], 0 }
   0x7   :  { %16 = vsyncpa [#allocation4 + $0x1], 0  ;;  %s1312_s12 = smov 0   ;;  %s1314_s13 = smov 0  }
   0x8   :  { %s1316_s14 = smov 0   ;;  %s1318_s15 = smov 0  }
   0x9   :  { %s1320_s16 = smov 0   ;;  %s1322_s17 = smov 0  }
   0xa LB: > { %s1343_s18 = sadd.s32 4294967295, %s1273_s17   ;;  %s904_s19 = sadd.s32 4294967294, %s1273_s17   ;;  %s1273_s17 = sphi %s1322_s17, %s22_s17   ;;  %s1269_s16 = sphi %s1320_s16, %s1689_s16   ;;  %s1265_s15 = sphi %s1318_s15, %s1688_s15   ;;  %s1261_s14 = sphi %s1316_s14, %s1687_s14   ;;  %s1257_s13 = sphi %s1314_s13, %s1686_s13   ;;  %s1253_s12 = sphi %s1312_s12, %s1685_s12  }
   0xb   : > { %s34_s20 = sadd.s32 1, %s1269_s16  ;;  %s43_s21 = sadd.s32 1, %s1261_s14 }
   0xc   : > { %p36_p0 = scmp.ge.s32.totalorder %s34_s20, 2  ;;  %p50_p1 = scmp.ne.s32.totalorder %s1261_s14, %s1257_s13 }
   0xd   : > { %p51_p2 = scmp.eq.s32.totalorder %s1273_s17, 0  ;;  %p56_p3 = scmp.ne.s32.totalorder %s1257_s13, %s1253_s12 }
   0xe   : > { %s1691_s20 = smov (%p36_p0, %s34_s20), 0  ;;  %p57_p5 = scmp.eq.s32.totalorder %s1343_s18, 0 }
   0xf   : > { %1665 = sst [smem:[#allocation12_spill]] %s1691_s20  ;;  %p1355_p4 = por %p51_p2, %p50_p1 }
  0x10   : > { %s38_s23 = ssub.s32 %s1269_s16, %s1691_s20  ;;  %p134_p6 = scmp.eq.s32.totalorder %s1343_s18, 1 }
  0x11   : > { %p41_p7 = scmp.eq.s32.totalorder %s38_s23, 0  ;;  %p1363_p8 = por %p57_p5, %p56_p3 }
  0x12   : > { %p1367_p9 = por %p134_p6, %p50_p1  ;;  %p140_p10 = scmp.eq.s32.totalorder %s904_s19, 1 }
  0x13   : > { %s1667_s24 = scalar_select %p1363_p8, 1, 0 }
  0x14   : > { %s1668_s25 = scalar_select %p1367_p9, 1, 0 }
  0x15   : > { %s1372_s26 = scalar_select %p41_p7, %s1261_s14, %s43_s21  }
  0x16   : > { %p1374_p11 = por %p140_p10, %p56_p3  ;;  %p1016_p13 = scmp.lt.s32.totalorder %s1273_s17, 2 }
  0x17   : > { %s1381_s28 = sand.u32 1, %s1261_s14   ;;  %s908_s30 = sshll.u32 %s1269_s16, 6 }
  0x18   : > { %s1669_s27 = scalar_select %p1374_p11, 1, 0 }
  0x19   : > { %s907_s29 = sshll.u32 %s1381_s28, 2  ;;  %p1387_p0 = pnand %p1016_p13, %p1355_p4 }
  0x1a   : > { %s179_s5 = sand.u32 1, %s1273_s17   ;;  %s1671_s1 = sld [smem:[#allocation13_spill]] }
  0x1b   : > { %s1670_s4 = scalar_select %p1387_p0, 1, 0 }
  0x1c   : > { %s183_s9 = scalar_lea.vmem [#allocation5], %s907_s29  ;;  %s1405_s11 = scalar_lea.sflag [#allocation6], %s179_s5 }
  0x1d   : > { %s190_s10 = sshll.u32 %s183_s9, 4  ;;  %p1411_p4 = pneg %p1387_p0  ;;  %s1402_s10 = int_to_ptr.vmem [resolvable:$true] %s190_s10 }
  0x20   : > { %s1397_s8 = scalar_lea.hbm %s1671_s1, %s908_s30  ;;  %s1102_s6 = scalar_lea.hbm %s1671_s1, 128 }
  0x21   : > { %s1097_s19 = scalar_lea.hbm %s1397_s8, 64  ;;  %p1103_p7 = scmp.lt.u32.totalorder %s1397_s8, %s1671_s1 }
  0x22   : > { %p1098_p3 = scmp.ne.s32.totalorder %s1397_s8, %s1097_s19  ;;  %p1104_p10 = scmp.lt.u32.totalorder %s1102_s6, %s1097_s19 }
  0x23   : > { %p1106_p12 = scmp.lt.u32.totalorder %s1097_s19, %s1397_s8 }
  0x24   : > { %p1100_p5 = pnand %p1411_p4, %p1098_p3  ;;  %p1105_p13 = por %p1104_p10, %p1103_p7 }
  0x26   : > { %p1101_p6 = pneg %p1100_p5  ;;  %p1107_p1 = por %p1106_p12, %p1105_p13 }
  0x28   : > { %p1108_p2 = pnand %p1107_p1, %p1101_p6 }
  0x2a   : > { %1111 = shalt.err (!%p1108_p2)
}
  0x2b   : > { %s1112_s5 = scalar_lea.vmem %s1402_s10, 64  ;;  %s1275_s22 = smov [#allocation5]  }
  0x2c   : > { %p1113_p3 = scmp.ne.s32.totalorder %s1402_s10, %s1112_s5  ;;  %s1117_s23 = sshll.u32 %s1275_s22, 4  ;;  %s1118_s23 = int_to_ptr.vmem [resolvable:$false] %s1117_s23 }
  0x2d   : > { %s1119_s7 = scalar_lea.vmem %s1118_s23, 128  ;;  %p1120_p9 = scmp.lt.s32.totalorder %s1402_s10, %s1118_s23 }
  0x2e   : > { %p1115_p5 = pnand %p1113_p3, %p1411_p4  ;;  %p1121_p8 = scmp.lt.s32.totalorder %s1119_s7, %s1112_s5 }
  0x30   : > { %p1116_p11 = pneg %p1115_p5  ;;  %p1122_p7 = por %p1121_p8, %p1120_p9 }
  0x32   : > { %p1123_p10 = pnand %p1122_p7, %p1116_p11 }
  0x34   : > { %1126 = shalt.err (!%p1123_p10)
}
  0x35   : > { %1008 = dma.hbm_to_vmem [thread:$0]  (!%p1387_p0), %s1397_s8, 64, %s1402_s10, %s1405_s11  }
  0x36   : > { %p1673_p12 = scmp.lt.s32.totalorder %s1273_s17, 3  ;;  %p1674_p1 = scmp.ge.s32.totalorder %s1273_s17, 1 }
  0x37   : > { %s1448_s5 = scalar_lea.hbm %s1656_s0, %s908_s30  ;;  %s164_s22 = scalar_lea.vmem [#allocation2], %s907_s29 }
  0x38   : > { %p1439_p2 = pnand %p1674_p1, %p1673_p12  ;;  %s172_s23 = sshll.u32 %s164_s22, 4  ;;  %s1452_s23 = int_to_ptr.vmem [resolvable:$true] %s172_s23 }
  0x39   : > { %s911_s8 = sshll.u32 %s1269_s16, 4  ;;  %s161_s10 = scalar_lea.sflag [#allocation3], %s1381_s28 }
  0x3a   : > { %s1675_s19 = scalar_select %p1439_p2, 1, 0 }
  0x3b   : > { %s1127_s7 = scalar_lea.hbm %s1448_s5, 64  ;;  %s1132_s30 = scalar_lea.hbm %s1656_s0, 128 }
  0x3c   : > { %p1128_p8 = scmp.ne.s32.totalorder %s1448_s5, %s1127_s7  ;;  %p1133_p6 = scmp.lt.u32.totalorder %s1448_s5, %s1656_s0 }
  0x3d   : > { %p1134_p13 = scmp.lt.u32.totalorder %s1132_s30, %s1127_s7  ;;  %p1136_p5 = scmp.lt.u32.totalorder %s1127_s7, %s1448_s5 }
  0x3e   : > { %p1130_p9 = pnand %p1128_p8, %p1411_p4 }
  0x3f   : > { %p1135_p3 = por %p1134_p13, %p1133_p6 }
  0x40   : > { %p1131_p11 = pneg %p1130_p9 }
  0x41   : > { %p1137_p7 = por %p1136_p5, %p1135_p3 }
  0x43   : > { %p1138_p10 = pnand %p1137_p7, %p1131_p11 }
  0x45   : > { %1141 = shalt.err (!%p1138_p10)
}
  0x46   : > { %s1142_s29 = scalar_lea.vmem %s1452_s23, 64  ;;  %s1276_s1 = smov [#allocation2]  }
  0x47   : > { %p1143_p12 = scmp.ne.s32.totalorder %s1452_s23, %s1142_s29  ;;  %s1147_s22 = sshll.u32 %s1276_s1, 4  ;;  %s1148_s22 = int_to_ptr.vmem [resolvable:$false] %s1147_s22 }
  0x48   : > { %s1149_s20 = scalar_lea.vmem %s1148_s22, 128  ;;  %p1150_p9 = scmp.lt.s32.totalorder %s1452_s23, %s1148_s22 }
  0x49   : > { %p1145_p1 = pnand %p1143_p12, %p1411_p4  ;;  %p1151_p2 = scmp.lt.s32.totalorder %s1149_s20, %s1142_s29 }
  0x4b   : > { %p1146_p8 = pneg %p1145_p1  ;;  %p1152_p6 = por %p1151_p2, %p1150_p9 }
  0x4d   : > { %p1153_p13 = pnand %p1152_p6, %p1146_p8 }
  0x4f   : > { %1156 = shalt.err (!%p1153_p13)
}
  0x50   : > { %1005 = dma.hbm_to_vmem [thread:$0]  (!%p1387_p0), %s1448_s5, 64, %s1452_s23, %s161_s10  }
  0x51   : > { %s1482_s30 = scalar_lea.hbm %s1658_s2, %s911_s8  ;;  %s200_s9 = scalar_lea.vmem [#allocation7], %s1381_s28 }
  0x52   : > { %s207_s29 = sshll.u32 %s200_s9, 4  ;;  %s1157_s1 = scalar_lea.hbm %s1482_s30, 16  ;;  %s208_s29 = int_to_ptr.vmem [resolvable:$true] %s207_s29 }
  0x53   : > { %p1158_p2 = scmp.ne.s32.totalorder %s1482_s30, %s1157_s1  ;;  %s1162_s23 = scalar_lea.hbm %s1658_s2, 32 }
  0x54   : > { %p1163_p5 = scmp.lt.u32.totalorder %s1482_s30, %s1658_s2  ;;  %p1164_p7 = scmp.lt.u32.totalorder %s1162_s23, %s1157_s1 }
  0x55   : > { %p1160_p11 = pnand %p1158_p2, %p1411_p4  ;;  %p1166_p12 = scmp.lt.u32.totalorder %s1157_s1, %s1482_s30 }
  0x56   : > { %p1165_p10 = por %p1164_p7, %p1163_p5 }
  0x57   : > { %p1161_p3 = pneg %p1160_p11 }
  0x58   : > { %p1167_p1 = por %p1166_p12, %p1165_p10 }
  0x5a   : > { %p1168_p8 = pnand %p1167_p1, %p1161_p3 }
  0x5c   : > { %1171 = shalt.err (!%p1168_p8)
}
  0x5d   : > { %s1172_s28 = scalar_lea.vmem %s208_s29, 16  ;;  %s1277_s8 = smov [#allocation7]  }
  0x5e   : > { %p1173_p9 = scmp.ne.s32.totalorder %s208_s29, %s1172_s28  ;;  %s1177_s7 = sshll.u32 %s1277_s8, 4  ;;  %s1178_s7 = int_to_ptr.vmem [resolvable:$false] %s1177_s7 }
  0x5f   : > { %s1179_s6 = scalar_lea.vmem %s1178_s7, 32  ;;  %p1180_p2 = scmp.lt.s32.totalorder %s208_s29, %s1178_s7 }
  0x60   : > { %p1175_p6 = pnand %p1173_p9, %p1411_p4  ;;  %p1181_p11 = scmp.lt.s32.totalorder %s1179_s6, %s1172_s28 }
  0x62   : > { %p1176_p13 = pneg %p1175_p6  ;;  %p1182_p0 = por %p1181_p11, %p1180_p2 }
  0x64   : > { %p1183_p5 = pnand %p1182_p0, %p1176_p13 }
  0x66   : > { %1186 = shalt.err (!%p1183_p5)
}
  0x67   : > { %p1676_p7 = scmp.ne.s32.totalorder %s1670_s4, 0  ;;  %p1677_p3 = scmp.ne.s32.totalorder %s1675_s19, 0 }
  0x68   : > { %s1506_s21 = sand.u32 (!%p1677_p3), 1, %s1257_s13   ;;  %p1678_p0 = scmp.ne.s32.totalorder (!%p1677_p3), %s1667_s24, 0 }
  0x69   : > { %1011 = dma.hbm_to_vmem [thread:$0]  (!%p1676_p7), %s1482_s30, 16, %s208_s29, %s1405_s11  }
  0x6a   : > { %216 = sbr.rel (%p1677_p3) target bundleno = 1247 (0x4df), region = 32  ;;  %s1509_s9 = sshll.u32 (!%p1677_p3), %s1506_s21, 2 }
  0x6b   : > { %s219_s1 = scalar_lea.sflag (!%p1677_p3), [#allocation3], %s1506_s21  ;;  %s222_s22 = scalar_lea.vmem (!%p1677_p3), [#allocation2], %s1509_s9 }
  0x71   : > { %1240 = dma.done.wait (%p1678_p0), %s219_s1, 64  }
  0x72   : > { %1242 = vsyncadd (%p1678_p0), %s219_s1, 4294967232  ;;  %s227_s4 = sand.u32 1, %s1343_s18   ;;  %s231_s19 = scalar_lea.vmem [#allocation5], %s1509_s9 }
  0x73   : > { %s228_s11 = scalar_lea.sflag [#allocation6], %s227_s4 }
  0x74   : > { %1244 = dma.done.wait (%p1678_p0), %s228_s11, 80  }
  0x75   : > { %1246 = vsyncadd (%p1678_p0), %s228_s11, 4294967216  ;;  %v1278_v0 = vmov 0.0   ;;  %vm1279_vm0 = vmmov 0   ;;  %vm291_vm1 = vcmask 64512   ;;  %v273_v1 = vld [vmem:[%s231_s19] sm:$0xf]  ;;  %v276_v6 = vlaneseq }
  0x76   : > { %946 = vmatprep.subr.bf16.mxu0 %v1278_v0  ;;  %948 = vmatprep.mubr.msk.bf16.mxu0 %vm1279_vm0, %v1278_v0  ;;  %v296_v2 = vsel %vm291_vm1, %v273_v1, 0  ;;  %v272_v3 = vld [vmem:[%s222_s22] sm:$0xf]  ;;  %v1534_v4 = vcombine.low %v273_v1, %v273_v1  ;;  %s1280_s18 = smov 120   ;;  %s1281_s24 = smov 112   ;;  %v1283_v10 = vmov 0  }
  0x77   : > { %952 = vmatprep.subr.bf16.mxu1 %v1278_v0  ;;  %954 = vmatprep.mubr.msk.bf16.mxu1 %vm1279_vm0, %v1278_v0  ;;  %v919_v5 = vcombine.low %v272_v3, %v272_v3  ;;  %s1282_s30 = smov 104   ;;  %s239_s29 = scalar_lea.vmem [#allocation7], %s1506_s21  ;;  %v277_v8 = vshrl.u32 %v276_v6, 7  ;;  %v282_v12 = vand.u32 127, %v276_v6  ;;  %vm359_vm6 = vcmask 1043456  }
  0x78   : > { %947 = vmatpush3.bf16.xpose.msra.mxu0 %v296_v2  ;;  %410 = vrot.lane.b32.xlu1 %v1534_v4, %s1280_s18  ;;  %v274_v7 = vld [vmem:[%s239_s29] sm:$0x1]  ;;  %s1284_s5 = smov 96   ;;  %s1285_s23 = smov 88   ;;  %vm759_vm7 = vcmask 130048   ;;  %vm762_vm8 = vcmask 195584  }
  0x79   : > { %964 = vmatprep.subr.bf16.mxu0 %v1278_v0  ;;  %vm275_vm2 = vcmp.gt.f32.partialorder %v274_v7, 0.0  ;;  %v287_v9 = vsub.s32 0, %v277_v8  ;;  %vm283_vm3 = vcmp.le.s32.totalorder %v282_v12, %v277_v8  ;;  %s1286_s10 = smov 72   ;;  %s1287_s20 = smov 80   ;;  %vm766_vm9 = vcmask 257024  }
  0x7a   : > { %v284_v11 = vsel %vm275_vm2, 1, %v1283_v10  ;;  %s1288_s28 = smov 8   ;;  %s1289_s8 = smov 16  }
  0x7b   : > { %v288_v13 = vrot.slane %v284_v11, %v287_v9  ;;  %s1290_s7 = smov 24   ;;  %s927_s6 = sshll.u32 %s1265_s15, 6 }
  0x7c   : > { %408 = vrot.lane.b32.xlu1 %v919_v5, %s1280_s18  ;;  %s270_s1 = scalar_lea.vmem [#allocation8], %s1509_s9  ;;  %s1607_s19 = scalar_lea.hbm %s1659_s3, %s927_s6 }
  0x7d   : > { %vm289_vm4 = vcmp.eq.s32.totalorder %v288_v13, 1  ;;  %s783_s22 = sshll.u32 %s270_s1, 4  ;;  %s769_s15 = scalar_lea.sflag [#allocation4], %s1506_s21  ;;  %s1609_s22 = int_to_ptr.vmem [resolvable:$true] %s783_s22 }
  0x7e   : > { %vm1540_vm5 = vmand %vm289_vm4, %vm283_vm3  ;;  %s1187_s9 = scalar_lea.vmem %s1609_s22, 64  ;;  %p1681_p10 = scmp.ne.s32.totalorder %s1668_s25, 0 }
  0x7f   : > { %949 = vmatmul.mubr.msk.bf16.vlgmr.msra.gmra.mrb[0].mxu0 %vm291_vm1, %v272_v3  ;;  %p1188_p4 = scmp.ne.s32.totalorder %s1609_s22, %s1187_s9  ;;  %s1291_s18 = smov [#allocation8]  }
  0x80   : > { %966 = vmatprep.mubr.msk.bf16.mxu0 %vm1279_vm0, %v1278_v0  ;;  %523 = vrot.lane.b32.xlu1 %v1534_v4, %s1281_s24 }
  0x81   : > { %p1189_p12 = pnand %p1188_p4, %p1681_p10 }
  0x83   : > { %p1190_p1 = pneg %p1189_p12 }
  0x84   : > { %521 = vrot.lane.b32.xlu1 %v919_v5, %s1281_s24  ;;  %s1191_s24 = sshll.u32 %s1291_s18, 4  ;;  %s1192_s24 = int_to_ptr.vmem [resolvable:$false] %s1191_s24 }
  0x85   : > { %p1194_p8 = scmp.lt.s32.totalorder %s1609_s22, %s1192_s24 }
  0x88   : > { %636 = vrot.lane.b32.xlu1 %v1534_v4, %s1282_s30 }
  0x8c   : > { %634 = vrot.lane.b32.xlu1 %v919_v5, %s1282_s30  ;;  %s1193_s30 = scalar_lea.vmem %s1192_s24, 128 }
  0x8d   : > { %p1195_p9 = scmp.lt.s32.totalorder %s1193_s30, %s1187_s9 }
  0x8f   : > { %p1196_p6 = por %p1195_p9, %p1194_p8 }
  0x91   : > { %p1197_p13 = pnand %p1196_p6, %p1190_p1 }
  0xea   : > { %v411_v27 = vpop.permute.xlu1 %410 }
  0xeb   : > { %v416_v30 = vsel %vm291_vm1, %v411_v27, 0 }
  0xee   : > { %v409_v28 = vpop.permute.xlu1 %408 }
  0xf2   : > { %v524_v32 = vpop.permute.xlu1 %523 }
  0xf3   : > { %v529_v34 = vsel %vm291_vm1, %v524_v32, 0 }
  0xf6   : > { %v522_v33 = vpop.permute.xlu1 %521 }
  0xfa   : > { %v637_v35 = vpop.permute.xlu1 %636 }
  0xfb   : > { %v642_v36 = vsel %vm291_vm1, %v637_v35, 0 }
  0xfe   : > { %v635_v37 = vpop.permute.xlu1 %634 }
 0x152   : > { %v332_v14 = vpop.f32.mrb[0].mxu0 }
 0x153   : > { %v338_v16 = vmul.f32 0.35355338, %v332_v14  ;;  %v950_v17 = vpop.f32.mrb[1].mxu0 }
 0x154   : > { %v335_v18 = vpop.f32.mrb[2].mxu0 }
 0x155   : > { %v951_v19 = vpop.f32.mrb[3].mxu0  ;;  %v339_v20 = vsel %vm1540_vm5, %v338_v16, -1e+10 }
 0x156   : > { %v340_v21 = vsel %vm291_vm1, %v339_v20, -inf }
 0x157   : > { %341 = vmax.xlane.f32.xlu0 %v340_v21 }
 0x16d   : > { %354 = vrot.lane.b32.xlu0 %v1534_v4, %s1284_s5 }
 0x1e4   : > { %v342_v22 = vpop.xlane.xlu0 %341 }
 0x1e5   : > { %v343_v23 = vsub.f32 %v339_v20, %v342_v22 }
 0x1e7   : > { %v344_v24 = vmul.f32 1.442695, %v343_v23 }
 0x1e8   : > { %v355_v25 = vpop.permute.xlu0 %354 }
 0x1e9   : > { %1081 = vpow2.f32 %v344_v24  ;;  %v361_v26 = vsel %vm359_vm6, %v355_v25, 0 }
 0x1ea   : > { %953 = vmatpush3.bf16.msra.mxu1 %v361_v26 }
 0x1eb   : > { %958 = vmatprep.subr.bf16.mxu1 %v1278_v0 }
 0x1f3   : > { %v1550_v29 = vpop.eup %1081 }
 0x1f4   : > { %v350_v31 = vpack.c.bf16 %v1550_v29, %v1550_v29  ;;  %v346_v15 = vsel %vm291_vm1, %v1550_v29, 0.0 }
 0x1f6   : > { %955 = vmatmul.mubr.msk.bf16.vlgmr.msra.gmra.mrb[0].mxu1 %vm291_vm1, %v350_v31 }
 0x1f7   : > { %959 = vmatpush3.bf16.xpose.msra.mxu1 %v416_v30  ;;  %960 = vmatprep.mubr.msk.bf16.mxu1 %vm1279_vm0, %v1278_v0 }
 0x1f8   : > { %970 = vmatprep.subr.bf16.mxu1 %v1278_v0 }
 0x1fe   : > { %961 = vmatmul.mubr.msk.bf16.vlgmr.msra.gmra.mrb[4].mxu1 %vm291_vm1, %v409_v28 }
 0x1ff   : > { %971 = vmatpush3.bf16.xpose.msra.mxu1 %v529_v34  ;;  %972 = vmatprep.mubr.msk.bf16.mxu1 %vm1279_vm0, %v1278_v0 }
 0x200   : > { %982 = vmatprep.subr.bf16.mxu1 %v1278_v0 }
 0x206   : > { %973 = vmatmul.mubr.msk.bf16.vlgmr.msra.gmra.mrb[8].mxu1 %vm291_vm1, %v522_v33 }
 0x207   : > { %983 = vmatpush3.bf16.xpose.msra.mxu1 %v642_v36  ;;  %984 = vmatprep.mubr.msk.bf16.mxu1 %vm1279_vm0, %v1278_v0 }
 0x20e   : > { %985 = vmatmul.mubr.msk.bf16.vlgmr.msra.gmra.mrb[12].mxu1 %vm291_vm1, %v635_v37 }
 0x2c9   : > { %v1569_v38 = vpop.f32.mrb[0].mxu1 }
 0x2ca   : > { %v956_v39 = vpop.f32.mrb[1].mxu1 }
 0x2cb   : > { %v400_v40 = vpop.f32.mrb[2].mxu1 }
 0x2cc   : > { %v957_v41 = vpop.f32.mrb[3].mxu1 }
 0x2d1   : > { %v452_v42 = vpop.f32.mrb[4].mxu1 }
 0x2d2   : > { %v458_v43 = vmul.f32 0.35355338, %v452_v42  ;;  %v962_v44 = vpop.f32.mrb[5].mxu1 }
 0x2d3   : > { %v455_v45 = vpop.f32.mrb[6].mxu1 }
 0x2d4   : > { %v963_v46 = vpop.f32.mrb[7].mxu1  ;;  %v459_v47 = vsel %vm1540_vm5, %v458_v43, -1e+10 }
 0x2d5   : > { %v460_v48 = vsel %vm291_vm1, %v459_v47, -inf }
 0x2d6   : > { %461 = vmax.xlane.f32.xlu1 %v460_v48 }
 0x2d9   : > { %v565_v49 = vpop.f32.mrb[8].mxu1 }
 0x2da   : > { %v571_v50 = vmul.f32 0.35355338, %v565_v49  ;;  %v974_v51 = vpop.f32.mrb[9].mxu1 }
 0x2db   : > { %v568_v52 = vpop.f32.mrb[10].mxu1 }
 0x2dc   : > { %v975_v53 = vpop.f32.mrb[11].mxu1  ;;  %v572_v54 = vsel %vm1540_vm5, %v571_v50, -1e+10 }
 0x2dd   : > { %v573_v55 = vsel %vm291_vm1, %v572_v54, -inf }
 0x2de   : > { %574 = vmax.xlane.f32.xlu0 %v573_v55 }
 0x2e1   : > { %v678_v56 = vpop.f32.mrb[12].mxu1 }
 0x2e2   : > { %v684_v57 = vmul.f32 0.35355338, %v678_v56  ;;  %v986_v58 = vpop.f32.mrb[13].mxu1 }
 0x2e3   : > { %v681_v59 = vpop.f32.mrb[14].mxu1 }
 0x2e4   : > { %v987_v60 = vpop.f32.mrb[15].mxu1  ;;  %v685_v61 = vsel %vm1540_vm5, %v684_v57, -1e+10 }
 0x2e5   : > { %v686_v62 = vsel %vm291_vm1, %v685_v61, -inf }
 0x2e6   : > { %687 = vmax.xlane.f32.xlu0 %v686_v62 }
 0x2e7   : > { %471 = vrot.lane.b32.xlu1 %v1534_v4, %s1285_s23 }
 0x2eb   : > { %697 = vrot.lane.b32.xlu1 %v1534_v4, %s1286_s10 }
 0x2fc   : > { %584 = vrot.lane.b32.xlu0 %v1534_v4, %s1287_s20 }
 0x363   : > { %v462_v63 = vpop.xlane.xlu1 %461 }
 0x364   : > { %v463_v1 = vsub.f32 %v459_v47, %v462_v63 }
 0x366   : > { %v464_v2 = vmul.f32 1.442695, %v463_v1 }
 0x367   : > { %v472_v3 = vpop.permute.xlu1 %471 }
 0x368   : > { %1083 = vpow2.f32 %v464_v2  ;;  %v477_v5 = vsel %vm359_vm6, %v472_v3, 0 }
 0x369   : > { %965 = vmatpush3.bf16.msra.mxu0 %v477_v5 }
 0x36a   : > { %976 = vmatprep.subr.bf16.mxu0 %v1278_v0 }
 0x36b   : > { %v575_v6 = vpop.xlane.xlu0 %574  ;;  %v698_v17 = vpop.permute.xlu1 %697 }
 0x36c   : > { %v576_v7 = vsub.f32 %v572_v54, %v575_v6  ;;  %v703_v21 = vsel %vm359_vm6, %v698_v17, 0 }
 0x36e   : > { %v577_v8 = vmul.f32 1.442695, %v576_v7 }
 0x370   : > { %1085 = vpow2.f32 %v577_v8 }
 0x372   : > { %v1084_v9 = vpop.eup %1083 }
 0x373   : > { %v688_v10 = vpop.xlane.xlu0 %687  ;;  %v466_v11 = vsel %vm291_vm1, %v1084_v9, 0.0  ;;  %v470_v12 = vpack.c.bf16 %v1084_v9, %v1084_v9 }
 0x374   : > { %v689_v4 = vsub.f32 %v685_v61, %v688_v10  ;;  %467 = vadd.xlane.f32.xlu1 %v466_v11 }
 0x375   : > { %967 = vmatmul.mubr.msk.bf16.vlgmr.msra.gmra.mrb[4].mxu0 %vm291_vm1, %v470_v12 }
 0x376   : > { %v690_v13 = vmul.f32 1.442695, %v689_v4  ;;  %978 = vmatprep.mubr.msk.bf16.mxu0 %vm1279_vm0, %v1278_v0 }
 0x377   : > { %v585_v14 = vpop.permute.xlu0 %584 }
 0x378   : > { %1087 = vpow2.f32 %v690_v13  ;;  %v590_v16 = vsel %vm359_vm6, %v585_v14, 0  ;;  %347 = vadd.xlane.f32.xlu1 %v346_v15 }
 0x379   : > { %977 = vmatpush3.bf16.msra.mxu0 %v590_v16 }
 0x37a   : > { %v1086_v18 = vpop.eup %1085  ;;  %988 = vmatprep.subr.bf16.mxu0 %v1278_v0 }
 0x37b   : > { %v579_v19 = vsel %vm291_vm1, %v1086_v18, 0.0  ;;  %v583_v20 = vpack.c.bf16 %v1086_v18, %v1086_v18 }
 0x37c   : > { %580 = vadd.xlane.f32.xlu0 %v579_v19 }
 0x37d   : > { %979 = vmatmul.mubr.msk.bf16.vlgmr.msra.gmra.mrb[8].mxu0 %vm291_vm1, %v583_v20 }
 0x37e   : > { %989 = vmatpush3.bf16.msra.mxu0 %v703_v21  ;;  %990 = vmatprep.mubr.msk.bf16.mxu0 %vm1279_vm0, %v1278_v0 }
 0x382   : > { %v1088_v22 = vpop.eup %1087 }
 0x383   : > { %v692_v23 = vsel %vm291_vm1, %v1088_v22, 0.0  ;;  %v696_v24 = vpack.c.bf16 %v1088_v22, %v1088_v22 }
 0x384   : > { %693 = vadd.xlane.f32.xlu0 %v692_v23 }
 0x385   : > { %991 = vmatmul.mubr.msk.bf16.vlgmr.msra.gmra.mrb[12].mxu0 %vm291_vm1, %v696_v24 }
 0x401   : > { %v468_v25 = vpop.xlane.xlu1 %467 }
 0x402   : > { %1089 = vrcp.f32 %v468_v25 }
 0x405   : > { %v348_v49 = vpop.xlane.xlu1 %347 }
 0x409   : > { %v581_v26 = vpop.xlane.xlu0 %580 }
 0x40a   : > { %1091 = vrcp.f32 %v581_v26 }
 0x40c   : > { %v1090_v27 = vpop.eup %1089 }
 0x411   : > { %v694_v32 = vpop.xlane.xlu0 %693 }
 0x412   : > { %1093 = vrcp.f32 %v694_v32 }
 0x413   : > { %1095 = vrcp.f32 %v348_v49 }
 0x414   : > { %v1092_v0 = vpop.eup %1091 }
 0x41c   : > { %v1094_v42 = vpop.eup %1093 }
 0x41d   : > { %v1096_v50 = vpop.eup %1095 }
 0x41e   : > { %v403_v51 = vmul.f32 %v1096_v50, %v1569_v38 }
 0x420   : > { %v404_v54 = vpack.c.bf16 %v403_v51, %v403_v51 }
 0x448   : > { %v513_v28 = vpop.f32.mrb[4].mxu0 }
 0x449   : > { %v519_v29 = vmul.f32 %v1090_v27, %v513_v28  ;;  %v968_v30 = vpop.f32.mrb[5].mxu0 }
 0x44a   : > { %v516_v31 = vpop.f32.mrb[6].mxu0 }
 0x44b   : > { %v520_v33 = vpack.c.bf16 %v519_v29, %v519_v29  ;;  %v969_v34 = vpop.f32.mrb[7].mxu0 }
 0x44d   : > { %748 = vrot.lane.b32.xlu0 %v520_v33, %s1288_s28 }
 0x450   : > { %v626_v35 = vpop.f32.mrb[8].mxu0 }
 0x451   : > { %v632_v36 = vmul.f32 %v1092_v0, %v626_v35  ;;  %v980_v37 = vpop.f32.mrb[9].mxu0 }
 0x452   : > { %v629_v39 = vpop.f32.mrb[10].mxu0 }
 0x453   : > { %v633_v40 = vpack.c.bf16 %v632_v36, %v632_v36  ;;  %v981_v41 = vpop.f32.mrb[11].mxu0 }
 0x455   : > { %751 = vrot.lane.b32.xlu1 %v633_v40, %s1289_s8 }
 0x458   : > { %v739_v43 = vpop.f32.mrb[12].mxu0 }
 0x459   : > { %v745_v44 = vmul.f32 %v1094_v42, %v739_v43  ;;  %v992_v45 = vpop.f32.mrb[13].mxu0 }
 0x45a   : > { %v742_v46 = vpop.f32.mrb[14].mxu0 }
 0x45b   : > { %v746_v47 = vpack.c.bf16 %v745_v44, %v745_v44  ;;  %v993_v48 = vpop.f32.mrb[15].mxu0 }
 0x45d   : > { %754 = vrot.lane.b32.xlu1 %v746_v47, %s1290_s7 }
 0x4bf   : > { %v749_v52 = vpop.permute.xlu0 %748 }
 0x4c0   : > { %v758_v55 = vsel %vm291_vm1, %v404_v54, %v749_v52 }
 0x4c7   : > { %v752_v53 = vpop.permute.xlu1 %751 }
 0x4c8   : > { %v761_v56 = vsel %vm759_vm7, %v758_v55, %v752_v53 }
 0x4cf   : > { %v755_v57 = vpop.permute.xlu1 %754 }
 0x4d0   : > { %v764_v38 = vsel %vm762_vm8, %v761_v56, %v755_v57 }
 0x4d1   : > { %767 = vst.msk [vmem:[%s270_s1] sm:$0xf] %vm766_vm9, %v764_v38 }
 0x4d2   : > { %1200 = shalt.err (!%p1197_p13)
}
 0x4d3   : > { %s1201_s21 = scalar_lea.hbm %s1607_s19, 64  ;;  %s1205_s23 = scalar_lea.hbm %s1659_s3, 128 }
 0x4d4   : > { %p1202_p2 = scmp.ne.s32.totalorder %s1607_s19, %s1201_s21  ;;  %p1206_p7 = scmp.lt.u32.totalorder %s1607_s19, %s1659_s3 }
 0x4d5   : > { %p1207_p3 = scmp.lt.u32.totalorder %s1205_s23, %s1201_s21  ;;  %p1209_p4 = scmp.lt.u32.totalorder %s1201_s21, %s1607_s19 }
 0x4d6   : > { %p1203_p11 = pnand %p1202_p2, %p1681_p10 }
 0x4d7   : > { %p1208_p0 = por %p1207_p3, %p1206_p7 }
 0x4d8   : > { %p1204_p5 = pneg %p1203_p11 }
 0x4d9   : > { %p1210_p12 = por %p1209_p4, %p1208_p0 }
 0x4db   : > { %p1211_p1 = pnand %p1210_p12, %p1204_p5 }
 0x4dd   : > { %1214 = shalt.err (!%p1211_p1)
}
 0x4de   : > { %1000 = dma.vmem_to_hbm [thread:$0]  (%p1681_p10), %s1609_s22, 64, %s1607_s19, %s769_s15  }
 0x4df PF: > { %s795_s28 = sand.u32 1, %s1253_s12   ;;  %p1682_p8 = scmp.ne.s32.totalorder %s1669_s27, 0 }
 0x4e0   : > { %p1683_p9 = scmp.ge.s32.totalorder %s1273_s17, 2  ;;  %s796_s8 = scalar_lea.sflag [#allocation4], %s795_s28 }
 0x4e2   : > { %p1013_p6 = pnand %p1683_p9, %p1682_p8 }
 0x4e4   : > { %1248 = dma.done.wait (!%p1013_p6), %s796_s8, 64  }
 0x4e5   : > { %1250 = vsyncadd (!%p1013_p6), %s796_s8, 4294967232  ;;  %s22_s17 = sadd.s32 1, %s1273_s17   ;;  %s1684_s25 = sld [smem:[#allocation12_spill]] }
 0x4e6   : > { %p19_p13 = scmp.ge.s32.totalorder %s22_s17, 4   ;;  %s1685_s12 = smov %s1257_s13 }
 0x4e7   : > { %s1686_s13 = smov %s1261_s14  ;;  %s1687_s14 = smov %s1372_s26 }
 0x4e8   : > { %s1688_s15 = smov %s1269_s16  ;;  %21 = sbr.rel (!%p19_p13) target bundleno = 10 (0xa), region = 101 }
 0x4eb   : > { %s1689_s16 = smov %s1684_s25 }
 0x4ef   :  { %801 = vsyncpa [#allocation3], 1 }
 0x4f0   :  { %803 = vsyncpa [#allocation3 + $0x1], 1 }
 0x4f1   :  { %804 = vsyncpa [#allocation6], 1 }
 0x4f2   :  { %806 = vsyncpa [#allocation6 + $0x1], 1 }
 0x4f3   :  { %807 = vsyncpa [#allocation4], 1 }
 0x4f4   :  { %809 = vsyncpa [#allocation4 + $0x1], 1 }

// kernel: transformer_forward.53
= control target key start
LH: loop header
LB: loop body
LE: loop exit
PB: predicated region body
PF: predicated region fallthrough
CT: control target
= control target key end

     0   :  { %s1857_s0 = inlined_call_operand.hbm [shape: bf16[2,8,32], index: 0, kind: input, shape index: {}]   ;;  %s1858_s1 = inlined_call_operand.hbm [shape: bf16[2,8,64], index: 1, kind: input, shape index: {}]   ;;  %s1859_s2 = inlined_call_operand.hbm [shape: f32[2,1,8], index: 2, kind: input, shape index: {}]   ;;  %s1860_s3 = inlined_call_operand.hbm [shape: bf16[2,8,32], index: 3, kind: output, shape index: {0}]   ;;  %s1861_s4 = inlined_call_operand.hbm [shape: f32[2,4,8,8], index: 4, kind: output, shape index: {1}]  }
   0x1   :  { %1867 = sst [smem:[#allocation17_spill]] %s1858_s1 }
   0x2   :  { %10 = vsyncpa [#allocation3], 0 }
   0x3   :  { %12 = vsyncpa [#allocation3 + $0x1], 0 }
   0x4   :  { %13 = vsyncpa [#allocation6], 0 }
   0x5   :  { %15 = vsyncpa [#allocation6 + $0x1], 0 }
   0x6   :  { %16 = vsyncpa [#allocation4], 0 }
   0x7   :  { %18 = vsyncpa [#allocation4 + $0x1], 0 }
   0x8   :  { %19 = vsyncpa [#allocation10], 0 }
   0x9   :  { %21 = vsyncpa [#allocation10 + $0x1], 0  ;;  %s1463_s15 = smov 0   ;;  %s1465_s16 = smov 0  }
   0xa   :  { %s1467_s17 = smov 0   ;;  %s1469_s18 = smov 0  }
   0xb   :  { %s1471_s19 = smov 0   ;;  %s1473_s20 = smov 0  }
   0xc LB: > { %s1494_s21 = sadd.s32 4294967295, %s1417_s20   ;;  %s1002_s22 = sadd.s32 4294967294, %s1417_s20   ;;  %s1417_s20 = sphi %s1473_s20, %s27_s20   ;;  %s1413_s19 = sphi %s1471_s19, %s1893_s19   ;;  %s1409_s18 = sphi %s1469_s18, %s1892_s18   ;;  %s1405_s17 = sphi %s1467_s17, %s1891_s17   ;;  %s1401_s16 = sphi %s1465_s16, %s1890_s16   ;;  %s1397_s15 = sphi %s1463_s15, %s1889_s15  }
   0xd   : > { %s39_s23 = sadd.s32 1, %s1413_s19  ;;  %s48_s24 = sadd.s32 1, %s1405_s17 }
   0xe   : > { %p41_p0 = scmp.ge.s32.totalorder %s39_s23, 2  ;;  %p55_p1 = scmp.ne.s32.totalorder %s1405_s17, %s1401_s16 }
   0xf   : > { %p56_p2 = scmp.eq.s32.totalorder %s1417_s20, 0  ;;  %p61_p3 = scmp.ne.s32.totalorder %s1401_s16, %s1397_s15 }
  0x10   : > { %s1895_s23 = smov (%p41_p0, %s39_s23), 0  ;;  %p62_p5 = scmp.eq.s32.totalorder %s1494_s21, 0 }
  0x11   : > { %1868 = sst [smem:[#allocation15_spill]] %s1895_s23  ;;  %p1506_p4 = por %p56_p2, %p55_p1 }
  0x12   : > { %s43_s26 = ssub.s32 %s1413_s19, %s1895_s23  ;;  %p139_p6 = scmp.eq.s32.totalorder %s1494_s21, 1 }
  0x13   : > { %p46_p7 = scmp.eq.s32.totalorder %s43_s26, 0  ;;  %p1514_p8 = por %p62_p5, %p61_p3 }
  0x14   : > { %p1518_p9 = por %p139_p6, %p55_p1  ;;  %p145_p10 = scmp.eq.s32.totalorder %s1002_s22, 1 }
  0x15   : > { %s1870_s27 = scalar_select %p1514_p8, 1, 0 }
  0x16   : > { %s1871_s28 = scalar_select %p1518_p9, 1, 0 }
  0x17   : > { %s1523_s29 = scalar_select %p46_p7, %s1405_s17, %s48_s24  }
  0x18   : > { %p1525_p11 = por %p145_p10, %p61_p3  ;;  %p1127_p13 = scmp.lt.s32.totalorder %s1417_s20, 2 }
  0x19   : > { %1872 = sst [smem:[#allocation16_spill]] %s1523_s29  ;;  %s1532_s5 = sand.u32 1, %s1405_s17  }
  0x1a   : > { %s1873_s30 = scalar_select %p1525_p11, 1, 0 }
  0x1b   : > { %s1862_s6 = sshll.u32 %s1532_s5, 2  ;;  %s1006_s7 = sshll.u32 %s1413_s19, 6 }
  0x1c   : > { %p1538_p0 = pnand %p1127_p13, %p1506_p4  ;;  %s212_s9 = sand.u32 1, %s1417_s20  }
  0x1d   : > { %s1875_s1 = sld [smem:[#allocation17_spill]]  ;;  %s216_s13 = scalar_lea.vmem [#allocation5], %s1862_s6 }
  0x1e   : > { %s1874_s8 = scalar_select %p1538_p0, 1, 0 }
  0x1f   : > { %s223_s14 = sshll.u32 %s216_s13, 4  ;;  %s1556_s22 = scalar_lea.sflag [#allocation6], %s212_s9  ;;  %s1553_s14 = int_to_ptr.vmem [resolvable:$true] %s223_s14 }
  0x20   : > { %p1562_p4 = pneg %p1538_p0 }
  0x23   : > { %s1548_s12 = scalar_lea.hbm %s1875_s1, %s1006_s7  ;;  %s1214_s11 = scalar_lea.hbm %s1875_s1, 128 }
  0x24   : > { %s1209_s24 = scalar_lea.hbm %s1548_s12, 64  ;;  %p1215_p7 = scmp.lt.u32.totalorder %s1548_s12, %s1875_s1 }
  0x25   : > { %p1210_p3 = scmp.ne.s32.totalorder %s1548_s12, %s1209_s24  ;;  %p1216_p10 = scmp.lt.u32.totalorder %s1214_s11, %s1209_s24 }
  0x26   : > { %p1218_p12 = scmp.lt.u32.totalorder %s1209_s24, %s1548_s12 }
  0x27   : > { %p1212_p5 = pnand %p1562_p4, %p1210_p3  ;;  %p1217_p13 = por %p1216_p10, %p1215_p7 }
  0x29   : > { %p1213_p6 = pneg %p1212_p5  ;;  %p1219_p1 = por %p1218_p12, %p1217_p13 }
  0x2b   : > { %p1220_p2 = pnand %p1219_p1, %p1213_p6 }
  0x2d   : > { %1223 = shalt.err (!%p1220_p2)
}
  0x2e   : > { %s1224_s9 = scalar_lea.vmem %s1553_s14, 64  ;;  %s1419_s26 = smov [#allocation5]  }
  0x2f   : > { %p1225_p3 = scmp.ne.s32.totalorder %s1553_s14, %s1224_s9  ;;  %s1229_s10 = sshll.u32 %s1419_s26, 4  ;;  %s1230_s10 = int_to_ptr.vmem [resolvable:$false] %s1229_s10 }
  0x30   : > { %s1231_s6 = scalar_lea.vmem %s1230_s10, 128  ;;  %p1232_p9 = scmp.lt.s32.totalorder %s1553_s14, %s1230_s10 }
  0x31   : > { %p1227_p5 = pnand %p1225_p3, %p1562_p4  ;;  %p1233_p8 = scmp.lt.s32.totalorder %s1231_s6, %s1224_s9 }
  0x33   : > { %p1228_p11 = pneg %p1227_p5  ;;  %p1234_p7 = por %p1233_p8, %p1232_p9 }
  0x35   : > { %p1235_p10 = pnand %p1234_p7, %p1228_p11 }
  0x37   : > { %1238 = shalt.err (!%p1235_p10)
}
  0x38   : > { %1116 = dma.hbm_to_vmem [thread:$0]  (!%p1538_p0), %s1548_s12, 64, %s1553_s14, %s1556_s22  }
  0x39   : > { %p1877_p12 = scmp.lt.s32.totalorder %s1417_s20, 3  ;;  %p1878_p1 = scmp.ge.s32.totalorder %s1417_s20, 1 }
  0x3a   : > { %s1599_s9 = scalar_lea.hbm %s1857_s0, %s1006_s7  ;;  %s1880_s26 = sshll.u32 %s1532_s5, 2 }
  0x3b   : > { %p1590_p2 = pnand %p1878_p1, %p1877_p12  ;;  %s197_s10 = scalar_lea.vmem [#allocation2], %s1880_s26 }
  0x3c   : > { %s205_s6 = sshll.u32 %s197_s10, 4  ;;  %s1009_s12 = sshll.u32 %s1413_s19, 4  ;;  %s1603_s6 = int_to_ptr.vmem [resolvable:$true] %s205_s6 }
  0x3d   : > { %s1879_s24 = scalar_select %p1590_p2, 1, 0 }
  0x3e   : > { %s194_s14 = scalar_lea.sflag [#allocation3], %s1532_s5  ;;  %s1239_s1 = scalar_lea.hbm %s1599_s9, 64 }
  0x3f   : > { %p1240_p8 = scmp.ne.s32.totalorder %s1599_s9, %s1239_s1  ;;  %s1244_s7 = scalar_lea.hbm %s1857_s0, 128 }
  0x40   : > { %p1245_p6 = scmp.lt.u32.totalorder %s1599_s9, %s1857_s0  ;;  %p1246_p13 = scmp.lt.u32.totalorder %s1244_s7, %s1239_s1 }
  0x41   : > { %p1242_p9 = pnand %p1240_p8, %p1562_p4  ;;  %p1248_p5 = scmp.lt.u32.totalorder %s1239_s1, %s1599_s9 }
  0x42   : > { %p1247_p3 = por %p1246_p13, %p1245_p6 }
  0x43   : > { %p1243_p11 = pneg %p1242_p9 }
  0x44   : > { %p1249_p7 = por %p1248_p5, %p1247_p3 }
  0x46   : > { %p1250_p10 = pnand %p1249_p7, %p1243_p11 }
  0x48   : > { %1253 = shalt.err (!%p1250_p10)
}
  0x49   : > { %s1254_s26 = scalar_lea.vmem %s1603_s6, 64  ;;  %s1420_s23 = smov [#allocation2]  }
  0x4a   : > { %p1255_p12 = scmp.ne.s32.totalorder %s1603_s6, %s1254_s26  ;;  %s1259_s10 = sshll.u32 %s1420_s23, 4  ;;  %s1260_s10 = int_to_ptr.vmem [resolvable:$false] %s1259_s10 }
  0x4b   : > { %s1261_s29 = scalar_lea.vmem %s1260_s10, 128  ;;  %p1262_p9 = scmp.lt.s32.totalorder %s1603_s6, %s1260_s10 }
  0x4c   : > { %p1257_p1 = pnand %p1255_p12, %p1562_p4  ;;  %p1263_p2 = scmp.lt.s32.totalorder %s1261_s29, %s1254_s26 }
  0x4e   : > { %p1258_p8 = pneg %p1257_p1  ;;  %p1264_p6 = por %p1263_p2, %p1262_p9 }
  0x50   : > { %p1265_p13 = pnand %p1264_p6, %p1258_p8 }
  0x52   : > { %1268 = shalt.err (!%p1265_p13)
}
  0x53   : > { %1113 = dma.hbm_to_vmem [thread:$0]  (!%p1538_p0), %s1599_s9, 64, %s1603_s6, %s194_s14  }
  0x54   : > { %s1633_s7 = scalar_lea.hbm %s1859_s2, %s1009_s12  ;;  %s233_s13 = scalar_lea.vmem [#allocation7], %s1532_s5 }
  0x55   : > { %s240_s26 = sshll.u32 %s233_s13, 4  ;;  %s1269_s23 = scalar_lea.hbm %s1633_s7, 16  ;;  %s241_s26 = int_to_ptr.vmem [resolvable:$true] %s240_s26 }
  0x56   : > { %p1270_p2 = scmp.ne.s32.totalorder %s1633_s7, %s1269_s23  ;;  %s1274_s6 = scalar_lea.hbm %s1859_s2, 32 }
  0x57   : > { %p1275_p5 = scmp.lt.u32.totalorder %s1633_s7, %s1859_s2  ;;  %p1276_p7 = scmp.lt.u32.totalorder %s1274_s6, %s1269_s23 }
  0x58   : > { %p1272_p11 = pnand %p1270_p2, %p1562_p4  ;;  %p1278_p12 = scmp.lt.u32.totalorder %s1269_s23, %s1633_s7 }
  0x59   : > { %p1277_p10 = por %p1276_p7, %p1275_p5 }
  0x5a   : > { %p1273_p3 = pneg %p1272_p11 }
  0x5b   : > { %p1279_p1 = por %p1278_p12, %p1277_p10 }
  0x5d   : > { %p1280_p8 = pnand %p1279_p1, %p1273_p3 }
  0x5f   : > { %1283 = shalt.err (!%p1280_p8)
}
  0x60   : > { %s1284_s5 = scalar_lea.vmem %s241_s26, 16  ;;  %s1421_s12 = smov [#allocation7]  }
  0x61   : > { %p1285_p9 = scmp.ne.s32.totalorder %s241_s26, %s1284_s5  ;;  %s1289_s1 = sshll.u32 %s1421_s12, 4  ;;  %s1290_s1 = int_to_ptr.vmem [resolvable:$false] %s1289_s1 }
  0x62   : > { %s1291_s11 = scalar_lea.vmem %s1290_s1, 32  ;;  %p1292_p2 = scmp.lt.s32.totalorder %s241_s26, %s1290_s1 }
  0x63   : > { %p1287_p6 = pnand %p1285_p9, %p1562_p4  ;;  %p1293_p11 = scmp.lt.s32.totalorder %s1291_s11, %s1284_s5 }
  0x65   : > { %p1288_p13 = pneg %p1287_p6  ;;  %p1294_p0 = por %p1293_p11, %p1292_p2 }
  0x67   : > { %p1295_p5 = pnand %p1294_p0, %p1288_p13 }
  0x69   : > { %1298 = shalt.err (!%p1295_p5)
}
  0x6a   : > { %p1881_p7 = scmp.ne.s32.totalorder %s1874_s8, 0  ;;  %p1882_p3 = scmp.ne.s32.totalorder %s1879_s24, 0 }
  0x6b   : > { %s1657_s25 = sand.u32 (!%p1882_p3), 1, %s1401_s16   ;;  %p1883_p0 = scmp.ne.s32.totalorder (!%p1882_p3), %s1870_s27, 0 }
  0x6c   : > { %1119 = dma.hbm_to_vmem [thread:$0]  (!%p1881_p7), %s1633_s7, 16, %s241_s26, %s1556_s22  }
  0x6d   : > { %249 = sbr.rel (%p1882_p3) target bundleno = 1260 (0x4ec), region = 32  ;;  %s1660_s13 = sshll.u32 (!%p1882_p3), %s1657_s25, 2 }
  0x6e   : > { %s252_s23 = scalar_lea.sflag (!%p1882_p3), [#allocation3], %s1657_s25  ;;  %s255_s10 = scalar_lea.vmem (!%p1882_p3), [#allocation2], %s1660_s13 }
  0x74   : > { %1380 = dma.done.wait (%p1883_p0), %s252_s23, 64  }
  0x75   : > { %1382 = vsyncadd (%p1883_p0), %s252_s23, 4294967232  ;;  %s260_s8 = sand.u32 1, %s1494_s21   ;;  %s264_s24 = scalar_lea.vmem [#allocation5], %s1660_s13 }
  0x76   : > { %s261_s22 = scalar_lea.sflag [#allocation6], %s260_s8 }
  0x77   : > { %1384 = dma.done.wait (%p1883_p0), %s261_s22, 80  }
  0x78   : > { %1386 = vsyncadd (%p1883_p0), %s261_s22, 4294967216  ;;  %v1422_v0 = vmov 0.0   ;;  %vm1423_vm0 = vmmov 0   ;;  %vm316_vm1 = vcmask 64512   ;;  %v313_v1 = vld [vmem:[%s264_s24] sm:$0xf]  ;;  %v365_v6 = vlaneseq }
  0x79   : > { %1052 = vmatprep.subr.bf16.mxu0 %v1422_v0  ;;  %1054 = vmatprep.mubr.msk.bf16.mxu0 %vm1423_vm0, %v1422_v0  ;;  %v321_v2 = vsel %vm316_vm1, %v313_v1, 0  ;;  %v312_v3 = vld [vmem:[%s255_s10] sm:$0xf]  ;;  %v1685_v4 = vcombine.low %v313_v1, %v313_v1  ;;  %s1424_s21 = smov 120   ;;  %s1425_s27 = smov 112   ;;  %v1427_v10 = vmov 0  }
  0x7a   : > { %1058 = vmatprep.subr.bf16.mxu1 %v1422_v0  ;;  %1060 = vmatprep.mubr.msk.bf16.mxu1 %vm1423_vm0, %v1422_v0  ;;  %v1018_v5 = vcombine.low %v312_v3, %v312_v3  ;;  %s1426_s7 = smov 104   ;;  %s272_s26 = scalar_lea.vmem [#allocation7], %s1657_s25  ;;  %v366_v8 = vshrl.u32 %v365_v6, 7  ;;  %vm390_vm4 = vcmask 1043456  }
  0x7b   : > { %1053 = vmatpush3.bf16.xpose.msra.mxu0 %v321_v2  ;;  %443 = vrot.lane.b32.xlu1 %v1685_v4, %s1424_s21  ;;  %v314_v7 = vld [vmem:[%s272_s26] sm:$0x1]  ;;  %s1428_s9 = smov 96   ;;  %s1429_s6 = smov 88  }
  0x7c   : > { %1070 = vmatprep.subr.bf16.mxu0 %v1422_v0  ;;  %vm315_vm2 = vcmp.gt.f32.partialorder %v314_v7, 0.0  ;;  %v367_v9 = vsub.s32 0, %v366_v8  ;;  %s1430_s14 = smov 72   ;;  %s1431_s29 = smov 80  }
  0x7d   : > { %v364_v11 = vsel %vm315_vm2, 1, %v1427_v10  ;;  %s1014_s5 = sshll.u32 %s1657_s25, 5  ;;  %s1432_s1 = smov 8  }
  0x7e   : > { %v1691_v12 = vrot.slane %v364_v11, %v367_v9  ;;  %s1751_s12 = scalar_lea.vmem [#allocation9], %s1014_s5  ;;  %s1035_s11 = sshll.u32 %s1409_s18, 9 }
  0x7f   : > { %441 = vrot.lane.b32.xlu1 %v1018_v5, %s1424_s21  ;;  %s844_s23 = sshll.u32 %s1751_s12, 4  ;;  %s1771_s22 = scalar_lea.hbm %s1861_s4, %s1035_s11  ;;  %s1773_s23 = int_to_ptr.vmem [resolvable:$true] %s844_s23 }
  0x80   : > { %vm369_vm3 = vcmp.eq.s32.totalorder %v1691_v12, 1  ;;  %s1433_s24 = smov 16   ;;  %s816_s21 = scalar_lea.sflag [#allocation10], %s1657_s25 }
  0x81   : > { %p1884_p10 = scmp.ne.s32.totalorder %s1871_s28, 0 }
  0x82   : > { %1055 = vmatmul.mubr.msk.bf16.vlgmr.msra.gmra.mrb[0].mxu0 %vm316_vm1, %v312_v3 }
  0x83   : > { %1072 = vmatprep.mubr.msk.bf16.mxu0 %vm1423_vm0, %v1422_v0  ;;  %559 = vrot.lane.b32.xlu1 %v1685_v4, %s1425_s27 }
  0x87   : > { %557 = vrot.lane.b32.xlu1 %v1018_v5, %s1425_s27  ;;  %s1299_s27 = scalar_lea.vmem %s1773_s23, 512 }
  0x88   : > { %p1300_p4 = scmp.ne.s32.totalorder %s1773_s23, %s1299_s27 }
  0x8a   : > { %p1301_p12 = pnand %p1300_p4, %p1884_p10 }
  0x8b   : > { %675 = vrot.lane.b32.xlu1 %v1685_v4, %s1426_s7 }
  0x8c   : > { %p1302_p1 = pneg %p1301_p12 }
  0x8f   : > { %673 = vrot.lane.b32.xlu1 %v1018_v5, %s1426_s7  ;;  %s1434_s7 = smov [#allocation9]  }
  0x90   : > { %s1303_s26 = sshll.u32 %s1434_s7, 4  ;;  %s1304_s26 = int_to_ptr.vmem [resolvable:$false] %s1303_s26 }
  0x91   : > { %p1306_p8 = scmp.lt.s32.totalorder %s1773_s23, %s1304_s26 }
  0xed   : > { %v444_v25 = vpop.permute.xlu1 %443 }
  0xee   : > { %v449_v28 = vsel %vm316_vm1, %v444_v25, 0 }
  0xf1   : > { %v442_v26 = vpop.permute.xlu1 %441 }
  0xf5   : > { %v560_v30 = vpop.permute.xlu1 %559 }
  0xf6   : > { %v565_v32 = vsel %vm316_vm1, %v560_v30, 0 }
  0xf9   : > { %v558_v31 = vpop.permute.xlu1 %557 }
  0xfd   : > { %v676_v33 = vpop.permute.xlu1 %675 }
  0xfe   : > { %v681_v34 = vsel %vm316_vm1, %v676_v33, 0 }
 0x101   : > { %v674_v35 = vpop.permute.xlu1 %673 }
 0x155   : > { %v357_v13 = vpop.f32.mrb[0].mxu0 }
 0x156   : > { %v363_v14 = vmul.f32 0.35355338, %v357_v13  ;;  %v1056_v15 = vpop.f32.mrb[1].mxu0 }
 0x157   : > { %v360_v16 = vpop.f32.mrb[2].mxu0 }
 0x158   : > { %v1057_v17 = vpop.f32.mrb[3].mxu0  ;;  %v370_v18 = vsel %vm369_vm3, %v363_v14, -1e+10 }
 0x159   : > { %v371_v19 = vsel %vm316_vm1, %v370_v18, -inf }
 0x15a   : > { %372 = vmax.xlane.f32.xlu0 %v371_v19 }
 0x170   : > { %385 = vrot.lane.b32.xlu0 %v1685_v4, %s1428_s9  ;;  %s1305_s9 = scalar_lea.vmem %s1304_s26, 1024 }
 0x171   : > { %p1307_p9 = scmp.lt.s32.totalorder %s1305_s9, %s1299_s27 }
 0x173   : > { %p1308_p6 = por %p1307_p9, %p1306_p8 }
 0x175   : > { %p1309_p13 = pnand %p1308_p6, %p1302_p1 }
 0x1e7   : > { %v373_v20 = vpop.xlane.xlu0 %372 }
 0x1e8   : > { %v374_v21 = vsub.f32 %v370_v18, %v373_v20 }
 0x1ea   : > { %v375_v22 = vmul.f32 1.442695, %v374_v21 }
 0x1eb   : > { %v386_v23 = vpop.permute.xlu0 %385 }
 0x1ec   : > { %1193 = vpow2.f32 %v375_v22  ;;  %v392_v24 = vsel %vm390_vm4, %v386_v23, 0 }
 0x1ed   : > { %1059 = vmatpush3.bf16.msra.mxu1 %v392_v24 }
 0x1ee   : > { %1064 = vmatprep.subr.bf16.mxu1 %v1422_v0 }
 0x1f6   : > { %v1700_v27 = vpop.eup %1193 }
 0x1f7   : > { %v381_v29 = vpack.c.bf16 %v1700_v27, %v1700_v27  ;;  %v377_v13 = vsel %vm316_vm1, %v1700_v27, 0.0 }
 0x1f9   : > { %1061 = vmatmul.mubr.msk.bf16.vlgmr.msra.gmra.mrb[0].mxu1 %vm316_vm1, %v381_v29 }
 0x1fa   : > { %1065 = vmatpush3.bf16.xpose.msra.mxu1 %v449_v28  ;;  %1066 = vmatprep.mubr.msk.bf16.mxu1 %vm1423_vm0, %v1422_v0 }
 0x1fb   : > { %1076 = vmatprep.subr.bf16.mxu1 %v1422_v0 }
 0x201   : > { %1067 = vmatmul.mubr.msk.bf16.vlgmr.msra.gmra.mrb[4].mxu1 %vm316_vm1, %v442_v26 }
 0x202   : > { %1077 = vmatpush3.bf16.xpose.msra.mxu1 %v565_v32  ;;  %1078 = vmatprep.mubr.msk.bf16.mxu1 %vm1423_vm0, %v1422_v0 }
 0x203   : > { %1088 = vmatprep.subr.bf16.mxu1 %v1422_v0 }
 0x209   : > { %1079 = vmatmul.mubr.msk.bf16.vlgmr.msra.gmra.mrb[8].mxu1 %vm316_vm1, %v558_v31 }
 0x20a   : > { %1089 = vmatpush3.bf16.xpose.msra.mxu1 %v681_v34  ;;  %1090 = vmatprep.mubr.msk.bf16.mxu1 %vm1423_vm0, %v1422_v0 }
 0x211   : > { %1091 = vmatmul.mubr.msk.bf16.vlgmr.msra.gmra.mrb[12].mxu1 %vm316_vm1, %v674_v35 }
 0x2cc   : > { %v1719_v36 = vpop.f32.mrb[0].mxu1 }
 0x2cd   : > { %v1062_v37 = vpop.f32.mrb[1].mxu1 }
 0x2ce   : > { %v431_v38 = vpop.f32.mrb[2].mxu1 }
 0x2cf   : > { %v1063_v39 = vpop.f32.mrb[3].mxu1 }
 0x2d4   : > { %v485_v40 = vpop.f32.mrb[4].mxu1 }
 0x2d5   : > { %v491_v41 = vmul.f32 0.35355338, %v485_v40  ;;  %v1068_v42 = vpop.f32.mrb[5].mxu1 }
 0x2d6   : > { %v488_v43 = vpop.f32.mrb[6].mxu1 }
 0x2d7   : > { %v1069_v44 = vpop.f32.mrb[7].mxu1  ;;  %v492_v45 = vsel %vm369_vm3, %v491_v41, -1e+10 }
 0x2d8   : > { %v493_v46 = vsel %vm316_vm1, %v492_v45, -inf }
 0x2d9   : > { %494 = vmax.xlane.f32.xlu1 %v493_v46 }
 0x2dc   : > { %v601_v47 = vpop.f32.mrb[8].mxu1 }
 0x2dd   : > { %v607_v48 = vmul.f32 0.35355338, %v601_v47  ;;  %v1080_v49 = vpop.f32.mrb[9].mxu1 }
 0x2de   : > { %v604_v50 = vpop.f32.mrb[10].mxu1 }
 0x2df   : > { %v1081_v51 = vpop.f32.mrb[11].mxu1  ;;  %v608_v52 = vsel %vm369_vm3, %v607_v48, -1e+10 }
 0x2e0   : > { %v609_v53 = vsel %vm316_vm1, %v608_v52, -inf }
 0x2e1   : > { %610 = vmax.xlane.f32.xlu0 %v609_v53 }
 0x2e4   : > { %v717_v54 = vpop.f32.mrb[12].mxu1 }
 0x2e5   : > { %v723_v55 = vmul.f32 0.35355338, %v717_v54  ;;  %v1092_v56 = vpop.f32.mrb[13].mxu1 }
 0x2e6   : > { %v720_v57 = vpop.f32.mrb[14].mxu1 }
 0x2e7   : > { %v1093_v58 = vpop.f32.mrb[15].mxu1  ;;  %v724_v59 = vsel %vm369_vm3, %v723_v55, -1e+10 }
 0x2e8   : > { %v725_v60 = vsel %vm316_vm1, %v724_v59, -inf }
 0x2e9   : > { %726 = vmax.xlane.f32.xlu0 %v725_v60 }
 0x2ea   : > { %504 = vrot.lane.b32.xlu1 %v1685_v4, %s1429_s6 }
 0x2ee   : > { %736 = vrot.lane.b32.xlu1 %v1685_v4, %s1430_s14 }
 0x2ff   : > { %620 = vrot.lane.b32.xlu0 %v1685_v4, %s1431_s29 }
 0x366   : > { %v495_v61 = vpop.xlane.xlu1 %494 }
 0x367   : > { %v496_v62 = vsub.f32 %v492_v45, %v495_v61 }
 0x369   : > { %v497_v63 = vmul.f32 1.442695, %v496_v62 }
 0x36a   : > { %v505_v1 = vpop.permute.xlu1 %504 }
 0x36b   : > { %1195 = vpow2.f32 %v497_v63  ;;  %v510_v2 = vsel %vm390_vm4, %v505_v1, 0 }
 0x36c   : > { %1071 = vmatpush3.bf16.msra.mxu0 %v510_v2 }
 0x36d   : > { %1082 = vmatprep.subr.bf16.mxu0 %v1422_v0 }
 0x36e   : > { %v611_v3 = vpop.xlane.xlu0 %610  ;;  %v737_v15 = vpop.permute.xlu1 %736 }
 0x36f   : > { %v612_v5 = vsub.f32 %v608_v52, %v611_v3  ;;  %v742_v19 = vsel %vm390_vm4, %v737_v15, 0 }
 0x371   : > { %v613_v6 = vmul.f32 1.442695, %v612_v5 }
 0x373   : > { %1197 = vpow2.f32 %v613_v6 }
 0x375   : > { %v1196_v7 = vpop.eup %1195 }
 0x376   : > { %v727_v8 = vpop.xlane.xlu0 %726  ;;  %v499_v9 = vsel %vm316_vm1, %v1196_v7, 0.0  ;;  %v503_v10 = vpack.c.bf16 %v1196_v7, %v1196_v7 }
 0x377   : > { %v728_v4 = vsub.f32 %v724_v59, %v727_v8  ;;  %500 = vadd.xlane.f32.xlu1 %v499_v9 }
 0x378   : > { %1073 = vmatmul.mubr.msk.bf16.vlgmr.msra.gmra.mrb[4].mxu0 %vm316_vm1, %v503_v10 }
 0x379   : > { %v729_v11 = vmul.f32 1.442695, %v728_v4  ;;  %1084 = vmatprep.mubr.msk.bf16.mxu0 %vm1423_vm0, %v1422_v0 }
 0x37a   : > { %v621_v12 = vpop.permute.xlu0 %620 }
 0x37b   : > { %1199 = vpow2.f32 %v729_v11  ;;  %v626_v14 = vsel %vm390_vm4, %v621_v12, 0  ;;  %378 = vadd.xlane.f32.xlu1 %v377_v13 }
 0x37c   : > { %1083 = vmatpush3.bf16.msra.mxu0 %v626_v14 }
 0x37d   : > { %v1198_v16 = vpop.eup %1197  ;;  %1094 = vmatprep.subr.bf16.mxu0 %v1422_v0 }
 0x37e   : > { %v615_v17 = vsel %vm316_vm1, %v1198_v16, 0.0  ;;  %v619_v18 = vpack.c.bf16 %v1198_v16, %v1198_v16 }
 0x37f   : > { %616 = vadd.xlane.f32.xlu0 %v615_v17 }
 0x380   : > { %1085 = vmatmul.mubr.msk.bf16.vlgmr.msra.gmra.mrb[8].mxu0 %vm316_vm1, %v619_v18 }
 0x381   : > { %1095 = vmatpush3.bf16.msra.mxu0 %v742_v19  ;;  %1096 = vmatprep.mubr.msk.bf16.mxu0 %vm1423_vm0, %v1422_v0 }
 0x385   : > { %v1200_v20 = vpop.eup %1199 }
 0x386   : > { %v731_v21 = vsel %vm316_vm1, %v1200_v20, 0.0  ;;  %v735_v22 = vpack.c.bf16 %v1200_v20, %v1200_v20 }
 0x387   : > { %732 = vadd.xlane.f32.xlu0 %v731_v21 }
 0x388   : > { %1097 = vmatmul.mubr.msk.bf16.vlgmr.msra.gmra.mrb[12].mxu0 %vm316_vm1, %v735_v22 }
 0x404   : > { %v501_v23 = vpop.xlane.xlu1 %500 }
 0x405   : > { %1201 = vrcp.f32 %v501_v23 }
 0x408   : > { %v379_v24 = vpop.xlane.xlu1 %378 }
 0x409   : > { %1203 = vrcp.f32 %v379_v24 }
 0x40c   : > { %v617_v25 = vpop.xlane.xlu0 %616 }
 0x40d   : > { %1205 = vrcp.f32 %v617_v25 }
 0x40f   : > { %v1202_v26 = vpop.eup %1201 }
 0x410   : > { %v554_v28 = vmul.f32 %v1202_v26, %v1196_v7 }
 0x412   : > { %1021 = vst.msk [vmem:[%s1751_s12 + $0x8] sm:$0xff] %vm316_vm1, %v554_v28 }
 0x413   : > { %v1204_v0 = vpop.eup %1203 }
 0x414   : > { %v436_v29 = vmul.f32 %v1204_v0, %v1700_v27  ;;  %v733_v30 = vpop.xlane.xlu0 %732  ;;  %v1757_v31 = vmul.f32 %v1204_v0, %v1719_v36 }
 0x415   : > { %1207 = vrcp.f32 %v733_v30 }
 0x416   : > { %437 = vst.msk [vmem:[%s1751_s12] sm:$0xff] %vm316_vm1, %v436_v29 }
 0x417   : > { %v1206_v32 = vpop.eup %1205 }
 0x418   : > { %v670_v33 = vmul.f32 %v1206_v32, %v1198_v16 }
 0x41a   : > { %1024 = vst.msk [vmem:[%s1751_s12 + $0x10] sm:$0xff] %vm316_vm1, %v670_v33 }
 0x41f   : > { %v1208_v34 = vpop.eup %1207 }
 0x420   : > { %v786_v35 = vmul.f32 %v1208_v34, %v1200_v20 }
 0x422   : > { %1027 = vst.msk [vmem:[%s1751_s12 + $0x18] sm:$0xff] %vm316_vm1, %v786_v35 }
 0x44b   : > { %v546_v37 = vpop.f32.mrb[4].mxu0 }
 0x44c   : > { %v552_v38 = vmul.f32 %v1202_v26, %v546_v37  ;;  %v1074_v27 = vpop.f32.mrb[5].mxu0 }
 0x44d   : > { %v549_v39 = vpop.f32.mrb[6].mxu0 }
 0x44e   : > { %v553_v40 = vpack.c.bf16 %v552_v38, %v552_v38  ;;  %v1075_v36 = vpop.f32.mrb[7].mxu0 }
 0x450   : > { %790 = vrot.lane.b32.xlu0 %v553_v40, %s1432_s1 }
 0x453   : > { %v662_v41 = vpop.f32.mrb[8].mxu0 }
 0x454   : > { %v668_v42 = vmul.f32 %v1206_v32, %v662_v41  ;;  %v1086_v43 = vpop.f32.mrb[9].mxu0 }
 0x455   : > { %v665_v44 = vpop.f32.mrb[10].mxu0 }
 0x456   : > { %v669_v45 = vpack.c.bf16 %v668_v42, %v668_v42  ;;  %v1087_v46 = vpop.f32.mrb[11].mxu0 }
 0x458   : > { %793 = vrot.lane.b32.xlu1 %v669_v45, %s1433_s24 }
 0x459   : > { %1312 = shalt.err (!%p1309_p13)
}
 0x45a   : > { %s1313_s6 = scalar_lea.hbm %s1771_s22, 512  ;;  %s1317_s5 = scalar_lea.hbm %s1861_s4, 1024 }
 0x45b   : > { %p1314_p2 = scmp.ne.s32.totalorder %s1771_s22, %s1313_s6  ;;  %p1318_p7 = scmp.lt.u32.totalorder %s1771_s22, %s1861_s4 }
 0x45c   : > { %p1319_p3 = scmp.lt.u32.totalorder %s1317_s5, %s1313_s6  ;;  %p1321_p4 = scmp.lt.u32.totalorder %s1313_s6, %s1771_s22 }
 0x45d   : > { %p1315_p11 = pnand %p1314_p2, %p1884_p10 }
 0x45e   : > { %p1320_p0 = por %p1319_p3, %p1318_p7 }
 0x45f   : > { %p1316_p5 = pneg %p1315_p11 }
 0x460   : > { %p1322_p12 = por %p1321_p4, %p1320_p0 }
 0x462   : > { %p1323_p1 = pnand %p1322_p12, %p1316_p5 }
 0x464   : > { %1326 = shalt.err (!%p1323_p1)
}
 0x465   : > { %s1435_s10 = smov 128   ;;  %v778_v47 = vpop.f32.mrb[12].mxu0  ;;  %s1436_s8 = smov 24   ;;  %v435_v55 = vpack.c.bf16 %v1757_v31, %v1757_v31  ;;  %vm801_vm5 = vcmask 130048   ;;  %vm804_vm6 = vcmask 195584   ;;  %vm808_vm7 = vcmask 257024  }
 0x466   : > { %1107 = dma.vmem_to_hbm [thread:$0]  (%p1884_p10), %s1773_s23, 512, %s1771_s22, %s816_s21, %s1435_s10, %s1435_s10, %s1432_s1   ;;  %v784_v48 = vmul.f32 %v1208_v34, %v778_v47  ;;  %v1098_v49 = vpop.f32.mrb[13].mxu0 }
 0x467   : > { %v781_v50 = vpop.f32.mrb[14].mxu0  ;;  %s1030_s24 = sshll.u32 %s1409_s18, 6  ;;  %s303_s27 = scalar_lea.vmem [#allocation8], %s1660_s13 }
 0x468   : > { %v785_v51 = vpack.c.bf16 %v784_v48, %v784_v48  ;;  %v1099_v52 = vpop.f32.mrb[15].mxu0  ;;  %s830_s7 = sshll.u32 %s303_s27, 4  ;;  %s1808_s22 = scalar_lea.hbm %s1860_s3, %s1030_s24  ;;  %s1810_s7 = int_to_ptr.vmem [resolvable:$true] %s830_s7 }
 0x469   : > { %s811_s18 = scalar_lea.sflag [#allocation4], %s1657_s25  ;;  %s1327_s13 = scalar_lea.vmem %s1810_s7, 64 }
 0x46a   : > { %796 = vrot.lane.b32.xlu1 %v785_v51, %s1436_s8  ;;  %p1328_p8 = scmp.ne.s32.totalorder %s1810_s7, %s1327_s13  ;;  %s1437_s21 = smov [#allocation8]  }
 0x46b   : > { %s1331_s26 = sshll.u32 %s1437_s21, 4  ;;  %s1332_s26 = int_to_ptr.vmem [resolvable:$false] %s1331_s26 }
 0x46c   : > { %p1329_p9 = pnand %p1328_p8, %p1884_p10  ;;  %s1333_s9 = scalar_lea.vmem %s1332_s26, 128 }
 0x46d   : > { %p1334_p13 = scmp.lt.s32.totalorder %s1810_s7, %s1332_s26  ;;  %p1335_p2 = scmp.lt.s32.totalorder %s1333_s9, %s1327_s13 }
 0x46e   : > { %p1330_p6 = pneg %p1329_p9 }
 0x46f   : > { %p1336_p11 = por %p1335_p2, %p1334_p13 }
 0x471   : > { %p1337_p5 = pnand %p1336_p11, %p1330_p6 }
 0x4c2   : > { %v791_v53 = vpop.permute.xlu0 %790 }
 0x4c3   : > { %v800_v56 = vsel %vm316_vm1, %v435_v55, %v791_v53 }
 0x4ca   : > { %v794_v54 = vpop.permute.xlu1 %793 }
 0x4cb   : > { %v803_v57 = vsel %vm801_vm5, %v800_v56, %v794_v54 }
 0x4dc   : > { %v797_v58 = vpop.permute.xlu1 %796 }
 0x4dd   : > { %v806_v59 = vsel %vm804_vm6, %v803_v57, %v797_v58 }
 0x4de   : > { %809 = vst.msk [vmem:[%s303_s27] sm:$0xf] %vm808_vm7, %v806_v59 }
 0x4df   : > { %1340 = shalt.err (!%p1337_p5)
}
 0x4e0   : > { %s1341_s25 = scalar_lea.hbm %s1808_s22, 64  ;;  %s1345_s29 = scalar_lea.hbm %s1860_s3, 128 }
 0x4e1   : > { %p1342_p7 = scmp.ne.s32.totalorder %s1808_s22, %s1341_s25  ;;  %p1346_p4 = scmp.lt.u32.totalorder %s1808_s22, %s1860_s3 }
 0x4e2   : > { %p1347_p12 = scmp.lt.u32.totalorder %s1345_s29, %s1341_s25  ;;  %p1349_p8 = scmp.lt.u32.totalorder %s1341_s25, %s1808_s22 }
 0x4e3   : > { %p1343_p3 = pnand %p1342_p7, %p1884_p10 }
 0x4e4   : > { %p1348_p1 = por %p1347_p12, %p1346_p4 }
 0x4e5   : > { %p1344_p0 = pneg %p1343_p3 }
 0x4e6   : > { %p1350_p9 = por %p1349_p8, %p1348_p1 }
 0x4e8   : > { %p1351_p6 = pnand %p1350_p9, %p1344_p0 }
 0x4ea   : > { %1354 = shalt.err (!%p1351_p6)
}
 0x4eb   : > { %1106 = dma.vmem_to_hbm [thread:$0]  (%p1884_p10), %s1810_s7, 64, %s1808_s22, %s811_s18  }
 0x4ec PF: > { %s859_s11 = sand.u32 1, %s1397_s15   ;;  %p1885_p13 = scmp.ne.s32.totalorder %s1873_s30, 0 }
 0x4ed   : > { %p1886_p2 = scmp.ge.s32.totalorder %s1417_s20, 2  ;;  %s860_s10 = scalar_lea.sflag [#allocation4], %s859_s11 }
 0x4ef   : > { %p1121_p11 = pnand %p1886_p2, %p1885_p13 }
 0x4f1   : > { %1388 = dma.done.wait (!%p1121_p11), %s860_s10, 64  }
 0x4f2   : > { %1390 = vsyncadd (!%p1121_p11), %s860_s10, 4294967232  ;;  %s869_s8 = scalar_lea.sflag [#allocation10], %s859_s11 }
 0x4f3   : > { %1392 = dma.done.wait (!%p1121_p11), %s869_s8, 512  }
 0x4f4   : > { %1394 = vsyncadd (!%p1121_p11), %s869_s8, 4294966784  ;;  %s27_s20 = sadd.s32 1, %s1417_s20   ;;  %s1887_s28 = sld [smem:[#allocation16_spill]] }
 0x4f5   : > { %p24_p5 = scmp.ge.s32.totalorder %s27_s20, 4   ;;  %s1888_s24 = sld [smem:[#allocation15_spill]] }
 0x4f6   : > { %s1889_s15 = smov %s1401_s16  ;;  %s1890_s16 = smov %s1405_s17 }
 0x4f7   : > { %s1892_s18 = smov %s1413_s19  ;;  %26 = sbr.rel (!%p24_p5) target bundleno = 12 (0xc), region = 121 }
 0x4fa   : > { %s1891_s17 = smov %s1887_s28 }
 0x4fb   : > { %s1893_s19 = smov %s1888_s24 }
 0x4fe   :  { %874 = vsyncpa [#allocation3], 1 }
 0x4ff   :  { %876 = vsyncpa [#allocation3 + $0x1], 1 }
 0x500   :  { %877 = vsyncpa [#allocation6], 1 }
 0x501   :  { %879 = vsyncpa [#allocation6 + $0x1], 1 }
 0x502   :  { %880 = vsyncpa [#allocation4], 1 }
 0x503   :  { %882 = vsyncpa [#allocation4 + $0x1], 1 }
 0x504   :  { %883 = vsyncpa [#allocation10], 1 }
 0x505   :  { %885 = vsyncpa [#allocation10 + $0x1], 1 }

// kernel: transformer_forward.57
= control target key start
LH: loop header
LB: loop body
LE: loop exit
PB: predicated region body
PF: predicated region fallthrough
CT: control target
= control target key end

     0   :  { %8 = vsyncpa [#allocation3], 0  ;;  %s374_s0 = inlined_call_operand.hbm [shape: bf16[16,32], index: 0, kind: input, shape index: {}]   ;;  %s375_s1 = inlined_call_operand.hbm [shape: bf16[32,32], index: 1, kind: input, shape index: {}]   ;;  %s376_s2 = inlined_call_operand.hbm [shape: f32[1,32], index: 2, kind: input, shape index: {}]   ;;  %s377_s3 = inlined_call_operand.hbm [shape: f32[16,32], index: 3, kind: output, shape index: {}]  }
   0x1   :  { %9 = vsyncpa [#allocation6], 0 }
   0x2   :  { %10 = vsyncpa [#allocation4], 0  ;;  %s284_s12 = smov [#allocation5]   ;;  %s285_s14 = smov [#allocation2]  }
   0x3   :  { %s28_s13 = sshll.u32 %s284_s12, 4  ;;  %s16_s15 = sshll.u32 %s285_s14, 4  ;;  %s29_s13 = int_to_ptr.vmem [resolvable:$true] %s28_s13  ;;  %s314_s15 = int_to_ptr.vmem [resolvable:$true] %s16_s15 }
   0x4   :  { %s190_s18 = scalar_lea.hbm %s375_s1, 256 }
   0x5   :  { %p191_p0 = scmp.ne.s32.totalorder %s375_s1, %s190_s18  ;;  %p194_p1 = scmp.lt.u32.totalorder %s190_s18, %s375_s1 }
   0x7   :  { %p196_p2 = pnand %p194_p1, %p191_p0 }
   0x9   :  { %199 = shalt.err (!%p196_p2)
}
   0xa   :  { %s200_s23 = scalar_lea.vmem %s29_s13, 256  ;;  %p205_p4 = scmp.lt.s32.totalorder %s29_s13, %s29_s13 }
   0xb   :  { %p201_p3 = scmp.ne.s32.totalorder %s29_s13, %s200_s23  ;;  %p206_p5 = scmp.lt.s32.totalorder %s200_s23, %s200_s23 }
   0xd   :  { %p207_p6 = por %p206_p5, %p205_p4 }
   0xf   :  { %p208_p7 = pnand %p207_p6, %p201_p3 }
  0x11   :  { %211 = shalt.err (!%p208_p7)
}
  0x12   :  { %s286_s24 = smov 64   ;;  %s287_s25 = smov 4  }
  0x13   :  { %34 = dma.hbm_to_vmem [thread:$0]  %s375_s1, 256, %s29_s13, [#allocation6], %s286_s24, %s286_s24, %s287_s25  }
  0x14   :  { %s212_s30 = scalar_lea.hbm %s374_s0, 128 }
  0x15   :  { %p213_p8 = scmp.ne.s32.totalorder %s374_s0, %s212_s30  ;;  %p216_p9 = scmp.lt.u32.totalorder %s212_s30, %s374_s0 }
  0x17   :  { %p218_p10 = pnand %p216_p9, %p213_p8 }
  0x19   :  { %221 = shalt.err (!%p218_p10)
}
  0x1a   :  { %s222_s8 = scalar_lea.vmem %s314_s15, 128  ;;  %p227_p12 = scmp.lt.s32.totalorder %s314_s15, %s314_s15 }
  0x1b   :  { %p223_p11 = scmp.ne.s32.totalorder %s314_s15, %s222_s8  ;;  %p228_p13 = scmp.lt.s32.totalorder %s222_s8, %s222_s8 }
  0x1d   :  { %p229_p0 = por %p228_p13, %p227_p12 }
  0x1f   :  { %p230_p1 = pnand %p229_p0, %p223_p11 }
  0x21   :  { %233 = shalt.err (!%p230_p1)
}
  0x22   :  { %22 = dma.hbm_to_vmem [thread:$0]  %s374_s0, 128, %s314_s15, [#allocation3], %s286_s24, %s286_s24, %s287_s25  }
  0x23   :  { %s288_s10 = smov [#allocation7]   ;;  %s234_s14 = scalar_lea.hbm %s376_s2, 16 }
  0x24   :  { %s41_s11 = sshll.u32 %s288_s10, 4  ;;  %p235_p2 = scmp.ne.s32.totalorder %s376_s2, %s234_s14  ;;  %s42_s11 = int_to_ptr.vmem [resolvable:$true] %s41_s11 }
  0x25   :  { %p238_p3 = scmp.lt.u32.totalorder %s234_s14, %s376_s2 }
  0x27   :  { %p240_p4 = pnand %p238_p3, %p235_p2 }
  0x29   :  { %243 = shalt.err (!%p240_p4)
}
  0x2a   :  { %s244_s20 = scalar_lea.vmem %s42_s11, 16  ;;  %s248_s0 = scalar_lea.vmem %s42_s11, 32 }
  0x2b   :  { %p245_p5 = scmp.ne.s32.totalorder %s42_s11, %s244_s20  ;;  %p249_p6 = scmp.lt.s32.totalorder %s42_s11, %s42_s11 }
  0x2c   :  { %p250_p7 = scmp.lt.s32.totalorder %s248_s0, %s244_s20 }
  0x2e   :  { %p251_p8 = por %p250_p7, %p249_p6 }
  0x30   :  { %p252_p9 = pnand %p251_p8, %p245_p5 }
  0x32   :  { %255 = shalt.err (!%p252_p9)
}
  0x33   :  { %44 = dma.hbm_to_vmem [thread:$0]  %s376_s2, 16, %s42_s11, [#allocation6]  }
  0x34   :  { %278 = dma.done.wait [#allocation3], 128  }
  0x35   :  { %279 = vsyncadd [#allocation3], 4294967168 }
  0x36   :  { %280 = dma.done.wait [#allocation6], 272  }
  0x37   :  { %281 = vsyncadd [#allocation6], 4294967024  ;;  %v289_v0 = vmov 0.0   ;;  %vm290_vm0 = vmmov 0   ;;  %v187_v1 = vld [vmem:[#allocation5] sm:$0xff]   ;;  %v188_v2 = vld [vmem:[#allocation5 + $0x8] sm:$0xff]  }
  0x38   :  { %169 = vmatprep.subr.bf16.mxu0 %v289_v0  ;;  %173 = vmatprep.mubr.msk.bf16.mxu0 %vm290_vm0, %v289_v0  ;;  %vm66_vm1 = vcmask 261120   ;;  %v161_v3 = vld [vmem:[#allocation7] ss:$0 sm:$0xff]  ;;  %v189_v4 = vld [vmem:[#allocation2] sm:$0xff]   ;;  %s291_s2 = smov [#allocation8]  }
  0x39   :  { %170 = vmatpush3.bf16.msra.mxu0 %v187_v1  ;;  %67 = vst.msk [vmem:[#allocation8] sm:$0xff] %vm66_vm1, %v161_v3  ;;  %68 = vst.msk [vmem:[#allocation8 + $0x8] sm:$0xff] %vm66_vm1, %v161_v3  ;;  %s148_s22 = sshll.u32 %s291_s2, 4  ;;  %s149_s22 = int_to_ptr.vmem [resolvable:$true] %s148_s22 }
  0x3a   :  { %171 = vmatprep.subr.bf16.mxu0 %v289_v0  ;;  %s256_s23 = scalar_lea.vmem %s149_s22, 256  ;;  %p261_p11 = scmp.lt.s32.totalorder %s149_s22, %s149_s22 }
  0x3b   :  { %p257_p10 = scmp.ne.s32.totalorder %s149_s22, %s256_s23  ;;  %p262_p12 = scmp.lt.s32.totalorder %s256_s23, %s256_s23 }
  0x3d   :  { %172 = vmatpush3.bf16.msra.mxu0 %v188_v2  ;;  %p263_p13 = por %p262_p12, %p261_p11 }
  0x3f   :  { %p264_p0 = pnand %p263_p13, %p257_p10 }
  0x40   :  { %174 = vmatmul.mubr.msk.bf16.vlgmr.msra.gmra.mrb[0].mxu0 %vm66_vm1, %v189_v4  ;;  %v69_v5 = vld [vmem:[#allocation8] sm:$0xff]  ;;  %v70_v7 = vld [vmem:[#allocation8 + $0x8] sm:$0xff] }
 0x113   :  { %v132_v6 = vpop.f32.mrb[0].mxu0 }
 0x114   :  { %v139_v8 = vadd.f32 %v132_v6, %v69_v5  ;;  %v175_v9 = vpop.f32.mrb[1].mxu0 }
 0x115   :  { %v135_v10 = vpop.f32.mrb[2].mxu0 }
 0x116   :  { %141 = vst.msk [vmem:[#allocation8] sm:$0xff] %vm66_vm1, %v139_v8  ;;  %v140_v11 = vadd.f32 %v135_v10, %v70_v7  ;;  %v176_v12 = vpop.f32.mrb[3].mxu0 }
 0x118   :  { %142 = vst.msk [vmem:[#allocation8 + $0x8] sm:$0xff] %vm66_vm1, %v140_v11 }
 0x119   :  { %267 = shalt.err (!%p264_p0)
}
 0x11a   :  { %s268_s26 = scalar_lea.hbm %s377_s3, 256 }
 0x11b   :  { %p269_p1 = scmp.ne.s32.totalorder %s377_s3, %s268_s26  ;;  %p272_p2 = scmp.lt.u32.totalorder %s268_s26, %s377_s3 }
 0x11d   :  { %p274_p3 = pnand %p272_p2, %p269_p1 }
 0x11f   :  { %277 = shalt.err (!%p274_p3)
}
 0x120   :  { %s292_s4 = smov 128   ;;  %s293_s5 = smov 8  }
 0x121   :  { %154 = dma.vmem_to_hbm [thread:$0]  %s149_s22, 256, %s377_s3, [#allocation4], %s292_s4, %s292_s4, %s293_s5  }
 0x122   :  { %282 = dma.done.wait [#allocation4], 256  }
 0x123   :  { %283 = vsyncadd [#allocation4], 4294967040 }
 0x124   :  { %158 = vsyncpa [#allocation3], 1 }
 0x125   :  { %159 = vsyncpa [#allocation6], 1 }
 0x126   :  { %160 = vsyncpa [#allocation4], 1 }

</bundles_post_ra>
